<compile_context>
chip_gen: v7x
topology: tpu7x:2x2x1
jax: 0.10.0
libtpu: 0.0.40
codegen_flags: <defaults>
</compile_context>

<pallas_src>
import functools

import numpy as np
import jax
import jax.numpy as jnp
from jax.experimental import pallas as pl
from jax.experimental.pallas import tpu as pltpu


# ----------------------------------------------------------------------------
# One-time parameter packing (host side, outside the per-step path).
#
# Activation layouts inside the kernel (rows are y-major, batch-minor:
# row = y*B + b; B = batch_tile):
#   enc1 out : two 7-row groups (even y / odd y), lanes = x*16 + c   (224)
#   enc2 out : rows = y (7),                      lanes = x*32 + c   (224)
#   dec1 out : rows = y (7),                      lanes = x*32 + c   (224)
#   dec2 out : per x-parity qx, P0 = even rows Y=2m / P1 = odd rows Y=2m+1,
#              rows = m (7), lanes = n*16 + c (112); actual X = 2n + qx
#   dec3 out : rows = j (7), lanes = phase*28 + X (+16 pad lanes); Y = 4j+phase
# The banded matrices below fold kernel-x taps, x padding and x stride into
# dense matmul weights, so the kernel only ever does 2-D matmuls plus
# contiguous B-row shifts.
# ----------------------------------------------------------------------------
def pack_params(p):
    W1 = np.asarray(p["enc1_w"], np.float32); b1 = np.asarray(p["enc1_b"], np.float32)
    W2 = np.asarray(p["enc2_w"], np.float32); b2 = np.asarray(p["enc2_b"], np.float32)
    W3 = np.asarray(p["enc3_w"], np.float32); b3 = np.asarray(p["enc3_b"], np.float32)
    Wd1 = np.asarray(p["dec1_w"], np.float32); bd1 = np.asarray(p["dec1_b"], np.float32)
    Wd2 = np.asarray(p["dec2_w"], np.float32); bd2 = np.asarray(p["dec2_b"], np.float32)
    Wd3 = np.asarray(p["dec3_w"], np.float32); bd3 = np.asarray(p["dec3_b"], np.float32)

    # enc1 (Conv 1->16, k3, s2, p1): ky folded into the contraction.
    # A1[ky*28+xi, xo*16+co] = W1[co,0,ky,kx], kx = xi - 2*xo + 1.
    A1 = np.zeros((3, 28, 14, 16), np.float32)
    for ky in range(3):
        for xo in range(14):
            for kx in range(3):
                xi = 2 * xo + kx - 1
                if 0 <= xi < 28:
                    A1[ky, xi, xo, :] = W1[:, 0, ky, kx]
    A1 = A1.reshape(84, 224)
    b1row = np.tile(b1, 14)[None]                       # (1, 224)

    # enc2 (Conv 16->32, k3, s2, p1): A2[ky][xi*16+ci, xo*32+co] = W2[co,ci,ky,kx]
    A2 = np.zeros((3, 14, 16, 7, 32), np.float32)
    for ky in range(3):
        for xo in range(7):
            for kx in range(3):
                xi = 2 * xo + kx - 1
                if 0 <= xi < 14:
                    A2[ky, xi, :, xo, :] = W2[:, :, ky, kx].T      # (ci, co)
    A2 = A2.reshape(3, 224, 224)
    b2row = np.tile(b2, 7)[None]                        # (1, 224)

    # enc3 (Conv 32->64, k7 valid) == dense: W3r[y][x*32+ci, co] = W3[co,ci,y,x]
    W3r = np.ascontiguousarray(W3.transpose(2, 3, 1, 0)).reshape(7, 224, 64)
    b3row = b3[None]                                    # (1, 64)

    # dec1 (ConvT 64->32, k7) == dense: Wd1r[y][ci, x*32+co] = Wd1[ci,co,y,x]
    Wd1r = np.ascontiguousarray(Wd1.transpose(2, 0, 3, 1)).reshape(7, 64, 224)
    bd1row = np.tile(bd1, 7)[None]                      # (1, 224)

    # dec2 (ConvT 32->16, k3, s2, p1, op1), sub-pixel in x:
    # Ad2[ky,qx][xi*32+ci, n*16+co] = Wd2[ci,co,ky,kx], kx = 2n+qx-2*xi+1
    Ad2 = np.zeros((3, 2, 7, 32, 7, 16), np.float32)
    for ky in range(3):
        for qx in range(2):
            for n in range(7):
                for xi in range(7):
                    kx = 2 * n + qx - 2 * xi + 1
                    if 0 <= kx < 3:
                        Ad2[ky, qx, xi, :, n, :] = Wd2[:, :, ky, kx]   # (ci, co)
    Ad2 = Ad2.reshape(3, 2, 224, 112)
    bd2row = np.tile(bd2, 7)[None]                      # (1, 112)

    # dec3 (ConvT 16->1, k3, s2, p1, op1), sub-pixel in x, inputs are dec2's
    # parity planes: D3[ky,qx][n*16+ci, Xo] = Wd3[ci,0,ky,kx], Xo = 4n+2qx+kx-1
    D3 = np.zeros((3, 2, 7, 16, 28), np.float32)
    for ky in range(3):
        for qx in range(2):
            for n in range(7):
                for kx in range(3):
                    xo = 4 * n + 2 * qx + kx - 1
                    if 0 <= xo < 28:
                        D3[ky, qx, n, :, xo] = Wd3[:, 0, ky, kx]
    D3 = D3.reshape(3, 2, 112, 28)

    # Fold the 4 dec3 y-phases into one 128-lane output (lane = phase*28 + X,
    # lanes 112..127 are pad).  Operand order: P0_x0, P0_x1, P1_x0, P1_x1,
    # P0shift_x0, P0shift_x1 (shift = dec2 even-row index j+1).
    #   phase0 (Y=4j)  : P0  via ky=1
    #   phase1 (Y=4j+1): P1  via ky=0  +  P0 via ky=2
    #   phase2 (Y=4j+2): P1  via ky=1
    #   phase3 (Y=4j+3): P0shift via ky=0  +  P1 via ky=2
    G3 = np.zeros((6, 112, 128), np.float32)
    for qx in range(2):
        G3[qx, :, 0:28] = D3[1, qx]
        G3[qx, :, 28:56] = D3[2, qx]
        G3[2 + qx, :, 28:56] = D3[0, qx]
        G3[2 + qx, :, 56:84] = D3[1, qx]
        G3[2 + qx, :, 84:112] = D3[2, qx]
        G3[4 + qx, :, 84:112] = D3[0, qx]
    bd3row = np.zeros((1, 128), np.float32)
    bd3row[0, :112] = bd3[0]

    wb = lambda a: jnp.asarray(a, jnp.bfloat16)         # matmul weights -> bf16
    fb = lambda a: jnp.asarray(a, jnp.float32)          # biases stay f32
    return dict(A1=wb(A1), A2=wb(A2), W3=wb(W3r), Wd1=wb(Wd1r),
                Ad2=wb(Ad2), G3=wb(G3),
                b1=fb(b1row), b2=fb(b2row), b3=fb(b3row),
                bd1=fb(bd1row), bd2=fb(bd2row), bd3=fb(bd3row))


# ----------------------------------------------------------------------------
# Host-side input re-layout (once, on the raw input only).
# Emits enc1's stride-2 y-tap rows, split by enc1 output-row parity, with the
# 3 ky taps folded into the lane dim:
#   row = tile*14*B + (g*7+m)*B + b_local,  lane = ky*28 + x,
#   value = img[b, 4m + 2g + ky - 1, x]   (zeros out of range)
# ----------------------------------------------------------------------------
def prep_input(x, batch_tile):                 # x: (N, 1, 28, 28)
    n = x.shape[0]
    n_pad = ((n + batch_tile - 1) // batch_tile) * batch_tile
    img = x[:, 0]                              # (N, 28, 28)
    if n_pad != n:
        img = jnp.pad(img, ((0, n_pad - n), (0, 0), (0, 0)))
    imgp = jnp.pad(img, ((0, 0), (1, 0), (0, 0)))           # padded row k == orig k-1
    g = np.arange(2)[:, None, None]
    m = np.arange(7)[None, :, None]
    ky = np.arange(3)[None, None, :]
    rows = (4 * m + 2 * g + ky).reshape(-1)                 # (42,) padded row indices
    sel = imgp[:, rows, :]                                  # (n_pad, 42, 28)
    sel = sel.reshape(n_pad, 14, 84)                        # lane = ky*28 + x
    n_tiles = n_pad // batch_tile
    sel = sel.reshape(n_tiles, batch_tile, 14, 84).transpose(0, 2, 1, 3)
    return sel.reshape(n_tiles * 14 * batch_tile, 84), n_pad


# ----------------------------------------------------------------------------
# The fused autoencoder kernel (one grid step = one batch tile, no inner loops
# over images: every dot is batched over the tile).
# ----------------------------------------------------------------------------
def _autoenc_kernel(x_ref, a1_ref, a2_ref, w3_ref, wd1_ref, ad2_ref, g3_ref,
                    b1_ref, b2_ref, b3_ref, bd1_ref, bd2_ref, bd3_ref,
                    out_ref, *, batch_tile):
    f32, bf16 = jnp.float32, jnp.bfloat16
    B = batch_tile
    R = 7 * B                                      # rows in a 7-row slab

    def mm(a, w):                                  # bf16 x bf16 -> f32 (MXU)
        return jnp.dot(a.astype(bf16), w, preferred_element_type=f32)

    z224 = jnp.zeros((B, 224), f32)
    z112 = jnp.zeros((B, 112), f32)

    # ---- enc1: Conv(1->16, k3, s2, p1) + ReLU ------------------------------
    e1o1 = jnp.maximum(mm(x_ref[...], a1_ref[...]) + b1_ref[...], 0.0)   # (14B, 224)
    E = e1o1[:R]                                             # even enc1 rows y=2m
    O = e1o1[R:]                                             # odd  enc1 rows y=2m+1
    Om1 = jnp.concatenate([z224, O[:R - B]], axis=0)         # odd rows at y=2m-1

    # ---- enc2: Conv(16->32, k3, s2, p1) + ReLU -----------------------------
    acc2 = mm(Om1, a2_ref[0]) + mm(E, a2_ref[1]) + mm(O, a2_ref[2])
    h2 = jnp.maximum(acc2 + b2_ref[...], 0.0)                # (7B, 224)

    # ---- enc3: Conv(32->64, k7 valid) == dense, no activation --------------
    z = b3_ref[...]                                          # (1, 64) -> (B, 64)
    for y in range(7):
        z = z + mm(h2[y * B:(y + 1) * B], w3_ref[y])

    # ---- dec1: ConvT(64->32, k7) == dense + ReLU ---------------------------
    d1_rows = [jnp.maximum(mm(z, wd1_ref[y]) + bd1_ref[...], 0.0)
               for y in range(7)]
    D = jnp.concatenate(d1_rows, axis=0)                     # (7B, 224), rows y=m
    Dp1 = jnp.concatenate([D[B:], z224], axis=0)             # rows y=m+1 (zero at 7)

    # ---- dec2: ConvT(32->16, k3, s2, p1, op1) + ReLU (sub-pixel) -----------
    P0, P1, P0p1 = [], [], []
    for qx in range(2):
        p0 = jnp.maximum(mm(D, ad2_ref[1, qx]) + bd2_ref[...], 0.0)       # Y=2m
        p1 = jnp.maximum(mm(Dp1, ad2_ref[0, qx]) + mm(D, ad2_ref[2, qx])
                         + bd2_ref[...], 0.0)                             # Y=2m+1
        P0.append(p0)
        P1.append(p1)
        P0p1.append(jnp.concatenate([p0[B:], z112], axis=0))              # j+1

    # ---- dec3: ConvT(16->1, k3, s2, p1, op1) + Sigmoid ---------------------
    # 4 y-phases packed into 112 output lanes (+16 pad lanes) -> one dense store.
    acc = bd3_ref[...]                                       # (1, 128)
    for idx, op in enumerate((P0[0], P0[1], P1[0], P1[1], P0p1[0], P0p1[1])):
        acc = acc + mm(op, g3_ref[idx])
    out_ref[...] = jax.nn.sigmoid(acc)                       # (7B, 128)


def _full_spec(arr):
    zeros = (0,) * arr.ndim
    return pl.BlockSpec(arr.shape, lambda i, _z=zeros: _z)


def cnn_autoencoder_fwd(x, packed, *, batch_tile=8):
    """x: (N, 1, 28, 28) f32 -> (N, 1, 28, 28) f32 (fused Pallas forward).

    batch_tile should be a multiple of 8 (sublane tile); raise to 16/32 for
    large batches (VMEM use stays at a few MB), keeping >= 2 grid steps so the
    batch axis can span both TensorCores on v7x.
    """
    assert batch_tile % 8 == 0, "batch_tile must be a multiple of 8"
    n = x.shape[0]
    xprep, n_pad = prep_input(x, batch_tile)             # (n_tiles*14*B, 84)
    n_tiles = n_pad // batch_tile

    w_names = ["A1", "A2", "W3", "Wd1", "Ad2", "G3",
               "b1", "b2", "b3", "bd1", "bd2", "bd3"]
    w_ops = [packed[k] for k in w_names]

    in_specs = ([pl.BlockSpec((14 * batch_tile, 84), lambda i: (i, 0))]
                + [_full_spec(a) for a in w_ops])
    out_specs = pl.BlockSpec((7 * batch_tile, 128), lambda i: (i, 0))

    out = pl.pallas_call(
        functools.partial(_autoenc_kernel, batch_tile=batch_tile),
        out_shape=jax.ShapeDtypeStruct((n_tiles * 7 * batch_tile, 128), jnp.float32),
        grid_spec=pltpu.PrefetchScalarGridSpec(
            num_scalar_prefetch=0,
            grid=(n_tiles,),
            in_specs=in_specs,
            out_specs=out_specs),
        compiler_params=pltpu.CompilerParams(
            dimension_semantics=("parallel",),
            vmem_limit_bytes=32 * 1024 * 1024),
    )(xprep, *w_ops)

    # Unpack: row = tile*7B + j*B + b_local, lane = phase*28 + X, Y = 4j + phase.
    out = out.reshape(n_tiles, 7, batch_tile, 128)[..., :112]
    out = out.reshape(n_tiles, 7, batch_tile, 4, 28).transpose(0, 2, 1, 3, 4)
    out = out.reshape(n_pad, 28, 28)[:n]
    return out[:, None]


# ----------------------------------------------------------------------------
# Pure-JAX reference (im2col formulation) used only to validate the kernel.
# ----------------------------------------------------------------------------
_HI = jax.lax.Precision.HIGHEST


def _act(x, act):
    if act == "relu":
        return jnp.maximum(x, 0.0)
    if act == "sigmoid":
        return jax.nn.sigmoid(x)
    return x


def _im2col_ref(x, kh, kw, stride, pad_tl, pad_br):
    x = jnp.pad(x, ((0, 0), (0, 0), (pad_tl, pad_br), (pad_tl, pad_br)))
    n, c, h, w = x.shape
    ho = (h - kh) // stride + 1
    wo = (w - kw) // stride + 1
    cols = []
    for i in range(kh):
        for j in range(kw):
            cols.append(x[:, :, i:i + stride * ho:stride, j:j + stride * wo:stride])
    patches = jnp.stack(cols, axis=-1).transpose(0, 2, 3, 1, 4)
    return patches.reshape(n * ho * wo, c * kh * kw), (n, ho, wo)


def conv2d_ref(x, w, b, stride, pad, act):
    co, ci, kh, kw = w.shape
    cols, (n, ho, wo) = _im2col_ref(x, kh, kw, stride, pad, pad)
    out = jnp.dot(cols, w.reshape(co, -1).T, precision=_HI) + b
    return _act(out.reshape(n, ho, wo, co).transpose(0, 3, 1, 2), act)


def conv_transpose2d_ref(x, w, b, stride, pad, out_pad, act):
    ci, co, kh, kw = w.shape
    w_eq = jnp.flip(w, axis=(-2, -1)).transpose(1, 0, 2, 3)
    n, c, h, wd = x.shape
    if stride > 1:
        xd = jnp.zeros((n, c, (h - 1) * stride + 1, (wd - 1) * stride + 1), x.dtype)
        xd = xd.at[:, :, ::stride, ::stride].set(x)
    else:
        xd = x
    cols, (n, ho, wo) = _im2col_ref(xd, kh, kw, 1, kh - 1 - pad, kh - 1 - pad + out_pad)
    out = jnp.dot(cols, w_eq.reshape(co, -1).T, precision=_HI) + b
    return _act(out.reshape(n, ho, wo, co).transpose(0, 3, 1, 2), act)


def cnn_autoencoder_ref(x, p):
    h = conv2d_ref(x, p["enc1_w"], p["enc1_b"], 2, 1, "relu")
    h = conv2d_ref(h, p["enc2_w"], p["enc2_b"], 2, 1, "relu")
    h = conv2d_ref(h, p["enc3_w"], p["enc3_b"], 1, 0, "none")
    h = conv_transpose2d_ref(h, p["dec1_w"], p["dec1_b"], 1, 0, 0, "relu")
    h = conv_transpose2d_ref(h, p["dec2_w"], p["dec2_b"], 2, 1, 1, "relu")
    h = conv_transpose2d_ref(h, p["dec3_w"], p["dec3_b"], 2, 1, 1, "sigmoid")
    return h


# ----------------------------------------------------------------------------
# Parameter init (PyTorch-style layouts: Conv (Co,Ci,kh,kw), ConvT (Ci,Co,kh,kw))
# ----------------------------------------------------------------------------
def init_params(key):
    def uinit(k, shape, fan_in):
        bound = 1.0 / jnp.sqrt(jnp.float32(fan_in))
        return jax.random.uniform(k, shape, jnp.float32, -bound, bound)

    keys = jax.random.split(key, 12)
    p = {}
    p["enc1_w"] = uinit(keys[0], (16, 1, 3, 3), 1 * 9)
    p["enc1_b"] = uinit(keys[1], (16,), 1 * 9)
    p["enc2_w"] = uinit(keys[2], (32, 16, 3, 3), 16 * 9)
    p["enc2_b"] = uinit(keys[3], (32,), 16 * 9)
    p["enc3_w"] = uinit(keys[4], (64, 32, 7, 7), 32 * 49)
    p["enc3_b"] = uinit(keys[5], (64,), 32 * 49)
    p["dec1_w"] = uinit(keys[6], (64, 32, 7, 7), 32 * 49)
    p["dec1_b"] = uinit(keys[7], (32,), 32 * 49)
    p["dec2_w"] = uinit(keys[8], (32, 16, 3, 3), 16 * 9)
    p["dec2_b"] = uinit(keys[9], (16,), 16 * 9)
    p["dec3_w"] = uinit(keys[10], (16, 1, 3, 3), 1 * 9)
    p["dec3_b"] = uinit(keys[11], (1,), 1 * 9)
    return p


if __name__ == "__main__":
    key = jax.random.PRNGKey(0)
    k_params, k_x = jax.random.split(key)
    params = init_params(k_params)
    x = jax.random.uniform(k_x, (16, 1, 28, 28), jnp.float32)

    packed = pack_params(params)                 # one-time weight packing (hoisted)
    fwd = jax.jit(functools.partial(cnn_autoencoder_fwd, batch_tile=8))
    out = jax.block_until_ready(fwd(x, packed))  # grid = 2 steps of 8 images

    assert out.shape == (16, 1, 28, 28), out.shape
    assert bool(jnp.all(jnp.isfinite(out)))
    assert bool(jnp.all((out >= 0.0) & (out <= 1.0)))   # sigmoid range

    ref = jax.block_until_ready(jax.jit(cnn_autoencoder_ref)(x, params))
    max_err = float(jnp.max(jnp.abs(out - ref)))
    # bf16 matmul weights/activations (f32 accumulation) -> relaxed tolerance.
    assert max_err < 2e-2, f"mismatch vs pure-JAX reference: max abs err = {max_err}"

    print("KERNEL_OK")
</pallas_src>

<mosaic_0001>
module attributes {stable_mosaic.version = 11 : i64} {
  func.func @_autoenc_kernel(%arg0: i32, %arg1: memref<112x84xf32, #tpu.memory_space<vmem>>, %arg2: memref<84x224xbf16, #tpu.memory_space<vmem>>, %arg3: memref<3x224x224xbf16, #tpu.memory_space<vmem>>, %arg4: memref<7x224x64xbf16, #tpu.memory_space<vmem>>, %arg5: memref<7x64x224xbf16, #tpu.memory_space<vmem>>, %arg6: memref<3x2x224x112xbf16, #tpu.memory_space<vmem>>, %arg7: memref<6x112x128xbf16, #tpu.memory_space<vmem>>, %arg8: memref<1x224xf32, #tpu.memory_space<vmem>>, %arg9: memref<1x224xf32, #tpu.memory_space<vmem>>, %arg10: memref<1x64xf32, #tpu.memory_space<vmem>>, %arg11: memref<1x224xf32, #tpu.memory_space<vmem>>, %arg12: memref<1x112xf32, #tpu.memory_space<vmem>>, %arg13: memref<1x128xf32, #tpu.memory_space<vmem>>, %arg14: memref<56x128xf32, #tpu.memory_space<vmem>>) attributes {dimension_semantics = [#tpu.dimension_semantics<parallel>], iteration_bounds = array<i64: 2>, scalar_prefetch = 0 : i64, scratch_operands = 0 : i64, tpu.core_type = #tpu.core_type<tc>, window_params = [{transform_indices = @transform_0, window_bounds = array<i64: 112, 84>}, {pipeline_mode = #tpu.pipeline_mode<synchronous>, transform_indices = @transform_1, window_bounds = array<i64: 84, 224>}, {pipeline_mode = #tpu.pipeline_mode<synchronous>, transform_indices = @transform_2, window_bounds = array<i64: 3, 224, 224>}, {pipeline_mode = #tpu.pipeline_mode<synchronous>, transform_indices = @transform_3, window_bounds = array<i64: 7, 224, 64>}, {pipeline_mode = #tpu.pipeline_mode<synchronous>, transform_indices = @transform_4, window_bounds = array<i64: 7, 64, 224>}, {pipeline_mode = #tpu.pipeline_mode<synchronous>, transform_indices = @transform_5, window_bounds = array<i64: 3, 2, 224, 112>}, {pipeline_mode = #tpu.pipeline_mode<synchronous>, transform_indices = @transform_6, window_bounds = array<i64: 6, 112, 128>}, {pipeline_mode = #tpu.pipeline_mode<synchronous>, transform_indices = @transform_7, window_bounds = array<i64: 1, 224>}, {pipeline_mode = #tpu.pipeline_mode<synchronous>, transform_indices = @transform_8, window_bounds = array<i64: 1, 224>}, {pipeline_mode = #tpu.pipeline_mode<synchronous>, transform_indices = @transform_9, window_bounds = array<i64: 1, 64>}, {pipeline_mode = #tpu.pipeline_mode<synchronous>, transform_indices = @transform_10, window_bounds = array<i64: 1, 224>}, {pipeline_mode = #tpu.pipeline_mode<synchronous>, transform_indices = @transform_11, window_bounds = array<i64: 1, 112>}, {pipeline_mode = #tpu.pipeline_mode<synchronous>, transform_indices = @transform_12, window_bounds = array<i64: 1, 128>}, {transform_indices = @transform_13, window_bounds = array<i64: 56, 128>}]} {
    %cst = arith.constant 0.000000e+00 : f32
    %0 = vector.broadcast %cst : f32 to vector<8x224xf32>
    %cst_0 = arith.constant 0.000000e+00 : f32
    %1 = vector.broadcast %cst_0 : f32 to vector<8x112xf32>
    %c0 = arith.constant 0 : index
    %c0_1 = arith.constant 0 : index
    %2 = vector.load %arg1[%c0, %c0_1] : memref<112x84xf32, #tpu.memory_space<vmem>>, vector<112x84xf32>
    %c0_2 = arith.constant 0 : index
    %c0_3 = arith.constant 0 : index
    %3 = vector.load %arg2[%c0_2, %c0_3] : memref<84x224xbf16, #tpu.memory_space<vmem>>, vector<84x224xbf16>
    %4 = arith.truncf %2 : vector<112x84xf32> to vector<112x84xbf16>
    %cst_4 = arith.constant dense<0.000000e+00> : vector<112x224xf32>
    %5 = tpu.matmul %4, %3, %cst_4 {dimension_numbers = #tpu.dot_dimension_numbers<[1], [0], [0], [1], [0, 0, 1, 1], [], []>} : vector<112x84xbf16>, vector<84x224xbf16>, vector<112x224xf32> -> vector<112x224xf32>
    %c0_5 = arith.constant 0 : index
    %c0_6 = arith.constant 0 : index
    %6 = vector.load %arg8[%c0_5, %c0_6] : memref<1x224xf32, #tpu.memory_space<vmem>>, vector<1x224xf32>
    %7 = vector.broadcast %6 : vector<1x224xf32> to vector<112x224xf32>
    %8 = arith.addf %5, %7 : vector<112x224xf32>
    %cst_7 = arith.constant 0.000000e+00 : f32
    %9 = vector.broadcast %cst_7 : f32 to vector<112x224xf32>
    %10 = arith.maximumf %8, %9 : vector<112x224xf32>
    %11 = vector.extract_strided_slice %10 {offsets = [0, 0], sizes = [56, 224], strides = [1, 1]} : vector<112x224xf32> to vector<56x224xf32>
    %12 = vector.extract_strided_slice %10 {offsets = [56, 0], sizes = [56, 224], strides = [1, 1]} : vector<112x224xf32> to vector<56x224xf32>
    %13 = vector.extract_strided_slice %12 {offsets = [0, 0], sizes = [48, 224], strides = [1, 1]} : vector<56x224xf32> to vector<48x224xf32>
    %14 = tpu.concatenate %0, %13 in 0 : vector<8x224xf32>, vector<48x224xf32> -> vector<56x224xf32>
    %c0_8 = arith.constant 0 : index
    %c0_9 = arith.constant 0 : index
    %c0_10 = arith.constant 0 : index
    %15 = vector.load %arg3[%c0_8, %c0_9, %c0_10] : memref<3x224x224xbf16, #tpu.memory_space<vmem>>, vector<1x224x224xbf16>
    %16 = vector.shape_cast %15 : vector<1x224x224xbf16> to vector<224x224xbf16>
    %17 = arith.truncf %14 : vector<56x224xf32> to vector<56x224xbf16>
    %cst_11 = arith.constant dense<0.000000e+00> : vector<56x224xf32>
    %18 = tpu.matmul %17, %16, %cst_11 {dimension_numbers = #tpu.dot_dimension_numbers<[1], [0], [0], [1], [0, 0, 1, 1], [], []>} : vector<56x224xbf16>, vector<224x224xbf16>, vector<56x224xf32> -> vector<56x224xf32>
    %c1 = arith.constant 1 : index
    %c0_12 = arith.constant 0 : index
    %c0_13 = arith.constant 0 : index
    %19 = vector.load %arg3[%c1, %c0_12, %c0_13] : memref<3x224x224xbf16, #tpu.memory_space<vmem>>, vector<1x224x224xbf16>
    %20 = vector.shape_cast %19 : vector<1x224x224xbf16> to vector<224x224xbf16>
    %21 = arith.truncf %11 : vector<56x224xf32> to vector<56x224xbf16>
    %cst_14 = arith.constant dense<0.000000e+00> : vector<56x224xf32>
    %22 = tpu.matmul %21, %20, %cst_14 {dimension_numbers = #tpu.dot_dimension_numbers<[1], [0], [0], [1], [0, 0, 1, 1], [], []>} : vector<56x224xbf16>, vector<224x224xbf16>, vector<56x224xf32> -> vector<56x224xf32>
    %23 = arith.addf %18, %22 : vector<56x224xf32>
    %c2 = arith.constant 2 : index
    %c0_15 = arith.constant 0 : index
    %c0_16 = arith.constant 0 : index
    %24 = vector.load %arg3[%c2, %c0_15, %c0_16] : memref<3x224x224xbf16, #tpu.memory_space<vmem>>, vector<1x224x224xbf16>
    %25 = vector.shape_cast %24 : vector<1x224x224xbf16> to vector<224x224xbf16>
    %26 = arith.truncf %12 : vector<56x224xf32> to vector<56x224xbf16>
    %cst_17 = arith.constant dense<0.000000e+00> : vector<56x224xf32>
    %27 = tpu.matmul %26, %25, %cst_17 {dimension_numbers = #tpu.dot_dimension_numbers<[1], [0], [0], [1], [0, 0, 1, 1], [], []>} : vector<56x224xbf16>, vector<224x224xbf16>, vector<56x224xf32> -> vector<56x224xf32>
    %28 = arith.addf %23, %27 : vector<56x224xf32>
    %c0_18 = arith.constant 0 : index
    %c0_19 = arith.constant 0 : index
    %29 = vector.load %arg9[%c0_18, %c0_19] : memref<1x224xf32, #tpu.memory_space<vmem>>, vector<1x224xf32>
    %30 = vector.broadcast %29 : vector<1x224xf32> to vector<56x224xf32>
    %31 = arith.addf %28, %30 : vector<56x224xf32>
    %cst_20 = arith.constant 0.000000e+00 : f32
    %32 = vector.broadcast %cst_20 : f32 to vector<56x224xf32>
    %33 = arith.maximumf %31, %32 : vector<56x224xf32>
    %c0_21 = arith.constant 0 : index
    %c0_22 = arith.constant 0 : index
    %34 = vector.load %arg10[%c0_21, %c0_22] : memref<1x64xf32, #tpu.memory_space<vmem>>, vector<1x64xf32>
    %35 = vector.extract_strided_slice %33 {offsets = [0, 0], sizes = [8, 224], strides = [1, 1]} : vector<56x224xf32> to vector<8x224xf32>
    %c0_23 = arith.constant 0 : index
    %c0_24 = arith.constant 0 : index
    %c0_25 = arith.constant 0 : index
    %36 = vector.load %arg4[%c0_23, %c0_24, %c0_25] : memref<7x224x64xbf16, #tpu.memory_space<vmem>>, vector<1x224x64xbf16>
    %37 = vector.shape_cast %36 : vector<1x224x64xbf16> to vector<224x64xbf16>
    %38 = arith.truncf %35 : vector<8x224xf32> to vector<8x224xbf16>
    %cst_26 = arith.constant dense<0.000000e+00> : vector<8x64xf32>
    %39 = tpu.matmul %38, %37, %cst_26 {dimension_numbers = #tpu.dot_dimension_numbers<[1], [0], [0], [1], [0, 0, 1, 1], [], []>} : vector<8x224xbf16>, vector<224x64xbf16>, vector<8x64xf32> -> vector<8x64xf32>
    %40 = vector.broadcast %34 : vector<1x64xf32> to vector<8x64xf32>
    %41 = arith.addf %40, %39 : vector<8x64xf32>
    %42 = vector.extract_strided_slice %33 {offsets = [8, 0], sizes = [8, 224], strides = [1, 1]} : vector<56x224xf32> to vector<8x224xf32>
    %c1_27 = arith.constant 1 : index
    %c0_28 = arith.constant 0 : index
    %c0_29 = arith.constant 0 : index
    %43 = vector.load %arg4[%c1_27, %c0_28, %c0_29] : memref<7x224x64xbf16, #tpu.memory_space<vmem>>, vector<1x224x64xbf16>
    %44 = vector.shape_cast %43 : vector<1x224x64xbf16> to vector<224x64xbf16>
    %45 = arith.truncf %42 : vector<8x224xf32> to vector<8x224xbf16>
    %cst_30 = arith.constant dense<0.000000e+00> : vector<8x64xf32>
    %46 = tpu.matmul %45, %44, %cst_30 {dimension_numbers = #tpu.dot_dimension_numbers<[1], [0], [0], [1], [0, 0, 1, 1], [], []>} : vector<8x224xbf16>, vector<224x64xbf16>, vector<8x64xf32> -> vector<8x64xf32>
    %47 = arith.addf %41, %46 : vector<8x64xf32>
    %48 = vector.extract_strided_slice %33 {offsets = [16, 0], sizes = [8, 224], strides = [1, 1]} : vector<56x224xf32> to vector<8x224xf32>
    %c2_31 = arith.constant 2 : index
    %c0_32 = arith.constant 0 : index
    %c0_33 = arith.constant 0 : index
    %49 = vector.load %arg4[%c2_31, %c0_32, %c0_33] : memref<7x224x64xbf16, #tpu.memory_space<vmem>>, vector<1x224x64xbf16>
    %50 = vector.shape_cast %49 : vector<1x224x64xbf16> to vector<224x64xbf16>
    %51 = arith.truncf %48 : vector<8x224xf32> to vector<8x224xbf16>
    %cst_34 = arith.constant dense<0.000000e+00> : vector<8x64xf32>
    %52 = tpu.matmul %51, %50, %cst_34 {dimension_numbers = #tpu.dot_dimension_numbers<[1], [0], [0], [1], [0, 0, 1, 1], [], []>} : vector<8x224xbf16>, vector<224x64xbf16>, vector<8x64xf32> -> vector<8x64xf32>
    %53 = arith.addf %47, %52 : vector<8x64xf32>
    %54 = vector.extract_strided_slice %33 {offsets = [24, 0], sizes = [8, 224], strides = [1, 1]} : vector<56x224xf32> to vector<8x224xf32>
    %c3 = arith.constant 3 : index
    %c0_35 = arith.constant 0 : index
    %c0_36 = arith.constant 0 : index
    %55 = vector.load %arg4[%c3, %c0_35, %c0_36] : memref<7x224x64xbf16, #tpu.memory_space<vmem>>, vector<1x224x64xbf16>
    %56 = vector.shape_cast %55 : vector<1x224x64xbf16> to vector<224x64xbf16>
    %57 = arith.truncf %54 : vector<8x224xf32> to vector<8x224xbf16>
    %cst_37 = arith.constant dense<0.000000e+00> : vector<8x64xf32>
    %58 = tpu.matmul %57, %56, %cst_37 {dimension_numbers = #tpu.dot_dimension_numbers<[1], [0], [0], [1], [0, 0, 1, 1], [], []>} : vector<8x224xbf16>, vector<224x64xbf16>, vector<8x64xf32> -> vector<8x64xf32>
    %59 = arith.addf %53, %58 : vector<8x64xf32>
    %60 = vector.extract_strided_slice %33 {offsets = [32, 0], sizes = [8, 224], strides = [1, 1]} : vector<56x224xf32> to vector<8x224xf32>
    %c4 = arith.constant 4 : index
    %c0_38 = arith.constant 0 : index
    %c0_39 = arith.constant 0 : index
    %61 = vector.load %arg4[%c4, %c0_38, %c0_39] : memref<7x224x64xbf16, #tpu.memory_space<vmem>>, vector<1x224x64xbf16>
    %62 = vector.shape_cast %61 : vector<1x224x64xbf16> to vector<224x64xbf16>
    %63 = arith.truncf %60 : vector<8x224xf32> to vector<8x224xbf16>
    %cst_40 = arith.constant dense<0.000000e+00> : vector<8x64xf32>
    %64 = tpu.matmul %63, %62, %cst_40 {dimension_numbers = #tpu.dot_dimension_numbers<[1], [0], [0], [1], [0, 0, 1, 1], [], []>} : vector<8x224xbf16>, vector<224x64xbf16>, vector<8x64xf32> -> vector<8x64xf32>
    %65 = arith.addf %59, %64 : vector<8x64xf32>
    %66 = vector.extract_strided_slice %33 {offsets = [40, 0], sizes = [8, 224], strides = [1, 1]} : vector<56x224xf32> to vector<8x224xf32>
    %c5 = arith.constant 5 : index
    %c0_41 = arith.constant 0 : index
    %c0_42 = arith.constant 0 : index
    %67 = vector.load %arg4[%c5, %c0_41, %c0_42] : memref<7x224x64xbf16, #tpu.memory_space<vmem>>, vector<1x224x64xbf16>
    %68 = vector.shape_cast %67 : vector<1x224x64xbf16> to vector<224x64xbf16>
    %69 = arith.truncf %66 : vector<8x224xf32> to vector<8x224xbf16>
    %cst_43 = arith.constant dense<0.000000e+00> : vector<8x64xf32>
    %70 = tpu.matmul %69, %68, %cst_43 {dimension_numbers = #tpu.dot_dimension_numbers<[1], [0], [0], [1], [0, 0, 1, 1], [], []>} : vector<8x224xbf16>, vector<224x64xbf16>, vector<8x64xf32> -> vector<8x64xf32>
    %71 = arith.addf %65, %70 : vector<8x64xf32>
    %72 = vector.extract_strided_slice %33 {offsets = [48, 0], sizes = [8, 224], strides = [1, 1]} : vector<56x224xf32> to vector<8x224xf32>
    %c6 = arith.constant 6 : index
    %c0_44 = arith.constant 0 : index
    %c0_45 = arith.constant 0 : index
    %73 = vector.load %arg4[%c6, %c0_44, %c0_45] : memref<7x224x64xbf16, #tpu.memory_space<vmem>>, vector<1x224x64xbf16>
    %74 = vector.shape_cast %73 : vector<1x224x64xbf16> to vector<224x64xbf16>
    %75 = arith.truncf %72 : vector<8x224xf32> to vector<8x224xbf16>
    %cst_46 = arith.constant dense<0.000000e+00> : vector<8x64xf32>
    %76 = tpu.matmul %75, %74, %cst_46 {dimension_numbers = #tpu.dot_dimension_numbers<[1], [0], [0], [1], [0, 0, 1, 1], [], []>} : vector<8x224xbf16>, vector<224x64xbf16>, vector<8x64xf32> -> vector<8x64xf32>
    %77 = arith.addf %71, %76 : vector<8x64xf32>
    %c0_47 = arith.constant 0 : index
    %c0_48 = arith.constant 0 : index
    %c0_49 = arith.constant 0 : index
    %78 = vector.load %arg5[%c0_47, %c0_48, %c0_49] : memref<7x64x224xbf16, #tpu.memory_space<vmem>>, vector<1x64x224xbf16>
    %79 = vector.shape_cast %78 : vector<1x64x224xbf16> to vector<64x224xbf16>
    %80 = arith.truncf %77 : vector<8x64xf32> to vector<8x64xbf16>
    %cst_50 = arith.constant dense<0.000000e+00> : vector<8x224xf32>
    %81 = tpu.matmul %80, %79, %cst_50 {dimension_numbers = #tpu.dot_dimension_numbers<[1], [0], [0], [1], [0, 0, 1, 1], [], []>} : vector<8x64xbf16>, vector<64x224xbf16>, vector<8x224xf32> -> vector<8x224xf32>
    %c0_51 = arith.constant 0 : index
    %c0_52 = arith.constant 0 : index
    %82 = vector.load %arg11[%c0_51, %c0_52] : memref<1x224xf32, #tpu.memory_space<vmem>>, vector<1x224xf32>
    %83 = vector.broadcast %82 : vector<1x224xf32> to vector<8x224xf32>
    %84 = arith.addf %81, %83 : vector<8x224xf32>
    %cst_53 = arith.constant 0.000000e+00 : f32
    %85 = vector.broadcast %cst_53 : f32 to vector<8x224xf32>
    %86 = arith.maximumf %84, %85 : vector<8x224xf32>
    %c1_54 = arith.constant 1 : index
    %c0_55 = arith.constant 0 : index
    %c0_56 = arith.constant 0 : index
    %87 = vector.load %arg5[%c1_54, %c0_55, %c0_56] : memref<7x64x224xbf16, #tpu.memory_space<vmem>>, vector<1x64x224xbf16>
    %88 = vector.shape_cast %87 : vector<1x64x224xbf16> to vector<64x224xbf16>
    %89 = arith.truncf %77 : vector<8x64xf32> to vector<8x64xbf16>
    %cst_57 = arith.constant dense<0.000000e+00> : vector<8x224xf32>
    %90 = tpu.matmul %89, %88, %cst_57 {dimension_numbers = #tpu.dot_dimension_numbers<[1], [0], [0], [1], [0, 0, 1, 1], [], []>} : vector<8x64xbf16>, vector<64x224xbf16>, vector<8x224xf32> -> vector<8x224xf32>
    %c0_58 = arith.constant 0 : index
    %c0_59 = arith.constant 0 : index
    %91 = vector.load %arg11[%c0_58, %c0_59] : memref<1x224xf32, #tpu.memory_space<vmem>>, vector<1x224xf32>
    %92 = vector.broadcast %91 : vector<1x224xf32> to vector<8x224xf32>
    %93 = arith.addf %90, %92 : vector<8x224xf32>
    %cst_60 = arith.constant 0.000000e+00 : f32
    %94 = vector.broadcast %cst_60 : f32 to vector<8x224xf32>
    %95 = arith.maximumf %93, %94 : vector<8x224xf32>
    %c2_61 = arith.constant 2 : index
    %c0_62 = arith.constant 0 : index
    %c0_63 = arith.constant 0 : index
    %96 = vector.load %arg5[%c2_61, %c0_62, %c0_63] : memref<7x64x224xbf16, #tpu.memory_space<vmem>>, vector<1x64x224xbf16>
    %97 = vector.shape_cast %96 : vector<1x64x224xbf16> to vector<64x224xbf16>
    %98 = arith.truncf %77 : vector<8x64xf32> to vector<8x64xbf16>
    %cst_64 = arith.constant dense<0.000000e+00> : vector<8x224xf32>
    %99 = tpu.matmul %98, %97, %cst_64 {dimension_numbers = #tpu.dot_dimension_numbers<[1], [0], [0], [1], [0, 0, 1, 1], [], []>} : vector<8x64xbf16>, vector<64x224xbf16>, vector<8x224xf32> -> vector<8x224xf32>
    %c0_65 = arith.constant 0 : index
    %c0_66 = arith.constant 0 : index
    %100 = vector.load %arg11[%c0_65, %c0_66] : memref<1x224xf32, #tpu.memory_space<vmem>>, vector<1x224xf32>
    %101 = vector.broadcast %100 : vector<1x224xf32> to vector<8x224xf32>
    %102 = arith.addf %99, %101 : vector<8x224xf32>
    %cst_67 = arith.constant 0.000000e+00 : f32
    %103 = vector.broadcast %cst_67 : f32 to vector<8x224xf32>
    %104 = arith.maximumf %102, %103 : vector<8x224xf32>
    %c3_68 = arith.constant 3 : index
    %c0_69 = arith.constant 0 : index
    %c0_70 = arith.constant 0 : index
    %105 = vector.load %arg5[%c3_68, %c0_69, %c0_70] : memref<7x64x224xbf16, #tpu.memory_space<vmem>>, vector<1x64x224xbf16>
    %106 = vector.shape_cast %105 : vector<1x64x224xbf16> to vector<64x224xbf16>
    %107 = arith.truncf %77 : vector<8x64xf32> to vector<8x64xbf16>
    %cst_71 = arith.constant dense<0.000000e+00> : vector<8x224xf32>
    %108 = tpu.matmul %107, %106, %cst_71 {dimension_numbers = #tpu.dot_dimension_numbers<[1], [0], [0], [1], [0, 0, 1, 1], [], []>} : vector<8x64xbf16>, vector<64x224xbf16>, vector<8x224xf32> -> vector<8x224xf32>
    %c0_72 = arith.constant 0 : index
    %c0_73 = arith.constant 0 : index
    %109 = vector.load %arg11[%c0_72, %c0_73] : memref<1x224xf32, #tpu.memory_space<vmem>>, vector<1x224xf32>
    %110 = vector.broadcast %109 : vector<1x224xf32> to vector<8x224xf32>
    %111 = arith.addf %108, %110 : vector<8x224xf32>
    %cst_74 = arith.constant 0.000000e+00 : f32
    %112 = vector.broadcast %cst_74 : f32 to vector<8x224xf32>
    %113 = arith.maximumf %111, %112 : vector<8x224xf32>
    %c4_75 = arith.constant 4 : index
    %c0_76 = arith.constant 0 : index
    %c0_77 = arith.constant 0 : index
    %114 = vector.load %arg5[%c4_75, %c0_76, %c0_77] : memref<7x64x224xbf16, #tpu.memory_space<vmem>>, vector<1x64x224xbf16>
    %115 = vector.shape_cast %114 : vector<1x64x224xbf16> to vector<64x224xbf16>
    %116 = arith.truncf %77 : vector<8x64xf32> to vector<8x64xbf16>
    %cst_78 = arith.constant dense<0.000000e+00> : vector<8x224xf32>
    %117 = tpu.matmul %116, %115, %cst_78 {dimension_numbers = #tpu.dot_dimension_numbers<[1], [0], [0], [1], [0, 0, 1, 1], [], []>} : vector<8x64xbf16>, vector<64x224xbf16>, vector<8x224xf32> -> vector<8x224xf32>
    %c0_79 = arith.constant 0 : index
    %c0_80 = arith.constant 0 : index
    %118 = vector.load %arg11[%c0_79, %c0_80] : memref<1x224xf32, #tpu.memory_space<vmem>>, vector<1x224xf32>
    %119 = vector.broadcast %118 : vector<1x224xf32> to vector<8x224xf32>
    %120 = arith.addf %117, %119 : vector<8x224xf32>
    %cst_81 = arith.constant 0.000000e+00 : f32
    %121 = vector.broadcast %cst_81 : f32 to vector<8x224xf32>
    %122 = arith.maximumf %120, %121 : vector<8x224xf32>
    %c5_82 = arith.constant 5 : index
    %c0_83 = arith.constant 0 : index
    %c0_84 = arith.constant 0 : index
    %123 = vector.load %arg5[%c5_82, %c0_83, %c0_84] : memref<7x64x224xbf16, #tpu.memory_space<vmem>>, vector<1x64x224xbf16>
    %124 = vector.shape_cast %123 : vector<1x64x224xbf16> to vector<64x224xbf16>
    %125 = arith.truncf %77 : vector<8x64xf32> to vector<8x64xbf16>
    %cst_85 = arith.constant dense<0.000000e+00> : vector<8x224xf32>
    %126 = tpu.matmul %125, %124, %cst_85 {dimension_numbers = #tpu.dot_dimension_numbers<[1], [0], [0], [1], [0, 0, 1, 1], [], []>} : vector<8x64xbf16>, vector<64x224xbf16>, vector<8x224xf32> -> vector<8x224xf32>
    %c0_86 = arith.constant 0 : index
    %c0_87 = arith.constant 0 : index
    %127 = vector.load %arg11[%c0_86, %c0_87] : memref<1x224xf32, #tpu.memory_space<vmem>>, vector<1x224xf32>
    %128 = vector.broadcast %127 : vector<1x224xf32> to vector<8x224xf32>
    %129 = arith.addf %126, %128 : vector<8x224xf32>
    %cst_88 = arith.constant 0.000000e+00 : f32
    %130 = vector.broadcast %cst_88 : f32 to vector<8x224xf32>
    %131 = arith.maximumf %129, %130 : vector<8x224xf32>
    %c6_89 = arith.constant 6 : index
    %c0_90 = arith.constant 0 : index
    %c0_91 = arith.constant 0 : index
    %132 = vector.load %arg5[%c6_89, %c0_90, %c0_91] : memref<7x64x224xbf16, #tpu.memory_space<vmem>>, vector<1x64x224xbf16>
    %133 = vector.shape_cast %132 : vector<1x64x224xbf16> to vector<64x224xbf16>
    %134 = arith.truncf %77 : vector<8x64xf32> to vector<8x64xbf16>
    %cst_92 = arith.constant dense<0.000000e+00> : vector<8x224xf32>
    %135 = tpu.matmul %134, %133, %cst_92 {dimension_numbers = #tpu.dot_dimension_numbers<[1], [0], [0], [1], [0, 0, 1, 1], [], []>} : vector<8x64xbf16>, vector<64x224xbf16>, vector<8x224xf32> -> vector<8x224xf32>
    %c0_93 = arith.constant 0 : index
    %c0_94 = arith.constant 0 : index
    %136 = vector.load %arg11[%c0_93, %c0_94] : memref<1x224xf32, #tpu.memory_space<vmem>>, vector<1x224xf32>
    %137 = vector.broadcast %136 : vector<1x224xf32> to vector<8x224xf32>
    %138 = arith.addf %135, %137 : vector<8x224xf32>
    %cst_95 = arith.constant 0.000000e+00 : f32
    %139 = vector.broadcast %cst_95 : f32 to vector<8x224xf32>
    %140 = arith.maximumf %138, %139 : vector<8x224xf32>
    %141 = tpu.concatenate %86, %95, %104, %113, %122, %131, %140 in 0 : vector<8x224xf32>, vector<8x224xf32>, vector<8x224xf32>, vector<8x224xf32>, vector<8x224xf32>, vector<8x224xf32>, vector<8x224xf32> -> vector<56x224xf32>
    %142 = vector.extract_strided_slice %141 {offsets = [8, 0], sizes = [48, 224], strides = [1, 1]} : vector<56x224xf32> to vector<48x224xf32>
    %143 = tpu.concatenate %142, %0 in 0 : vector<48x224xf32>, vector<8x224xf32> -> vector<56x224xf32>
    %c1_96 = arith.constant 1 : index
    %c0_97 = arith.constant 0 : index
    %c0_98 = arith.constant 0 : index
    %c0_99 = arith.constant 0 : index
    %144 = vector.load %arg6[%c1_96, %c0_97, %c0_98, %c0_99] : memref<3x2x224x112xbf16, #tpu.memory_space<vmem>>, vector<1x1x224x112xbf16>
    %145 = vector.shape_cast %144 : vector<1x1x224x112xbf16> to vector<224x112xbf16>
    %146 = arith.truncf %141 : vector<56x224xf32> to vector<56x224xbf16>
    %cst_100 = arith.constant dense<0.000000e+00> : vector<56x112xf32>
    %147 = tpu.matmul %146, %145, %cst_100 {dimension_numbers = #tpu.dot_dimension_numbers<[1], [0], [0], [1], [0, 0, 1, 1], [], []>} : vector<56x224xbf16>, vector<224x112xbf16>, vector<56x112xf32> -> vector<56x112xf32>
    %c0_101 = arith.constant 0 : index
    %c0_102 = arith.constant 0 : index
    %148 = vector.load %arg12[%c0_101, %c0_102] : memref<1x112xf32, #tpu.memory_space<vmem>>, vector<1x112xf32>
    %149 = vector.broadcast %148 : vector<1x112xf32> to vector<56x112xf32>
    %150 = arith.addf %147, %149 : vector<56x112xf32>
    %cst_103 = arith.constant 0.000000e+00 : f32
    %151 = vector.broadcast %cst_103 : f32 to vector<56x112xf32>
    %152 = arith.maximumf %150, %151 : vector<56x112xf32>
    %c0_104 = arith.constant 0 : index
    %c0_105 = arith.constant 0 : index
    %c0_106 = arith.constant 0 : index
    %c0_107 = arith.constant 0 : index
    %153 = vector.load %arg6[%c0_104, %c0_105, %c0_106, %c0_107] : memref<3x2x224x112xbf16, #tpu.memory_space<vmem>>, vector<1x1x224x112xbf16>
    %154 = vector.shape_cast %153 : vector<1x1x224x112xbf16> to vector<224x112xbf16>
    %155 = arith.truncf %143 : vector<56x224xf32> to vector<56x224xbf16>
    %cst_108 = arith.constant dense<0.000000e+00> : vector<56x112xf32>
    %156 = tpu.matmul %155, %154, %cst_108 {dimension_numbers = #tpu.dot_dimension_numbers<[1], [0], [0], [1], [0, 0, 1, 1], [], []>} : vector<56x224xbf16>, vector<224x112xbf16>, vector<56x112xf32> -> vector<56x112xf32>
    %c2_109 = arith.constant 2 : index
    %c0_110 = arith.constant 0 : index
    %c0_111 = arith.constant 0 : index
    %c0_112 = arith.constant 0 : index
    %157 = vector.load %arg6[%c2_109, %c0_110, %c0_111, %c0_112] : memref<3x2x224x112xbf16, #tpu.memory_space<vmem>>, vector<1x1x224x112xbf16>
    %158 = vector.shape_cast %157 : vector<1x1x224x112xbf16> to vector<224x112xbf16>
    %159 = arith.truncf %141 : vector<56x224xf32> to vector<56x224xbf16>
    %cst_113 = arith.constant dense<0.000000e+00> : vector<56x112xf32>
    %160 = tpu.matmul %159, %158, %cst_113 {dimension_numbers = #tpu.dot_dimension_numbers<[1], [0], [0], [1], [0, 0, 1, 1], [], []>} : vector<56x224xbf16>, vector<224x112xbf16>, vector<56x112xf32> -> vector<56x112xf32>
    %161 = arith.addf %156, %160 : vector<56x112xf32>
    %c0_114 = arith.constant 0 : index
    %c0_115 = arith.constant 0 : index
    %162 = vector.load %arg12[%c0_114, %c0_115] : memref<1x112xf32, #tpu.memory_space<vmem>>, vector<1x112xf32>
    %163 = vector.broadcast %162 : vector<1x112xf32> to vector<56x112xf32>
    %164 = arith.addf %161, %163 : vector<56x112xf32>
    %cst_116 = arith.constant 0.000000e+00 : f32
    %165 = vector.broadcast %cst_116 : f32 to vector<56x112xf32>
    %166 = arith.maximumf %164, %165 : vector<56x112xf32>
    %167 = vector.extract_strided_slice %152 {offsets = [8, 0], sizes = [48, 112], strides = [1, 1]} : vector<56x112xf32> to vector<48x112xf32>
    %168 = tpu.concatenate %167, %1 in 0 : vector<48x112xf32>, vector<8x112xf32> -> vector<56x112xf32>
    %c1_117 = arith.constant 1 : index
    %c1_118 = arith.constant 1 : index
    %c0_119 = arith.constant 0 : index
    %c0_120 = arith.constant 0 : index
    %169 = vector.load %arg6[%c1_117, %c1_118, %c0_119, %c0_120] : memref<3x2x224x112xbf16, #tpu.memory_space<vmem>>, vector<1x1x224x112xbf16>
    %170 = vector.shape_cast %169 : vector<1x1x224x112xbf16> to vector<224x112xbf16>
    %171 = arith.truncf %141 : vector<56x224xf32> to vector<56x224xbf16>
    %cst_121 = arith.constant dense<0.000000e+00> : vector<56x112xf32>
    %172 = tpu.matmul %171, %170, %cst_121 {dimension_numbers = #tpu.dot_dimension_numbers<[1], [0], [0], [1], [0, 0, 1, 1], [], []>} : vector<56x224xbf16>, vector<224x112xbf16>, vector<56x112xf32> -> vector<56x112xf32>
    %c0_122 = arith.constant 0 : index
    %c0_123 = arith.constant 0 : index
    %173 = vector.load %arg12[%c0_122, %c0_123] : memref<1x112xf32, #tpu.memory_space<vmem>>, vector<1x112xf32>
    %174 = vector.broadcast %173 : vector<1x112xf32> to vector<56x112xf32>
    %175 = arith.addf %172, %174 : vector<56x112xf32>
    %cst_124 = arith.constant 0.000000e+00 : f32
    %176 = vector.broadcast %cst_124 : f32 to vector<56x112xf32>
    %177 = arith.maximumf %175, %176 : vector<56x112xf32>
    %c0_125 = arith.constant 0 : index
    %c1_126 = arith.constant 1 : index
    %c0_127 = arith.constant 0 : index
    %c0_128 = arith.constant 0 : index
    %178 = vector.load %arg6[%c0_125, %c1_126, %c0_127, %c0_128] : memref<3x2x224x112xbf16, #tpu.memory_space<vmem>>, vector<1x1x224x112xbf16>
    %179 = vector.shape_cast %178 : vector<1x1x224x112xbf16> to vector<224x112xbf16>
    %180 = arith.truncf %143 : vector<56x224xf32> to vector<56x224xbf16>
    %cst_129 = arith.constant dense<0.000000e+00> : vector<56x112xf32>
    %181 = tpu.matmul %180, %179, %cst_129 {dimension_numbers = #tpu.dot_dimension_numbers<[1], [0], [0], [1], [0, 0, 1, 1], [], []>} : vector<56x224xbf16>, vector<224x112xbf16>, vector<56x112xf32> -> vector<56x112xf32>
    %c2_130 = arith.constant 2 : index
    %c1_131 = arith.constant 1 : index
    %c0_132 = arith.constant 0 : index
    %c0_133 = arith.constant 0 : index
    %182 = vector.load %arg6[%c2_130, %c1_131, %c0_132, %c0_133] : memref<3x2x224x112xbf16, #tpu.memory_space<vmem>>, vector<1x1x224x112xbf16>
    %183 = vector.shape_cast %182 : vector<1x1x224x112xbf16> to vector<224x112xbf16>
    %184 = arith.truncf %141 : vector<56x224xf32> to vector<56x224xbf16>
    %cst_134 = arith.constant dense<0.000000e+00> : vector<56x112xf32>
    %185 = tpu.matmul %184, %183, %cst_134 {dimension_numbers = #tpu.dot_dimension_numbers<[1], [0], [0], [1], [0, 0, 1, 1], [], []>} : vector<56x224xbf16>, vector<224x112xbf16>, vector<56x112xf32> -> vector<56x112xf32>
    %186 = arith.addf %181, %185 : vector<56x112xf32>
    %c0_135 = arith.constant 0 : index
    %c0_136 = arith.constant 0 : index
    %187 = vector.load %arg12[%c0_135, %c0_136] : memref<1x112xf32, #tpu.memory_space<vmem>>, vector<1x112xf32>
    %188 = vector.broadcast %187 : vector<1x112xf32> to vector<56x112xf32>
    %189 = arith.addf %186, %188 : vector<56x112xf32>
    %cst_137 = arith.constant 0.000000e+00 : f32
    %190 = vector.broadcast %cst_137 : f32 to vector<56x112xf32>
    %191 = arith.maximumf %189, %190 : vector<56x112xf32>
    %192 = vector.extract_strided_slice %177 {offsets = [8, 0], sizes = [48, 112], strides = [1, 1]} : vector<56x112xf32> to vector<48x112xf32>
    %193 = tpu.concatenate %192, %1 in 0 : vector<48x112xf32>, vector<8x112xf32> -> vector<56x112xf32>
    %c0_138 = arith.constant 0 : index
    %c0_139 = arith.constant 0 : index
    %194 = vector.load %arg13[%c0_138, %c0_139] : memref<1x128xf32, #tpu.memory_space<vmem>>, vector<1x128xf32>
    %c0_140 = arith.constant 0 : index
    %c0_141 = arith.constant 0 : index
    %c0_142 = arith.constant 0 : index
    %195 = vector.load %arg7[%c0_140, %c0_141, %c0_142] : memref<6x112x128xbf16, #tpu.memory_space<vmem>>, vector<1x112x128xbf16>
    %196 = vector.shape_cast %195 : vector<1x112x128xbf16> to vector<112x128xbf16>
    %197 = arith.truncf %152 : vector<56x112xf32> to vector<56x112xbf16>
    %cst_143 = arith.constant dense<0.000000e+00> : vector<56x128xf32>
    %198 = tpu.matmul %197, %196, %cst_143 {dimension_numbers = #tpu.dot_dimension_numbers<[1], [0], [0], [1], [0, 0, 1, 1], [], []>} : vector<56x112xbf16>, vector<112x128xbf16>, vector<56x128xf32> -> vector<56x128xf32>
    %199 = vector.broadcast %194 : vector<1x128xf32> to vector<56x128xf32>
    %200 = arith.addf %199, %198 : vector<56x128xf32>
    %c1_144 = arith.constant 1 : index
    %c0_145 = arith.constant 0 : index
    %c0_146 = arith.constant 0 : index
    %201 = vector.load %arg7[%c1_144, %c0_145, %c0_146] : memref<6x112x128xbf16, #tpu.memory_space<vmem>>, vector<1x112x128xbf16>
    %202 = vector.shape_cast %201 : vector<1x112x128xbf16> to vector<112x128xbf16>
    %203 = arith.truncf %177 : vector<56x112xf32> to vector<56x112xbf16>
    %cst_147 = arith.constant dense<0.000000e+00> : vector<56x128xf32>
    %204 = tpu.matmul %203, %202, %cst_147 {dimension_numbers = #tpu.dot_dimension_numbers<[1], [0], [0], [1], [0, 0, 1, 1], [], []>} : vector<56x112xbf16>, vector<112x128xbf16>, vector<56x128xf32> -> vector<56x128xf32>
    %205 = arith.addf %200, %204 : vector<56x128xf32>
    %c2_148 = arith.constant 2 : index
    %c0_149 = arith.constant 0 : index
    %c0_150 = arith.constant 0 : index
    %206 = vector.load %arg7[%c2_148, %c0_149, %c0_150] : memref<6x112x128xbf16, #tpu.memory_space<vmem>>, vector<1x112x128xbf16>
    %207 = vector.shape_cast %206 : vector<1x112x128xbf16> to vector<112x128xbf16>
    %208 = arith.truncf %166 : vector<56x112xf32> to vector<56x112xbf16>
    %cst_151 = arith.constant dense<0.000000e+00> : vector<56x128xf32>
    %209 = tpu.matmul %208, %207, %cst_151 {dimension_numbers = #tpu.dot_dimension_numbers<[1], [0], [0], [1], [0, 0, 1, 1], [], []>} : vector<56x112xbf16>, vector<112x128xbf16>, vector<56x128xf32> -> vector<56x128xf32>
    %210 = arith.addf %205, %209 : vector<56x128xf32>
    %c3_152 = arith.constant 3 : index
    %c0_153 = arith.constant 0 : index
    %c0_154 = arith.constant 0 : index
    %211 = vector.load %arg7[%c3_152, %c0_153, %c0_154] : memref<6x112x128xbf16, #tpu.memory_space<vmem>>, vector<1x112x128xbf16>
    %212 = vector.shape_cast %211 : vector<1x112x128xbf16> to vector<112x128xbf16>
    %213 = arith.truncf %191 : vector<56x112xf32> to vector<56x112xbf16>
    %cst_155 = arith.constant dense<0.000000e+00> : vector<56x128xf32>
    %214 = tpu.matmul %213, %212, %cst_155 {dimension_numbers = #tpu.dot_dimension_numbers<[1], [0], [0], [1], [0, 0, 1, 1], [], []>} : vector<56x112xbf16>, vector<112x128xbf16>, vector<56x128xf32> -> vector<56x128xf32>
    %215 = arith.addf %210, %214 : vector<56x128xf32>
    %c4_156 = arith.constant 4 : index
    %c0_157 = arith.constant 0 : index
    %c0_158 = arith.constant 0 : index
    %216 = vector.load %arg7[%c4_156, %c0_157, %c0_158] : memref<6x112x128xbf16, #tpu.memory_space<vmem>>, vector<1x112x128xbf16>
    %217 = vector.shape_cast %216 : vector<1x112x128xbf16> to vector<112x128xbf16>
    %218 = arith.truncf %168 : vector<56x112xf32> to vector<56x112xbf16>
    %cst_159 = arith.constant dense<0.000000e+00> : vector<56x128xf32>
    %219 = tpu.matmul %218, %217, %cst_159 {dimension_numbers = #tpu.dot_dimension_numbers<[1], [0], [0], [1], [0, 0, 1, 1], [], []>} : vector<56x112xbf16>, vector<112x128xbf16>, vector<56x128xf32> -> vector<56x128xf32>
    %220 = arith.addf %215, %219 : vector<56x128xf32>
    %c5_160 = arith.constant 5 : index
    %c0_161 = arith.constant 0 : index
    %c0_162 = arith.constant 0 : index
    %221 = vector.load %arg7[%c5_160, %c0_161, %c0_162] : memref<6x112x128xbf16, #tpu.memory_space<vmem>>, vector<1x112x128xbf16>
    %222 = vector.shape_cast %221 : vector<1x112x128xbf16> to vector<112x128xbf16>
    %223 = arith.truncf %193 : vector<56x112xf32> to vector<56x112xbf16>
    %cst_163 = arith.constant dense<0.000000e+00> : vector<56x128xf32>
    %224 = tpu.matmul %223, %222, %cst_163 {dimension_numbers = #tpu.dot_dimension_numbers<[1], [0], [0], [1], [0, 0, 1, 1], [], []>} : vector<56x112xbf16>, vector<112x128xbf16>, vector<56x128xf32> -> vector<56x128xf32>
    %225 = arith.addf %220, %224 : vector<56x128xf32>
    %226 = arith.negf %225 : vector<56x128xf32>
    %227 = math.exp %226 : vector<56x128xf32>
    %cst_164 = arith.constant 1.000000e+00 : f32
    %228 = vector.broadcast %cst_164 : f32 to vector<56x128xf32>
    %229 = arith.addf %228, %227 : vector<56x128xf32>
    %230 = arith.divf %228, %229 : vector<56x128xf32>
    %c0_165 = arith.constant 0 : index
    %c0_166 = arith.constant 0 : index
    %231 = vector.load %arg14[%c0_165, %c0_166] : memref<56x128xf32, #tpu.memory_space<vmem>>, vector<56x128xf32>
    tpu.vector_store %arg14[%c0_165, %c0_166], %230 {strides = array<i32>} : memref<56x128xf32, #tpu.memory_space<vmem>>, vector<56x128xf32>,
    return
  }
  func.func @transform_0(%arg0: i32) -> (i32, i32) {
    %c0_i32 = arith.constant 0 : i32
    %c0_i32_0 = arith.constant 0 : i32
    return %arg0, %c0_i32 : i32, i32
  }
  func.func @transform_1(%arg0: i32) -> (i32, i32) {
    %c0_i32 = arith.constant 0 : i32
    %c0_i32_0 = arith.constant 0 : i32
    %c0_i32_1 = arith.constant 0 : i32
    return %c0_i32, %c0_i32_0 : i32, i32
  }
  func.func @transform_2(%arg0: i32) -> (i32, i32, i32) {
    %c0_i32 = arith.constant 0 : i32
    %c0_i32_0 = arith.constant 0 : i32
    %c0_i32_1 = arith.constant 0 : i32
    %c0_i32_2 = arith.constant 0 : i32
    return %c0_i32, %c0_i32_0, %c0_i32_1 : i32, i32, i32
  }
  func.func @transform_3(%arg0: i32) -> (i32, i32, i32) {
    %c0_i32 = arith.constant 0 : i32
    %c0_i32_0 = arith.constant 0 : i32
    %c0_i32_1 = arith.constant 0 : i32
    %c0_i32_2 = arith.constant 0 : i32
    return %c0_i32, %c0_i32_0, %c0_i32_1 : i32, i32, i32
  }
  func.func @transform_4(%arg0: i32) -> (i32, i32, i32) {
    %c0_i32 = arith.constant 0 : i32
    %c0_i32_0 = arith.constant 0 : i32
    %c0_i32_1 = arith.constant 0 : i32
    %c0_i32_2 = arith.constant 0 : i32
    return %c0_i32, %c0_i32_0, %c0_i32_1 : i32, i32, i32
  }
  func.func @transform_5(%arg0: i32) -> (i32, i32, i32, i32) {
    %c0_i32 = arith.constant 0 : i32
    %c0_i32_0 = arith.constant 0 : i32
    %c0_i32_1 = arith.constant 0 : i32
    %c0_i32_2 = arith.constant 0 : i32
    %c0_i32_3 = arith.constant 0 : i32
    return %c0_i32, %c0_i32_0, %c0_i32_1, %c0_i32_2 : i32, i32, i32, i32
  }
  func.func @transform_6(%arg0: i32) -> (i32, i32, i32) {
    %c0_i32 = arith.constant 0 : i32
    %c0_i32_0 = arith.constant 0 : i32
    %c0_i32_1 = arith.constant 0 : i32
    %c0_i32_2 = arith.constant 0 : i32
    return %c0_i32, %c0_i32_0, %c0_i32_1 : i32, i32, i32
  }
  func.func @transform_7(%arg0: i32) -> (i32, i32) {
    %c0_i32 = arith.constant 0 : i32
    %c0_i32_0 = arith.constant 0 : i32
    %c0_i32_1 = arith.constant 0 : i32
    return %c0_i32, %c0_i32_0 : i32, i32
  }
  func.func @transform_8(%arg0: i32) -> (i32, i32) {
    %c0_i32 = arith.constant 0 : i32
    %c0_i32_0 = arith.constant 0 : i32
    %c0_i32_1 = arith.constant 0 : i32
    return %c0_i32, %c0_i32_0 : i32, i32
  }
  func.func @transform_9(%arg0: i32) -> (i32, i32) {
    %c0_i32 = arith.constant 0 : i32
    %c0_i32_0 = arith.constant 0 : i32
    %c0_i32_1 = arith.constant 0 : i32
    return %c0_i32, %c0_i32_0 : i32, i32
  }
  func.func @transform_10(%arg0: i32) -> (i32, i32) {
    %c0_i32 = arith.constant 0 : i32
    %c0_i32_0 = arith.constant 0 : i32
    %c0_i32_1 = arith.constant 0 : i32
    return %c0_i32, %c0_i32_0 : i32, i32
  }
  func.func @transform_11(%arg0: i32) -> (i32, i32) {
    %c0_i32 = arith.constant 0 : i32
    %c0_i32_0 = arith.constant 0 : i32
    %c0_i32_1 = arith.constant 0 : i32
    return %c0_i32, %c0_i32_0 : i32, i32
  }
  func.func @transform_12(%arg0: i32) -> (i32, i32) {
    %c0_i32 = arith.constant 0 : i32
    %c0_i32_0 = arith.constant 0 : i32
    %c0_i32_1 = arith.constant 0 : i32
    return %c0_i32, %c0_i32_0 : i32, i32
  }
  func.func @transform_13(%arg0: i32) -> (i32, i32) {
    %c0_i32 = arith.constant 0 : i32
    %c0_i32_0 = arith.constant 0 : i32
    return %arg0, %c0_i32 : i32, i32
  }
}

</mosaic_0001>

<bundles_post_ra>
// kernel: cnn_autoencoder_fwd.1
= control target key start
LH: loop header
LB: loop body
LE: loop exit
PB: predicated region body
PF: predicated region fallthrough
CT: control target
= control target key end

     0   :  { %s7255_s25 = smov 0   ;;  %s8994_s0 = inlined_call_operand.vmem [shape: f32[224,84], index: 0, kind: input, shape index: {}]   ;;  %s8995_s1 = inlined_call_operand.vmem [shape: bf16[84,224], index: 1, kind: input, shape index: {}]   ;;  %s8996_s2 = inlined_call_operand.vmem [shape: bf16[3,224,224], index: 2, kind: input, shape index: {}]   ;;  %s8997_s3 = inlined_call_operand.vmem [shape: bf16[7,224,64], index: 3, kind: input, shape index: {}]   ;;  %s8998_s4 = inlined_call_operand.vmem [shape: bf16[7,64,224], index: 4, kind: input, shape index: {}]   ;;  %s8999_s5 = inlined_call_operand.vmem [shape: bf16[3,2,224,112], index: 5, kind: input, shape index: {}]   ;;  %s9000_s6 = inlined_call_operand.vmem [shape: bf16[6,112,128], index: 6, kind: input, shape index: {}]   ;;  %s9001_s7 = inlined_call_operand.vmem [shape: f32[1,224], index: 7, kind: input, shape index: {}]   ;;  %s9002_s8 = inlined_call_operand.vmem [shape: f32[1,224], index: 8, kind: input, shape index: {}]   ;;  %s9003_s9 = inlined_call_operand.vmem [shape: f32[1,64], index: 9, kind: input, shape index: {}]   ;;  %s9004_s10 = inlined_call_operand.vmem [shape: f32[1,224], index: 10, kind: input, shape index: {}]   ;;  %s9005_s11 = inlined_call_operand.vmem [shape: f32[1,112], index: 11, kind: input, shape index: {}]   ;;  %s9006_s12 = inlined_call_operand.vmem [shape: f32[1,128], index: 12, kind: input, shape index: {}]   ;;  %s9007_s13 = inlined_call_operand.vmem [shape: f32[112,128], index: 13, kind: output, shape index: {}]  }
   0x1 LB: > { %s5436_s26 = sadd.s32 4294967295, %s7180_s25   ;;  %p5440_p0 = scmp.ge.s32.totalorder %s7180_s25, 1  ;;  %s7180_s25 = sphi %s7255_s25, %s23_s25  }
   0x2   : > { %p388_p1 = scmp.lt.s32.totalorder %s7180_s25, 3 }
   0x4   : > { %p389_p2 = pnand %p5440_p0, %p388_p1 }
   0x5   : > { %v6695_v0 = vld [vmem:[%s8995_s1 + $0x4] ss:$8 sps:$4 sm:$0xff] (!%p389_p2)   ;;  %v6697_v1 = vld [vmem:[%s8995_s1] ss:$8 sps:$4 sm:$0xff] (!%p389_p2)   ;;  %v7182_v2 = vmov (!%p389_p2), 0   ;;  %s432_s14 = smul.u32 (!%p389_p2), 14, %s5436_s26 }
   0x6   : > { %392 = sbr.rel (%p389_p2) target bundleno = 2080 (0x820), region = 72  ;;  %605 = vmatprep.mubr.bf16.mxu0 (!%p389_p2), %v7182_v2  ;;  %573 = vmatprep.subr.bf16.mxu0 (!%p389_p2), %v6695_v0  ;;  %v6698_v3 = vld [vmem:[%s8995_s1 + $0x14] ss:$8 sps:$4 sm:$0xff] (!%p389_p2)   ;;  %v6700_v4 = vld [vmem:[%s8995_s1 + $0x10] ss:$8 sps:$4 sm:$0xff] (!%p389_p2)   ;;  %vm566_vm0 = vcmask (!%p389_p2), 1041408  }
   0x7   : > { %574 = vmatpush1.bf16.msra.mxu0 (!%p389_p2), %v6697_v1  ;;  %v6701_v5 = vld [vmem:[%s8995_s1 + $0x24] ss:$8 sps:$4 sm:$0xff] (!%p389_p2)   ;;  %p433_p3 = scmp.lt.s32.totalorder (!%p389_p2), %s432_s14, 27  ;;  %v6703_v6 = vld [vmem:[%s8995_s1 + $0x20] ss:$8 sps:$4 sm:$0xff] (!%p389_p2)   ;;  %vm544_vm1 = vcmask (!%p389_p2), 687104  }
   0x8   : > { %575 = vmatprep.subr.bf16.mxu0 (!%p389_p2), %v6698_v3  ;;  %v6704_v7 = vld [vmem:[%s8995_s1 + $0x34] ss:$8 sps:$4 sm:$0xff] (!%p389_p2)   ;;  %v6706_v8 = vld [vmem:[%s8995_s1 + $0x30] ss:$8 sps:$4 sm:$0xff] (!%p389_p2)   ;;  %v6707_v9 = vld [vmem:[%s8995_s1 + $0x44] ss:$8 sps:$4 sm:$0xff] (!%p389_p2)  }
   0x9   : > { %v469_v10 = vld [vmem:[%s8995_s1 + $0x50] sm:$0x33] (!%p389_p2)  ;;  %v6709_v11 = vld [vmem:[%s8995_s1 + $0x40] ss:$8 sps:$4 sm:$0xff] (!%p389_p2)   ;;  %v6714_v14 = vld [vmem:[%s8996_s2 + $0xe4] ss:$8 sps:$4 sm:$0xff] (!%p389_p2)  }
   0xa   : > { %v5454_v12 = vcombine.high (!%p389_p2), %v469_v10, %v469_v10  ;;  %v5453_v13 = vcombine.low (!%p389_p2), %v469_v10, %v469_v10  ;;  %v6730_v18 = vld [vmem:[%s8996_s2 + $0x4] ss:$8 sps:$4 sm:$0xff] (!%p389_p2)   ;;  %v6712_v19 = vld [vmem:[%s8996_s2 + $0xe0] ss:$8 sps:$4 sm:$0xff] (!%p389_p2)   ;;  %v6736_v22 = vld [vmem:[%s8996_s2 + $0x14] ss:$8 sps:$4 sm:$0xff] (!%p389_p2)  }
   0xb   : > { %576 = vmatpush1.bf16.msra.mxu0 (!%p389_p2), %v6700_v4  ;;  %1153 = vmatprep.subr.bf16.mxu1 (!%p389_p2), %v6730_v18  ;;  %v6735_v21 = vld [vmem:[%s8996_s2] ss:$8 sps:$4 sm:$0xff] (!%p389_p2)   ;;  %v6717_v23 = vld [vmem:[%s8996_s2 + $0xf4] ss:$8 sps:$4 sm:$0xff] (!%p389_p2)   ;;  %v6741_v24 = vld [vmem:[%s8996_s2 + $0x10] ss:$8 sps:$4 sm:$0xff] (!%p389_p2)  }
   0xc   : > { %577 = vmatprep.subr.bf16.mxu0 (!%p389_p2), %v6701_v5  ;;  %v568_v17 = vsel (!%p389_p2), %vm566_vm0, %v5453_v13, 0  ;;  %1154 = vmatpush1.bf16.msra.mxu1 (!%p389_p2), %v6735_v21  ;;  %v6742_v26 = vld [vmem:[%s8996_s2 + $0x24] ss:$8 sps:$4 sm:$0xff] (!%p389_p2)   ;;  %v6715_v28 = vld [vmem:[%s8996_s2 + $0xf0] ss:$8 sps:$4 sm:$0xff] (!%p389_p2)   ;;  %vm917_vm2 = vcmask (!%p389_p2), 785408  }
   0xd   : > { %s9009_s14 = smov (!%p433_p3, %s432_s14), 27  ;;  %1155 = vmatprep.subr.bf16.mxu1 %v6736_v22  ;;  %v6720_v29 = vld [vmem:[%s8996_s2 + $0x104] ss:$8 sps:$4 sm:$0xff]   ;;  %v6747_v30 = vld [vmem:[%s8996_s2 + $0x20] ss:$8 sps:$4 sm:$0xff]   ;;  %vm2718_vm3 = vcmask 523264  }
   0xe   : > { %s5441_s17 = sshll.u32 %s9009_s14, 3  ;;  %v6748_v31 = vld [vmem:[%s8996_s2 + $0x34] ss:$8 sps:$4 sm:$0xff]   ;;  %v6718_v33 = vld [vmem:[%s8996_s2 + $0x100] ss:$8 sps:$4 sm:$0xff]   ;;  %vm4527_vm4 = vcmask 916480  }
   0xf   : > { %578 = vmatpush1.bf16.msra.mxu0 %v6703_v6  ;;  %s7302_s22 = scalar_lea.vmem %s8994_s0, %s5441_s17  ;;  %v6723_v34 = vld [vmem:[%s8996_s2 + $0x114] ss:$8 sps:$4 sm:$0xff]   ;;  %v6753_v35 = vld [vmem:[%s8996_s2 + $0x30] ss:$8 sps:$4 sm:$0xff]   ;;  %v6754_v38 = vld [vmem:[%s8996_s2 + $0x44] ss:$8 sps:$4 sm:$0xff]  }
  0x10   : > { %579 = vmatprep.subr.bf16.mxu0 %v6704_v7  ;;  %v445_v15 = vld [vmem:[%s7302_s22] sm:$0xff]  ;;  %v446_v16 = vld [vmem:[%s7302_s22 + $0x8] sm:$0xff]  ;;  %v447_v25 = vld [vmem:[%s7302_s22 + $0x10] sm:$0xff]  ;;  %1156 = vmatpush1.bf16.msra.mxu1 %v6741_v24  ;;  %s438_s17 = smul.u32 7, %s5436_s26 }
  0x11   : > { %v470_v20 = vpack.c.bf16 %v446_v16, %v445_v15  ;;  %v448_v27 = vld [vmem:[%s7302_s22 + $0x18] sm:$0xff]  ;;  %1157 = vmatprep.subr.bf16.mxu1 %v6742_v26  ;;  %v449_v36 = vld [vmem:[%s7302_s22 + $0x20] sm:$0xff]  ;;  %v450_v37 = vld [vmem:[%s7302_s22 + $0x28] sm:$0xff] }
  0x12   : > { %v471_v32 = vpack.c.bf16 %v448_v27, %v447_v25  ;;  %v6721_v39 = vld [vmem:[%s8996_s2 + $0x110] ss:$8 sps:$4 sm:$0xff]   ;;  %v6726_v40 = vld [vmem:[%s8996_s2 + $0x124] ss:$8 sps:$4 sm:$0xff]   ;;  %v6759_v41 = vld [vmem:[%s8996_s2 + $0x40] ss:$8 sps:$4 sm:$0xff]   ;;  %v472_v44 = vpack.c.bf16 %v450_v37, %v449_v36 }
  0x13   : > { %580 = vmatpush1.bf16.msra.mxu0 %v6706_v8  ;;  %v6760_v42 = vld [vmem:[%s8996_s2 + $0x54] ss:$8 sps:$4 sm:$0xff]   ;;  %v6724_v43 = vld [vmem:[%s8996_s2 + $0x120] ss:$8 sps:$4 sm:$0xff]   ;;  %v6765_v46 = vld [vmem:[%s8996_s2 + $0x50] ss:$8 sps:$4 sm:$0xff]  }
  0x14   : > { %581 = vmatprep.subr.bf16.mxu0 %v6707_v9  ;;  %1158 = vmatpush1.bf16.msra.mxu1 %v6747_v30  ;;  %v6729_v45 = vld [vmem:[%s8996_s2 + $0x134] ss:$8 sps:$4 sm:$0xff]   ;;  %v6727_v49 = vld [vmem:[%s8996_s2 + $0x130] ss:$8 sps:$4 sm:$0xff]   ;;  %v6734_v50 = vld [vmem:[%s8996_s2 + $0x144] ss:$8 sps:$4 sm:$0xff]   ;;  %v479_v30 = vlaneseq }
  0x15   : > { %1159 = vmatprep.subr.bf16.mxu1 %v6748_v31  ;;  %v451_v47 = vld [vmem:[%s7302_s22 + $0x30] sm:$0xff]  ;;  %v452_v48 = vld [vmem:[%s7302_s22 + $0x38] sm:$0xff]  ;;  %v6732_v51 = vld [vmem:[%s8996_s2 + $0x140] ss:$8 sps:$4 sm:$0xff]   ;;  %p439_p4 = scmp.lt.s32.totalorder %s438_s17, 13 }
  0x16   : > { %v473_v52 = vpack.c.bf16 %v452_v48, %v451_v47  ;;  %v6740_v53 = vld [vmem:[%s8996_s2 + $0x154] ss:$8 sps:$4 sm:$0xff]   ;;  %v453_v54 = vld [vmem:[%s7302_s22 + $0x40] sm:$0xff]  ;;  %v454_v55 = vld [vmem:[%s7302_s22 + $0x48] sm:$0xff]  ;;  %v480_v31 = vshrl.u32 %v479_v30, 7  ;;  %v7183_v30 = vmov 0.0  }
  0x17   : > { %582 = vmatpush1.bf16.msra.mxu0 %v6709_v11  ;;  %v6738_v56 = vld [vmem:[%s8996_s2 + $0x150] ss:$8 sps:$4 sm:$0xff]   ;;  %v6746_v57 = vld [vmem:[%s8996_s2 + $0x164] ss:$8 sps:$4 sm:$0xff]   ;;  %v6744_v58 = vld [vmem:[%s8996_s2 + $0x160] ss:$8 sps:$4 sm:$0xff]   ;;  %v474_v59 = vpack.c.bf16 %v454_v55, %v453_v54 }
  0x18   : > { %5455 = vmatprep.subr.msk.bf16.mxu0 %vm566_vm0, %v5454_v12  ;;  %1160 = vmatpush1.bf16.msra.mxu1 %v6753_v35  ;;  %v6752_v60 = vld [vmem:[%s8996_s2 + $0x174] ss:$8 sps:$4 sm:$0xff]   ;;  %v6750_v63 = vld [vmem:[%s8996_s2 + $0x170] ss:$8 sps:$4 sm:$0xff]   ;;  %v6758_v0 = vld [vmem:[%s8996_s2 + $0x184] ss:$8 sps:$4 sm:$0xff]  }
  0x19   : > { %1161 = vmatprep.subr.bf16.mxu1 %v6754_v38  ;;  %v455_v61 = vld [vmem:[%s7302_s22 + $0x50] sm:$0xff]  ;;  %v456_v62 = vld [vmem:[%s7302_s22 + $0x58] sm:$0xff]  ;;  %v6756_v1 = vld [vmem:[%s8996_s2 + $0x180] ss:$8 sps:$4 sm:$0xff]   ;;  %s9011_s17 = smov (!%p439_p4, %s438_s17), 13 }
  0x1a   : > { %v475_v3 = vpack.c.bf16 %v456_v62, %v455_v61  ;;  %v6764_v4 = vld [vmem:[%s8996_s2 + $0x194] ss:$8 sps:$4 sm:$0xff]   ;;  %v457_v5 = vld [vmem:[%s7302_s22 + $0x60] sm:$0xff]  ;;  %v458_v6 = vld [vmem:[%s7302_s22 + $0x68] sm:$0xff]  ;;  %s5442_s26 = sshll.u32 %s9011_s17, 3 }
  0x1b   : > { %584 = vmatpush1.bf16.msra.mxu0 %v568_v17  ;;  %v6762_v7 = vld [vmem:[%s8996_s2 + $0x190] ss:$8 sps:$4 sm:$0xff]   ;;  %v476_v8 = vpack.c.bf16 %v458_v6, %v457_v5  ;;  %v6766_v9 = vld [vmem:[%s8996_s2 + $0x64] ss:$8 sps:$4 sm:$0xff]   ;;  %v6771_v11 = vld [vmem:[%s8996_s2 + $0x60] ss:$8 sps:$4 sm:$0xff]   ;;  %s442_s20 = scalar_lea.vmem %s9007_s13, %s5442_s26 }
  0x1c   : > { %930 = vmatprep.subr.bf16.mxu0 %v6714_v14  ;;  %1162 = vmatpush1.bf16.msra.mxu1 %v6759_v41  ;;  %v6770_v10 = vld [vmem:[%s8996_s2 + $0x1a4] ss:$8 sps:$4 sm:$0xff]   ;;  %v6768_v12 = vld [vmem:[%s8996_s2 + $0x1a0] ss:$8 sps:$4 sm:$0xff]   ;;  %v6772_v13 = vld [vmem:[%s8996_s2 + $0x74] ss:$8 sps:$4 sm:$0xff]  }
  0x1d   : > { %1163 = vmatprep.subr.bf16.mxu1 %v6760_v42  ;;  %v6776_v14 = vld [vmem:[%s8996_s2 + $0x1b4] ss:$8 sps:$4 sm:$0xff]   ;;  %v6777_v15 = vld [vmem:[%s8996_s2 + $0x70] ss:$8 sps:$4 sm:$0xff]   ;;  %v6778_v17 = vld [vmem:[%s8996_s2 + $0x84] ss:$8 sps:$4 sm:$0xff]  }
  0x1e   : > { %5456 = vmatmul.mubr.msk.bf16.vlgmr.msra.gmra.mrb[0].mxu0 %vm544_vm1, %v470_v20  ;;  %v6774_v16 = vld [vmem:[%s8996_s2 + $0x1b0] ss:$8 sps:$4 sm:$0xff]   ;;  %v6780_v18 = vld [vmem:[%s8996_s2 + $0x80] ss:$8 sps:$4 sm:$0xff]   ;;  %v6784_v21 = vld [vmem:[%s8996_s2 + $0xa4] ss:$8 sps:$4 sm:$0xff]  }
  0x1f   : > { %615 = vmatprep.mubr.bf16.mxu0 %v7182_v2  ;;  %931 = vmatpush1.bf16.msra.mxu0 %v6712_v19  ;;  %v6781_v19 = vld [vmem:[%s8996_s2 + $0x94] ss:$8 sps:$4 sm:$0xff]   ;;  %v6783_v20 = vld [vmem:[%s8996_s2 + $0x90] ss:$8 sps:$4 sm:$0xff]   ;;  %v6786_v22 = vld [vmem:[%s8996_s2 + $0xa0] ss:$8 sps:$4 sm:$0xff]  }
  0x20   : > { %932 = vmatprep.subr.bf16.mxu0 %v6717_v23  ;;  %1164 = vmatpush1.bf16.msra.mxu1 %v6765_v46  ;;  %v6787_v23 = vld [vmem:[%s8996_s2 + $0xb4] ss:$8 sps:$4 sm:$0xff]   ;;  %v6789_v24 = vld [vmem:[%s8996_s2 + $0xb0] ss:$8 sps:$4 sm:$0xff]   ;;  %v6790_v25 = vld [vmem:[%s8996_s2 + $0xc4] ss:$8 sps:$4 sm:$0xff]  }
  0x21   : > { %1165 = vmatprep.subr.bf16.mxu1 %v6766_v9  ;;  %v6792_v26 = vld [vmem:[%s8996_s2 + $0xc0] ss:$8 sps:$4 sm:$0xff]   ;;  %v6793_v27 = vld [vmem:[%s8996_s2 + $0xd4] ss:$8 sps:$4 sm:$0xff]  }
  0x23   : > { %933 = vmatpush1.bf16.msra.mxu0 %v6715_v28  ;;  %v6795_v28 = vld [vmem:[%s8996_s2 + $0xd0] ss:$8 sps:$4 sm:$0xff]  }
  0x24   : > { %934 = vmatprep.subr.bf16.mxu0 %v6720_v29  ;;  %1166 = vmatpush1.bf16.msra.mxu1 %v6771_v11  ;;  %v6798_v29 = vld [vmem:[%s8996_s2 + $0x1c4] ss:$8 sps:$4 sm:$0xff]  }
  0x25   : > { %1167 = vmatprep.subr.bf16.mxu1 %v6772_v13 }
  0x26   : > { %5457 = vmatmul.mubr.msk.bf16.gmra.mrb[4].mxu0 %vm544_vm1, %v471_v32  ;;  %v7503_v32 = vsub.s32 0, %v480_v31 }
  0x27   : > { %625 = vmatprep.mubr.bf16.mxu0 %v7182_v2  ;;  %935 = vmatpush1.bf16.msra.mxu0 %v6718_v33  ;;  %v7505_v33 = vsub.s32 1, %v480_v31 }
  0x28   : > { %936 = vmatprep.subr.bf16.mxu0 %v6723_v34  ;;  %1168 = vmatpush1.bf16.msra.mxu1 %v6777_v15  ;;  %v477_v34 = vld [vmem:[%s9001_s7] sm:$0x3] }
  0x29   : > { %1169 = vmatprep.subr.bf16.mxu1 %v6778_v17  ;;  %v7511_v35 = vrot.slane %v477_v34, %v7503_v32  ;;  %v7514_v36 = vrot.slane %v477_v34, %v7505_v33  ;;  %v6796_v34 = vld [vmem:[%s8996_s2 + $0x1c0] ss:$8 sps:$4 sm:$0xff]  }
  0x2b   : > { %937 = vmatpush1.bf16.msra.mxu0 %v6721_v39 }
  0x2c   : > { %938 = vmatprep.subr.bf16.mxu0 %v6726_v40  ;;  %1170 = vmatpush1.bf16.msra.mxu1 %v6780_v18 }
  0x2d   : > { %1171 = vmatprep.subr.bf16.mxu1 %v6781_v19 }
  0x2e   : > { %5458 = vmatmul.mubr.msk.bf16.gmra.mrb[8].mxu0 %vm544_vm1, %v472_v44 }
  0x2f   : > { %635 = vmatprep.mubr.bf16.mxu0 %v7182_v2  ;;  %939 = vmatpush1.bf16.msra.mxu0 %v6724_v43 }
  0x30   : > { %940 = vmatprep.subr.bf16.mxu0 %v6729_v45  ;;  %1172 = vmatpush1.bf16.msra.mxu1 %v6783_v20 }
  0x31   : > { %1173 = vmatprep.subr.bf16.mxu1 %v6784_v21 }
  0x33   : > { %941 = vmatpush1.bf16.msra.mxu0 %v6727_v49 }
  0x34   : > { %942 = vmatprep.subr.bf16.mxu0 %v6734_v50  ;;  %1174 = vmatpush1.bf16.msra.mxu1 %v6786_v22 }
  0x35   : > { %1175 = vmatprep.subr.bf16.mxu1 %v6787_v23 }
  0x36   : > { %5459 = vmatmul.mubr.msk.bf16.gmra.mrb[12].mxu0 %vm544_vm1, %v473_v52 }
  0x37   : > { %645 = vmatprep.mubr.bf16.mxu0 %v7182_v2  ;;  %943 = vmatpush1.bf16.msra.mxu0 %v6732_v51 }
  0x38   : > { %944 = vmatprep.subr.bf16.mxu0 %v6740_v53  ;;  %1176 = vmatpush1.bf16.msra.mxu1 %v6789_v24 }
  0x39   : > { %1177 = vmatprep.subr.bf16.mxu1 %v6790_v25 }
  0x3b   : > { %945 = vmatpush1.bf16.msra.mxu0 %v6738_v56 }
  0x3c   : > { %946 = vmatprep.subr.bf16.mxu0 %v6746_v57  ;;  %1178 = vmatpush1.bf16.msra.mxu1 %v6792_v26 }
  0x3d   : > { %1179 = vmatprep.subr.bf16.mxu1 %v6793_v27 }
  0x3e   : > { %5460 = vmatmul.mubr.msk.bf16.gmra.mrb[16].mxu0 %vm544_vm1, %v474_v59 }
  0x3f   : > { %655 = vmatprep.mubr.bf16.mxu0 %v7182_v2  ;;  %947 = vmatpush1.bf16.msra.mxu0 %v6744_v58 }
  0x40   : > { %948 = vmatprep.subr.bf16.mxu0 %v6752_v60  ;;  %1180 = vmatpush1.bf16.msra.mxu1 %v6795_v28 }
  0x41   : > { %1413 = vmatprep.subr.bf16.mxu1 %v6798_v29 }
  0x43   : > { %949 = vmatpush1.bf16.msra.mxu0 %v6750_v63 }
  0x44   : > { %950 = vmatprep.subr.bf16.mxu0 %v6758_v0 }
  0x46   : > { %5461 = vmatmul.mubr.msk.bf16.gmra.mrb[20].mxu0 %vm544_vm1, %v475_v3 }
  0x47   : > { %665 = vmatprep.mubr.bf16.mxu0 %v7182_v2  ;;  %951 = vmatpush1.bf16.msra.mxu0 %v6756_v1 }
  0x48   : > { %952 = vmatprep.subr.bf16.mxu0 %v6764_v4 }
  0x4b   : > { %953 = vmatpush1.bf16.msra.mxu0 %v6762_v7 }
  0x4c   : > { %954 = vmatprep.subr.bf16.mxu0 %v6770_v10 }
  0x4e   : > { %5462 = vmatmul.mubr.msk.bf16.gmra.mrb[24].mxu0 %vm544_vm1, %v476_v8 }
  0x4f   : > { %955 = vmatpush1.bf16.msra.mxu0 %v6768_v12 }
  0x50   : > { %956 = vmatprep.subr.bf16.mxu0 %v6776_v14 }
  0x53   : > { %957 = vmatpush1.bf16.msra.mxu0 %v6774_v16 }
  0x54   : > { %1656 = vmatprep.subr.bf16.mxu0 %v7182_v2 }
  0xf1   : > { %v607_v37 = vpop.f32.mrb[0].mxu0 }
  0xf2   : > { %v608_v38 = vadd.f32 %v607_v37, %v7511_v35  ;;  %v609_v39 = vpop.f32.mrb[1].mxu0 }
  0xf3   : > { %v610_v40 = vadd.f32 %v609_v39, %v7514_v36  ;;  %v611_v41 = vpop.f32.mrb[2].mxu0 }
  0xf4   : > { %v612_v42 = vadd.f32 %v611_v41, %v7511_v35  ;;  %v613_v43 = vpop.f32.mrb[3].mxu0  ;;  %v676_v45 = vmax.f32 %v608_v38, 0.0  ;;  %v6801_v41 = vld [vmem:[%s8996_s2 + $0x1d4] ss:$8 sps:$4 sm:$0xff]  }
  0xf5   : > { %v614_v44 = vadd.f32 %v613_v43, %v7514_v36  ;;  %v677_v47 = vmax.f32 %v610_v40, 0.0 }
  0xf6   : > { %v678_v46 = vmax.f32 %v612_v42, 0.0 }
  0xf7   : > { %v679_v48 = vmax.f32 %v614_v44, 0.0 }
  0xf8   : > { %v769_v49 = vpack.c.bf16 %v678_v46, %v676_v45 }
  0xf9   : > { %v770_v50 = vpack.c.bf16 %v679_v48, %v677_v47  ;;  %v617_v51 = vpop.f32.mrb[4].mxu0 }
  0xfa   : > { %v618_v52 = vadd.f32 %v617_v51, %v7511_v35  ;;  %v619_v53 = vpop.f32.mrb[5].mxu0 }
  0xfb   : > { %v620_v54 = vadd.f32 %v619_v53, %v7514_v36  ;;  %v621_v55 = vpop.f32.mrb[6].mxu0  ;;  %5519 = vmatprep.mubr.msk.bf16.mxu0 %vm917_vm2, %v770_v50 }
  0xfc   : > { %v622_v56 = vadd.f32 %v621_v55, %v7511_v35  ;;  %v623_v57 = vpop.f32.mrb[7].mxu0  ;;  %963 = vmatmul.mubr.bf16.vlgmr.msra.gmra.mrb[28].mxu0 %v769_v49  ;;  %v680_v59 = vmax.f32 %v618_v52, 0.0  ;;  %v6799_v49 = vld [vmem:[%s8996_s2 + $0x1d0] ss:$8 sps:$4 sm:$0xff]   ;;  %v6804_v52 = vld [vmem:[%s8996_s2 + $0x1e4] ss:$8 sps:$4 sm:$0xff]  }
  0xfd   : > { %v624_v58 = vadd.f32 %v623_v57, %v7514_v36  ;;  %v681_v61 = vmax.f32 %v620_v54, 0.0 }
  0xfe   : > { %v682_v60 = vmax.f32 %v622_v56, 0.0 }
  0xff   : > { %v683_v62 = vmax.f32 %v624_v58, 0.0  ;;  %v6802_v58 = vld [vmem:[%s8996_s2 + $0x1e0] ss:$8 sps:$4 sm:$0xff]  }
 0x100   : > { %v771_v63 = vpack.c.bf16 %v682_v60, %v680_v59 }
 0x101   : > { %v772_v0 = vpack.c.bf16 %v683_v62, %v681_v61  ;;  %v627_v1 = vpop.f32.mrb[8].mxu0  ;;  %v6807_v61 = vld [vmem:[%s8996_s2 + $0x1f4] ss:$8 sps:$4 sm:$0xff]  }
 0x102   : > { %v628_v3 = vadd.f32 %v627_v1, %v7511_v35  ;;  %v629_v4 = vpop.f32.mrb[9].mxu0 }
 0x103   : > { %v630_v5 = vadd.f32 %v629_v4, %v7514_v36  ;;  %v631_v6 = vpop.f32.mrb[10].mxu0  ;;  %5520 = vmatprep.mubr.msk.bf16.mxu0 %vm917_vm2, %v772_v0 }
 0x104   : > { %v632_v7 = vadd.f32 %v631_v6, %v7511_v35  ;;  %v633_v8 = vpop.f32.mrb[11].mxu0  ;;  %973 = vmatmul.mubr.bf16.gmra.mrb[32].mxu0 %v771_v63  ;;  %v684_v10 = vmax.f32 %v628_v3, 0.0  ;;  %v6805_v6 = vld [vmem:[%s8996_s2 + $0x1f0] ss:$8 sps:$4 sm:$0xff]  }
 0x105   : > { %v634_v9 = vadd.f32 %v633_v8, %v7514_v36  ;;  %v685_v12 = vmax.f32 %v630_v5, 0.0 }
 0x106   : > { %v686_v11 = vmax.f32 %v632_v7, 0.0 }
 0x107   : > { %v687_v13 = vmax.f32 %v634_v9, 0.0  ;;  %v6810_v9 = vld [vmem:[%s8996_s2 + $0x204] ss:$8 sps:$4 sm:$0xff]  }
 0x108   : > { %v773_v14 = vpack.c.bf16 %v686_v11, %v684_v10 }
 0x109   : > { %v774_v15 = vpack.c.bf16 %v687_v13, %v685_v12  ;;  %v637_v16 = vpop.f32.mrb[12].mxu0 }
 0x10a   : > { %v638_v17 = vadd.f32 %v637_v16, %v7511_v35  ;;  %v639_v18 = vpop.f32.mrb[13].mxu0 }
 0x10b   : > { %v640_v19 = vadd.f32 %v639_v18, %v7514_v36  ;;  %v641_v20 = vpop.f32.mrb[14].mxu0  ;;  %5521 = vmatprep.mubr.msk.bf16.mxu0 %vm917_vm2, %v774_v15  ;;  %v6808_v15 = vld [vmem:[%s8996_s2 + $0x200] ss:$8 sps:$4 sm:$0xff]   ;;  %v6813_v18 = vld [vmem:[%s8996_s2 + $0x214] ss:$8 sps:$4 sm:$0xff]  }
 0x10c   : > { %v642_v21 = vadd.f32 %v641_v20, %v7511_v35  ;;  %v643_v22 = vpop.f32.mrb[15].mxu0  ;;  %983 = vmatmul.mubr.bf16.gmra.mrb[36].mxu0 %v773_v14  ;;  %v688_v25 = vmax.f32 %v638_v17, 0.0 }
 0x10d   : > { %v689_v23 = vmax.f32 %v640_v19, 0.0  ;;  %v644_v24 = vadd.f32 %v643_v22, %v7514_v36 }
 0x10e   : > { %v690_v26 = vmax.f32 %v642_v21, 0.0  ;;  %v775_v37 = vpack.c.bf16 %v688_v25, %v688_v25  ;;  %v6811_v25 = vld [vmem:[%s8996_s2 + $0x210] ss:$8 sps:$4 sm:$0xff]  }
 0x10f   : > { %v776_v27 = vpack.c.bf16 %v689_v23, %v689_v23  ;;  %v691_v28 = vmax.f32 %v644_v24, 0.0 }
 0x110   : > { %v732_v40 = vpack.c.bf16 %v690_v26, %v7183_v30 }
 0x111   : > { %v647_v29 = vpop.f32.mrb[16].mxu0  ;;  %5522 = vmatprep.mubr.msk.bf16.mxu0 %vm917_vm2, %v776_v27  ;;  %v733_v31 = vpack.c.bf16 %v691_v28, %v7183_v30 }
 0x112   : > { %v648_v38 = vadd.f32 %v647_v29, %v7511_v35  ;;  %v649_v39 = vpop.f32.mrb[17].mxu0 }
 0x113   : > { %v650_v42 = vadd.f32 %v649_v39, %v7514_v36  ;;  %v651_v43 = vpop.f32.mrb[18].mxu0  ;;  %5551 = vmatprep.mubr.msk.bf16.mxu1 %vm917_vm2, %v733_v31  ;;  %v6825_v39 = vld [vmem:[%s8996_s2 + $0x254] ss:$8 sps:$4 sm:$0xff]  }
 0x114   : > { %v692_v44 = vmax.f32 %v648_v38, 0.0  ;;  %v652_v45 = vadd.f32 %v651_v43, %v7511_v35  ;;  %v653_v46 = vpop.f32.mrb[19].mxu0  ;;  %993 = vmatmul.mubr.bf16.gmra.mrb[40].mxu0 %v775_v37  ;;  %1186 = vmatmul.mubr.bf16.vlgmr.msra.gmra.mrb[0].mxu1 %v732_v40  ;;  %v6822_v37 = vld [vmem:[%s8996_s2 + $0x244] ss:$8 sps:$4 sm:$0xff]   ;;  %v6820_v38 = vld [vmem:[%s8996_s2 + $0x240] ss:$8 sps:$4 sm:$0xff]  }
 0x115   : > { %v693_v47 = vmax.f32 %v650_v42, 0.0  ;;  %v654_v48 = vadd.f32 %v653_v46, %v7514_v36  ;;  %1414 = vmatpush1.bf16.msra.mxu1 %v6796_v34  ;;  %v6817_v34 = vld [vmem:[%s8996_s2 + $0x230] ss:$8 sps:$4 sm:$0xff]   ;;  %v6826_v42 = vld [vmem:[%s8996_s2 + $0x260] ss:$8 sps:$4 sm:$0xff]  }
 0x116   : > { %v7550_v50 = vpack.c.bf16 %v692_v44, %v690_v26  ;;  %v694_v51 = vmax.f32 %v652_v45, 0.0  ;;  %1415 = vmatprep.subr.bf16.mxu1 %v6801_v41  ;;  %v6823_v40 = vld [vmem:[%s8996_s2 + $0x250] ss:$8 sps:$4 sm:$0xff]   ;;  %v6828_v41 = vld [vmem:[%s8996_s2 + $0x264] ss:$8 sps:$4 sm:$0xff]  }
 0x117   : > { %v1254_v53 = vpack.c.bf16 %v693_v47, %v691_v28  ;;  %v695_v54 = vmax.f32 %v654_v48, 0.0  ;;  %v6816_v28 = vld [vmem:[%s8996_s2 + $0x224] ss:$8 sps:$4 sm:$0xff]   ;;  %v6831_v43 = vld [vmem:[%s8996_s2 + $0x274] ss:$8 sps:$4 sm:$0xff]  }
 0x118   : > { %v734_v55 = vpack.c.bf16 %v694_v51, %v692_v44  ;;  %v6829_v44 = vld [vmem:[%s8996_s2 + $0x270] ss:$8 sps:$4 sm:$0xff]   ;;  %v6834_v45 = vld [vmem:[%s8996_s2 + $0x284] ss:$8 sps:$4 sm:$0xff]   ;;  %v6832_v46 = vld [vmem:[%s8996_s2 + $0x280] ss:$8 sps:$4 sm:$0xff]  }
 0x119   : > { %v735_v56 = vpack.c.bf16 %v695_v54, %v693_v47  ;;  %1416 = vmatpush1.bf16.msra.mxu1 %v6799_v49  ;;  %v657_v57 = vpop.f32.mrb[20].mxu0  ;;  %v6837_v47 = vld [vmem:[%s8996_s2 + $0x294] ss:$8 sps:$4 sm:$0xff]   ;;  %v6835_v48 = vld [vmem:[%s8996_s2 + $0x290] ss:$8 sps:$4 sm:$0xff]  }
 0x11a   : > { %v658_v59 = vadd.f32 %v657_v57, %v7511_v35  ;;  %v659_v60 = vpop.f32.mrb[21].mxu0  ;;  %1417 = vmatprep.subr.bf16.mxu1 %v6804_v52  ;;  %v6842_v57 = vld [vmem:[%s8997_s3 + $0x20] sm:$0xff]  }
 0x11b   : > { %v660_v62 = vadd.f32 %v659_v60, %v7514_v36  ;;  %v661_v63 = vpop.f32.mrb[22].mxu0  ;;  %5552 = vmatprep.mubr.msk.bf16.mxu1 %vm917_vm2, %v735_v56  ;;  %v6841_v56 = vld [vmem:[%s8997_s3 + $0x18] sm:$0xff]  }
 0x11c   : > { %v696_v0 = vmax.f32 %v658_v59, 0.0  ;;  %v662_v1 = vadd.f32 %v661_v63, %v7511_v35  ;;  %v663_v3 = vpop.f32.mrb[23].mxu0  ;;  %1196 = vmatmul.mubr.bf16.gmra.mrb[4].mxu1 %v734_v55  ;;  %v6840_v55 = vld [vmem:[%s8997_s3 + $0x10] sm:$0xff]   ;;  %v6845_v60 = vld [vmem:[%s8997_s3 + $0x38] sm:$0xff]  }
 0x11d   : > { %v697_v4 = vmax.f32 %v660_v62, 0.0  ;;  %v664_v5 = vadd.f32 %v663_v3, %v7514_v36  ;;  %1418 = vmatpush1.bf16.msra.mxu1 %v6802_v58  ;;  %v6843_v58 = vld [vmem:[%s8997_s3 + $0x28] sm:$0xff]   ;;  %v6844_v59 = vld [vmem:[%s8997_s3 + $0x30] sm:$0xff]  }
 0x11e   : > { %v7569_v7 = vpack.c.bf16 %v696_v0, %v694_v51  ;;  %v698_v8 = vmax.f32 %v662_v1, 0.0  ;;  %1419 = vmatprep.subr.bf16.mxu1 %v6807_v61  ;;  %v6846_v61 = vld [vmem:[%s8997_s3 + $0x40] sm:$0xff]   ;;  %v6847_v62 = vld [vmem:[%s8997_s3 + $0x48] sm:$0xff]   ;;  %v6848_v63 = vld [vmem:[%s8997_s3 + $0x50] sm:$0xff]  }
 0x11f   : > { %v7574_v10 = vpack.c.bf16 %v697_v4, %v695_v54  ;;  %v699_v11 = vmax.f32 %v664_v5, 0.0  ;;  %v6839_v54 = vld [vmem:[%s8997_s3 + $0x8] sm:$0xff]   ;;  %v6850_v1 = vld [vmem:[%s8997_s3 + $0x60] sm:$0xff]  }
 0x120   : > { %v736_v12 = vpack.c.bf16 %v698_v8, %v696_v0  ;;  %v6849_v0 = vld [vmem:[%s8997_s3 + $0x58] sm:$0xff]   ;;  %v6851_v3 = vld [vmem:[%s8997_s3 + $0x68] sm:$0xff]  }
 0x121   : > { %v737_v13 = vpack.c.bf16 %v699_v11, %v697_v4  ;;  %1420 = vmatpush1.bf16.msra.mxu1 %v6805_v6  ;;  %v667_v14 = vpop.f32.mrb[24].mxu0 }
 0x122   : > { %v668_v16 = vadd.f32 %v667_v14, %v7511_v35  ;;  %1421 = vmatprep.subr.bf16.mxu1 %v6810_v9  ;;  %v669_v17 = vpop.f32.mrb[25].mxu0 }
 0x123   : > { %5553 = vmatprep.mubr.msk.bf16.mxu1 %vm917_vm2, %v737_v13  ;;  %v670_v19 = vadd.f32 %v669_v17, %v7514_v36  ;;  %v671_v20 = vpop.f32.mrb[26].mxu0 }
 0x124   : > { %v700_v21 = vmax.f32 %v668_v16, 0.0  ;;  %1206 = vmatmul.mubr.bf16.gmra.mrb[8].mxu1 %v736_v12  ;;  %v672_v22 = vadd.f32 %v671_v20, %v7511_v35  ;;  %v673_v23 = vpop.f32.mrb[27].mxu0  ;;  %v6814_v35 = vld [vmem:[%s8996_s2 + $0x220] ss:$8 sps:$4 sm:$0xff]  }
 0x125   : > { %v701_v24 = vmax.f32 %v670_v19, 0.0  ;;  %1422 = vmatpush1.bf16.msra.mxu1 %v6808_v15  ;;  %v674_v26 = vadd.f32 %v673_v23, %v7514_v36  ;;  %v6819_v36 = vld [vmem:[%s8996_s2 + $0x234] ss:$8 sps:$4 sm:$0xff]  }
 0x126   : > { %v1257_v27 = vpack.c.bf16 %v700_v21, %v698_v8  ;;  %1423 = vmatprep.subr.bf16.mxu1 %v6813_v18  ;;  %v738_v31 = vpack.c.bf16 %v700_v21, %v700_v21  ;;  %v702_v52 = vmax.f32 %v672_v22, 0.0 }
 0x127   : > { %v739_v29 = vpack.c.bf16 %v701_v24, %v701_v24  ;;  %v1258_v30 = vpack.c.bf16 %v701_v24, %v699_v11  ;;  %v703_v49 = vmax.f32 %v674_v26, 0.0  ;;  %v1498_v26 = vld [vmem:[%s9002_s8] sm:$0x3] }
 0x129   : > { %1424 = vmatpush1.bf16.msra.mxu1 %v6811_v25  ;;  %5554 = vmatprep.mubr.msk.bf16.mxu1 %vm917_vm2, %v739_v29  ;;  %v1260_v51 = vpack.c.bf16 %v703_v49, %v703_v49  ;;  %v7714_v29 = vrot.slane %v1498_v26, %v7505_v33 }
 0x12a   : > { %1425 = vmatprep.subr.bf16.mxu1 %v6816_v28 }
 0x12c   : > { %1216 = vmatmul.mubr.bf16.gmra.mrb[12].mxu1 %v738_v31 }
 0x12d   : > { %1426 = vmatpush1.bf16.msra.mxu1 %v6814_v35  ;;  %5611 = vmatprep.mubr.msk.bf16.mxu1 %vm917_vm2, %v1254_v53  ;;  %v1259_v53 = vpack.c.bf16 %v702_v52, %v702_v52 }
 0x12e   : > { %1427 = vmatprep.subr.bf16.mxu1 %v6819_v36 }
 0x131   : > { %1428 = vmatpush1.bf16.msra.mxu1 %v6817_v34 }
 0x132   : > { %1429 = vmatprep.subr.bf16.mxu1 %v6822_v37 }
 0x135   : > { %1430 = vmatpush1.bf16.msra.mxu1 %v6820_v38 }
 0x136   : > { %1431 = vmatprep.subr.bf16.mxu1 %v6825_v39 }
 0x139   : > { %1432 = vmatpush1.bf16.msra.mxu1 %v6823_v40 }
 0x13a   : > { %1433 = vmatprep.subr.bf16.mxu1 %v6828_v41 }
 0x13d   : > { %1434 = vmatpush1.bf16.msra.mxu1 %v6826_v42 }
 0x13e   : > { %1435 = vmatprep.subr.bf16.mxu1 %v6831_v43 }
 0x141   : > { %1436 = vmatpush1.bf16.msra.mxu1 %v6829_v44 }
 0x142   : > { %1437 = vmatprep.subr.bf16.mxu1 %v6834_v45 }
 0x145   : > { %1438 = vmatpush1.bf16.msra.mxu1 %v6832_v46 }
 0x146   : > { %1439 = vmatprep.subr.bf16.mxu1 %v6837_v47  ;;  %v6852_v47 = vld [vmem:[%s8997_s3 + $0x70] sm:$0xff]  }
 0x149   : > { %1440 = vmatpush1.bf16.msra.mxu1 %v6835_v48 }
 0x14c   : > { %1446 = vmatmul.mubr.bf16.vlgmr.msra.gmra.mrb[0].mxu1 %v7550_v50  ;;  %v6838_v50 = vld [vmem:[%s8997_s3] sm:$0xff]  }
 0x14d   : > { %5612 = vmatprep.mubr.msk.bf16.mxu1 %vm917_vm2, %v7574_v10  ;;  %1657 = vmatpush1.bf16.msra.mxu0 %v6838_v50 }
 0x14e   : > { %1658 = vmatprep.subr.bf16.mxu0 %v7182_v2 }
 0x151   : > { %1659 = vmatpush1.bf16.msra.mxu0 %v6839_v54 }
 0x152   : > { %1660 = vmatprep.subr.bf16.mxu0 %v7182_v2 }
 0x154   : > { %1456 = vmatmul.mubr.bf16.gmra.mrb[4].mxu1 %v7569_v7 }
 0x155   : > { %5613 = vmatprep.mubr.msk.bf16.mxu1 %vm917_vm2, %v1258_v30  ;;  %1661 = vmatpush1.bf16.msra.mxu0 %v6840_v55 }
 0x156   : > { %1662 = vmatprep.subr.bf16.mxu0 %v7182_v2 }
 0x159   : > { %1663 = vmatpush1.bf16.msra.mxu0 %v6841_v56 }
 0x15a   : > { %1664 = vmatprep.subr.bf16.mxu0 %v7182_v2 }
 0x15c   : > { %1466 = vmatmul.mubr.bf16.gmra.mrb[8].mxu1 %v1257_v27  ;;  %v7711_v27 = vrot.slane %v1498_v26, %v7503_v32  ;;  %v6862_v26 = vld [vmem:[%s8997_s3 + $0xc0] sm:$0xff]  }
 0x15d   : > { %5614 = vmatprep.mubr.msk.bf16.mxu1 %vm917_vm2, %v1260_v51  ;;  %1665 = vmatpush1.bf16.msra.mxu0 %v6842_v57 }
 0x15e   : > { %1666 = vmatprep.subr.bf16.mxu0 %v7182_v2 }
 0x161   : > { %1667 = vmatpush1.bf16.msra.mxu0 %v6843_v58  ;;  %v6853_v58 = vld [vmem:[%s8997_s3 + $0x78] sm:$0xff]  }
 0x162   : > { %1668 = vmatprep.subr.bf16.mxu0 %v7182_v2 }
 0x164   : > { %1476 = vmatmul.mubr.bf16.gmra.mrb[16].mxu1 %v1259_v53 }
 0x165   : > { %2754 = vmatprep.mubr.bf16.mxu1 %v7182_v2  ;;  %1669 = vmatpush1.bf16.msra.mxu0 %v6844_v59 }
 0x166   : > { %1670 = vmatprep.subr.bf16.mxu0 %v7182_v2 }
 0x169   : > { %1671 = vmatpush1.bf16.msra.mxu0 %v6845_v60 }
 0x16a   : > { %1672 = vmatprep.subr.bf16.mxu0 %v7182_v2 }
 0x16d   : > { %1673 = vmatpush1.bf16.msra.mxu0 %v6846_v61 }
 0x16e   : > { %1674 = vmatprep.subr.bf16.mxu0 %v7182_v2 }
 0x171   : > { %1675 = vmatpush1.bf16.msra.mxu0 %v6847_v62  ;;  %v6854_v62 = vld [vmem:[%s8997_s3 + $0x80] sm:$0xff]  }
 0x172   : > { %1676 = vmatprep.subr.bf16.mxu0 %v7182_v2 }
 0x175   : > { %1677 = vmatpush1.bf16.msra.mxu0 %v6848_v63 }
 0x176   : > { %1678 = vmatprep.subr.bf16.mxu0 %v7182_v2 }
 0x179   : > { %1679 = vmatpush1.bf16.msra.mxu0 %v6849_v0 }
 0x17a   : > { %1680 = vmatprep.subr.bf16.mxu0 %v7182_v2 }
 0x17d   : > { %1681 = vmatpush1.bf16.msra.mxu0 %v6850_v1 }
 0x17e   : > { %1682 = vmatprep.subr.bf16.mxu0 %v7182_v2 }
 0x181   : > { %1683 = vmatpush1.bf16.msra.mxu0 %v6851_v3 }
 0x182   : > { %1821 = vmatprep.subr.bf16.mxu0 %v7182_v2 }
 0x1cf   : > { %v964_v4 = vpop.f32.mrb[28].mxu0 }
 0x1d0   : > { %v966_v5 = vpop.f32.mrb[29].mxu0 }
 0x1d1   : > { %v968_v6 = vpop.f32.mrb[30].mxu0 }
 0x1d2   : > { %v970_v7 = vpop.f32.mrb[31].mxu0 }
 0x1d7   : > { %v974_v8 = vpop.f32.mrb[32].mxu0 }
 0x1d8   : > { %v976_v9 = vpop.f32.mrb[33].mxu0 }
 0x1d9   : > { %v978_v10 = vpop.f32.mrb[34].mxu0 }
 0x1da   : > { %v980_v11 = vpop.f32.mrb[35].mxu0 }
 0x1df   : > { %v984_v12 = vpop.f32.mrb[36].mxu0 }
 0x1e0   : > { %v986_v13 = vpop.f32.mrb[37].mxu0 }
 0x1e1   : > { %v988_v14 = vpop.f32.mrb[38].mxu0 }
 0x1e2   : > { %v990_v15 = vpop.f32.mrb[39].mxu0 }
 0x1e7   : > { %v994_v16 = vpop.f32.mrb[40].mxu0 }
 0x1e8   : > { %v996_v17 = vpop.f32.mrb[41].mxu0 }
 0x1e9   : > { %v998_v18 = vpop.f32.mrb[42].mxu0 }
 0x1ea   : > { %v999_v19 = vpop.f32.mrb[43].mxu0 }
 0x1ff   : > { %v1217_v20 = vpop.f32.mrb[12].mxu1 }
 0x200   : > { %v7703_v21 = vadd.f32 %v1217_v20, %v994_v16  ;;  %v1219_v22 = vpop.f32.mrb[13].mxu1 }
 0x201   : > { %v7705_v23 = vadd.f32 %v1219_v22, %v996_v17  ;;  %v1221_v24 = vpop.f32.mrb[14].mxu1  ;;  %v6857_v22 = vld [vmem:[%s8997_s3 + $0x98] sm:$0xff]  }
 0x202   : > { %v1222_v25 = vpop.f32.mrb[15].mxu1  ;;  %v6860_v24 = vld [vmem:[%s8997_s3 + $0xb0] sm:$0xff]  }
 0x203   : > { %v6861_v25 = vld [vmem:[%s8997_s3 + $0xb8] sm:$0xff]  }
 0x21f   : > { %v1447_v28 = vpop.f32.mrb[0].mxu1 }
 0x220   : > { %v6589_v30 = vadd.f32 %v1447_v28, %v964_v4  ;;  %v1449_v31 = vpop.f32.mrb[1].mxu1  ;;  %v6863_v28 = vld [vmem:[%s8997_s3 + $0xc8] sm:$0xff]  }
 0x221   : > { %v6590_v35 = vadd.f32 %v1449_v31, %v966_v5  ;;  %v1451_v36 = vpop.f32.mrb[2].mxu1 }
 0x222   : > { %v1510_v34 = vadd.f32 %v6589_v30, %v7711_v27  ;;  %v7717_v37 = vadd.f32 %v1451_v36, %v968_v6  ;;  %v1453_v38 = vpop.f32.mrb[3].mxu1  ;;  %v6864_v30 = vld [vmem:[%s8997_s3 + $0xd0] sm:$0xff]   ;;  %v6865_v36 = vld [vmem:[%s8997_s3 + $0xd8] sm:$0xff]  }
 0x223   : > { %v1511_v39 = vadd.f32 %v6590_v35, %v7714_v29  ;;  %v6592_v40 = vadd.f32 %v1453_v38, %v970_v7 }
 0x224   : > { %v1524_v41 = vmax.f32 %v1510_v34, 0.0  ;;  %v1512_v31 = vadd.f32 %v7717_v37, %v7711_v27 }
 0x225   : > { %v1525_v42 = vmax.f32 %v1511_v39, 0.0  ;;  %v1513_v43 = vadd.f32 %v6592_v40, %v7714_v29  ;;  %v6866_v39 = vld [vmem:[%s8997_s3 + $0xe0] sm:$0xff]   ;;  %v6868_v40 = vld [vmem:[%s8997_s3 + $0xf0] sm:$0xff]  }
 0x226   : > { %v1567_v48 = vpack.c.bf16 %v1524_v41, %v1524_v41  ;;  %v1526_v34 = vmax.f32 %v1512_v31, 0.0  ;;  %v6869_v41 = vld [vmem:[%s8997_s3 + $0xf8] sm:$0xff]  }
 0x227   : > { %v1568_v44 = vpack.c.bf16 %v1525_v42, %v1525_v42  ;;  %v1527_v45 = vmax.f32 %v1513_v43, 0.0  ;;  %v1457_v46 = vpop.f32.mrb[4].mxu1  ;;  %v6870_v42 = vld [vmem:[%s8997_s3 + $0x100] sm:$0xff]   ;;  %v6871_v43 = vld [vmem:[%s8997_s3 + $0x108] sm:$0xff]   ;;  %v6905_v31 = vld [vmem:[%s8997_s3 + $0x218] sm:$0xff]  }
 0x228   : > { %v6593_v49 = vadd.f32 %v1457_v46, %v974_v8  ;;  %v1459_v51 = vpop.f32.mrb[5].mxu1  ;;  %v6874_v46 = vld [vmem:[%s8997_s3 + $0x120] sm:$0xff]  }
 0x229   : > { %v1733_v52 = vpack.c.bf16 %v1527_v45, %v1527_v45  ;;  %v7724_v53 = vadd.f32 %v1459_v51, %v976_v9  ;;  %v1461_v50 = vpop.f32.mrb[6].mxu1  ;;  %5629 = vmatprep.mubr.msk.bf16.mxu0 %vm917_vm2, %v1568_v44  ;;  %v6855_v9 = vld [vmem:[%s8997_s3 + $0x88] sm:$0xff]   ;;  %v6872_v44 = vld [vmem:[%s8997_s3 + $0x110] sm:$0xff]   ;;  %v6873_v45 = vld [vmem:[%s8997_s3 + $0x118] sm:$0xff]  }
 0x22a   : > { %v7728_v54 = vadd.f32 %v6593_v49, %v7711_v27  ;;  %v6595_v55 = vadd.f32 %v1461_v50, %v978_v10  ;;  %v1463_v56 = vpop.f32.mrb[7].mxu1  ;;  %1689 = vmatmul.mubr.bf16.vlgmr.msra.gmra.mrb[44].mxu0 %v1567_v48  ;;  %v6876_v48 = vld [vmem:[%s8997_s3 + $0x130] sm:$0xff]   ;;  %v6877_v49 = vld [vmem:[%s8997_s3 + $0x138] sm:$0xff]   ;;  %v6878_v51 = vld [vmem:[%s8997_s3 + $0x140] sm:$0xff]  }
 0x22b   : > { %v6596_v57 = vadd.f32 %v1463_v56, %v980_v11  ;;  %1822 = vmatpush1.bf16.msra.mxu0 %v6852_v47  ;;  %5673 = vmatprep.mubr.msk.bf16.mxu0 %vm917_vm2, %v1733_v52  ;;  %v1515_v35 = vadd.f32 %v7724_v53, %v7714_v29  ;;  %v6875_v47 = vld [vmem:[%s8997_s3 + $0x128] sm:$0xff]  }
 0x22c   : > { %v7735_v59 = vadd.f32 %v6595_v55, %v7711_v27  ;;  %1823 = vmatprep.subr.bf16.mxu0 %v7182_v2  ;;  %v6879_v52 = vld [vmem:[%s8997_s3 + $0x148] sm:$0xff]   ;;  %v1528_v53 = vmax.f32 %v7728_v54, 0.0  ;;  %v6880_v55 = vld [vmem:[%s8997_s3 + $0x150] sm:$0xff]   ;;  %v6881_v54 = vld [vmem:[%s8997_s3 + $0x158] sm:$0xff]  }
 0x22d   : > { %v7739_v60 = vadd.f32 %v6596_v57, %v7714_v29  ;;  %v1529_v38 = vmax.f32 %v1515_v35, 0.0  ;;  %v6941_v35 = vld [vmem:[%s8998_s4 + $0x14] ss:$8 sps:$4 sm:$0xff]  }
 0x22e   : > { %v1891_v56 = vpack.c.bf16 %v1528_v53, %v1528_v53  ;;  %v6918_v53 = vld [vmem:[%s8997_s3 + $0x280] sm:$0xff]  }
 0x22f   : > { %1824 = vmatpush1.bf16.msra.mxu0 %v6853_v58  ;;  %v1467_v61 = vpop.f32.mrb[8].mxu1  ;;  %v1892_v37 = vpack.c.bf16 %v1529_v38, %v1529_v38  ;;  %v1531_v50 = vmax.f32 %v7739_v60, 0.0  ;;  %v6882_v58 = vld [vmem:[%s8997_s3 + $0x160] sm:$0xff]   ;;  %v6883_v60 = vld [vmem:[%s8997_s3 + $0x168] sm:$0xff]  }
 0x230   : > { %v6597_v63 = vadd.f32 %v1467_v61, %v984_v12  ;;  %v1469_v0 = vpop.f32.mrb[9].mxu1  ;;  %1825 = vmatprep.subr.bf16.mxu0 %v7182_v2  ;;  %v6884_v61 = vld [vmem:[%s8997_s3 + $0x170] sm:$0xff]   ;;  %v6906_v38 = vld [vmem:[%s8997_s3 + $0x220] sm:$0xff]  }
 0x231   : > { %v6598_v1 = vadd.f32 %v1469_v0, %v986_v13  ;;  %v1471_v3 = vpop.f32.mrb[10].mxu1  ;;  %v6856_v13 = vld [vmem:[%s8997_s3 + $0x90] sm:$0xff]   ;;  %v2051_v57 = vpack.c.bf16 %v1531_v50, %v1531_v50  ;;  %v6887_v0 = vld [vmem:[%s8997_s3 + $0x188] sm:$0xff]  }
 0x232   : > { %v7746_v4 = vadd.f32 %v6597_v63, %v7711_v27  ;;  %v6599_v5 = vadd.f32 %v1471_v3, %v988_v14  ;;  %v1473_v6 = vpop.f32.mrb[11].mxu1  ;;  %v6886_v63 = vld [vmem:[%s8997_s3 + $0x180] sm:$0xff]   ;;  %v6889_v3 = vld [vmem:[%s8997_s3 + $0x198] sm:$0xff]   ;;  %v6919_v50 = vld [vmem:[%s8997_s3 + $0x288] sm:$0xff]  }
 0x233   : > { %v7749_v7 = vadd.f32 %v6598_v1, %v7714_v29  ;;  %v6600_v8 = vadd.f32 %v1473_v6, %v990_v15  ;;  %1826 = vmatpush1.bf16.msra.mxu0 %v6854_v62  ;;  %v6885_v62 = vld [vmem:[%s8997_s3 + $0x178] sm:$0xff]   ;;  %v6888_v1 = vld [vmem:[%s8997_s3 + $0x190] sm:$0xff]   ;;  %v6891_v6 = vld [vmem:[%s8997_s3 + $0x1a8] sm:$0xff]  }
 0x234   : > { %v7755_v10 = vadd.f32 %v6599_v5, %v7711_v27  ;;  %1827 = vmatprep.subr.bf16.mxu0 %v7182_v2  ;;  %v6890_v5 = vld [vmem:[%s8997_s3 + $0x1a0] sm:$0xff]  }
 0x235   : > { %v7759_v11 = vadd.f32 %v6600_v8, %v7714_v29  ;;  %v6892_v8 = vld [vmem:[%s8997_s3 + $0x1b0] sm:$0xff]  }
 0x237   : > { %1828 = vmatpush1.bf16.msra.mxu0 %v6855_v9  ;;  %v1477_v12 = vpop.f32.mrb[16].mxu1  ;;  %v6893_v9 = vld [vmem:[%s8997_s3 + $0x1b8] sm:$0xff]  }
 0x238   : > { %v1496_v14 = vadd.f32 %v1477_v12, %v7703_v21  ;;  %v1479_v15 = vpop.f32.mrb[17].mxu1  ;;  %1829 = vmatprep.subr.bf16.mxu0 %v7182_v2  ;;  %v6858_v21 = vld [vmem:[%s8997_s3 + $0xa0] sm:$0xff]   ;;  %v1530_v12 = vmax.f32 %v7735_v59, 0.0  ;;  %v6895_v59 = vld [vmem:[%s8997_s3 + $0x1c8] sm:$0xff]  }
 0x239   : > { %v1497_v16 = vadd.f32 %v1479_v15, %v7705_v23  ;;  %v1481_v17 = vpop.f32.mrb[18].mxu1  ;;  %v6859_v23 = vld [vmem:[%s8997_s3 + $0xa8] sm:$0xff]  }
 0x23a   : > { %v7768_v18 = vadd.f32 %v7711_v27, %v1496_v14  ;;  %v1482_v19 = vpop.f32.mrb[19].mxu1  ;;  %v1732_v27 = vpack.c.bf16 %v1526_v34, %v1526_v34  ;;  %v6894_v14 = vld [vmem:[%s8997_s3 + $0x1c0] sm:$0xff]   ;;  %v2050_v15 = vpack.c.bf16 %v1530_v12, %v1530_v12  ;;  %v6897_v17 = vld [vmem:[%s8997_s3 + $0x1d8] sm:$0xff]  }
 0x23b   : > { %v7771_v20 = vadd.f32 %v7714_v29, %v1497_v16  ;;  %1830 = vmatpush1.bf16.msra.mxu0 %v6856_v13  ;;  %v6867_v29 = vld [vmem:[%s8997_s3 + $0xe8] sm:$0xff]   ;;  %v1533_v13 = vmax.f32 %v7749_v7, 0.0  ;;  %v6896_v7 = vld [vmem:[%s8997_s3 + $0x1d0] sm:$0xff]   ;;  %v6898_v19 = vld [vmem:[%s8997_s3 + $0x1e0] sm:$0xff]  }
 0x23c   : > { %1831 = vmatprep.subr.bf16.mxu0 %v7182_v2  ;;  %v6944_v34 = vld [vmem:[%s8998_s4 + $0x24] ss:$8 sps:$4 sm:$0xff]  }
 0x23d   : > { %v2210_v16 = vpack.c.bf16 %v1533_v13, %v1533_v13  ;;  %v6934_v12 = vld [vmem:[%s8997_s3 + $0x300] sm:$0xff]   ;;  %v6935_v13 = vld [vmem:[%s8997_s3 + $0x308] sm:$0xff]  }
 0x23f   : > { %1832 = vmatpush1.bf16.msra.mxu0 %v6857_v22  ;;  %v6899_v22 = vld [vmem:[%s8997_s3 + $0x1e8] sm:$0xff]  }
 0x240   : > { %1833 = vmatprep.subr.bf16.mxu0 %v7182_v2 }
 0x243   : > { %1834 = vmatpush1.bf16.msra.mxu0 %v6858_v21  ;;  %v6900_v21 = vld [vmem:[%s8997_s3 + $0x1f0] sm:$0xff]  }
 0x244   : > { %1835 = vmatprep.subr.bf16.mxu0 %v7182_v2 }
 0x247   : > { %1836 = vmatpush1.bf16.msra.mxu0 %v6859_v23  ;;  %v6901_v23 = vld [vmem:[%s8997_s3 + $0x1f8] sm:$0xff]  }
 0x248   : > { %1837 = vmatprep.subr.bf16.mxu0 %v7182_v2 }
 0x24b   : > { %1838 = vmatpush1.bf16.msra.mxu0 %v6860_v24  ;;  %v6902_v24 = vld [vmem:[%s8997_s3 + $0x200] sm:$0xff]  }
 0x24c   : > { %1839 = vmatprep.subr.bf16.mxu0 %v7182_v2 }
 0x24f   : > { %1840 = vmatpush1.bf16.msra.mxu0 %v6861_v25  ;;  %v6903_v25 = vld [vmem:[%s8997_s3 + $0x208] sm:$0xff]  }
 0x250   : > { %1841 = vmatprep.subr.bf16.mxu0 %v7182_v2 }
 0x253   : > { %1842 = vmatpush1.bf16.msra.mxu0 %v6862_v26  ;;  %v6904_v26 = vld [vmem:[%s8997_s3 + $0x210] sm:$0xff]  }
 0x254   : > { %1843 = vmatprep.subr.bf16.mxu0 %v7182_v2 }
 0x257   : > { %1844 = vmatpush1.bf16.msra.mxu0 %v6863_v28  ;;  %v6936_v28 = vld [vmem:[%s8998_s4] ss:$8 sps:$4 sm:$0xff]  }
 0x258   : > { %1845 = vmatprep.subr.bf16.mxu0 %v7182_v2 }
 0x25b   : > { %1846 = vmatpush1.bf16.msra.mxu0 %v6864_v30  ;;  %v6938_v30 = vld [vmem:[%s8998_s4 + $0x4] ss:$8 sps:$4 sm:$0xff]  }
 0x25c   : > { %1847 = vmatprep.subr.bf16.mxu0 %v7182_v2  ;;  %2722 = vmatprep.subr.bf16.mxu1 %v6938_v30  ;;  %v6948_v30 = vld [vmem:[%s8998_s4 + $0x40] ss:$8 sps:$4 sm:$0xff]  }
 0x25d   : > { %2723 = vmatpush1.bf16.msra.mxu1 %v6936_v28 }
 0x25e   : > { %2724 = vmatprep.subr.bf16.mxu1 %v6941_v35 }
 0x25f   : > { %1848 = vmatpush1.bf16.msra.mxu0 %v6865_v36  ;;  %v6939_v36 = vld [vmem:[%s8998_s4 + $0x10] ss:$8 sps:$4 sm:$0xff]  }
 0x260   : > { %1980 = vmatprep.subr.bf16.mxu0 %v7182_v2 }
 0x261   : > { %2725 = vmatpush1.bf16.msra.mxu1 %v6939_v36 }
 0x262   : > { %1854 = vmatmul.mubr.bf16.vlgmr.msra.gmra.mrb[44].mxu0 %v1732_v27  ;;  %2726 = vmatprep.subr.bf16.mxu1 %v6944_v34  ;;  %v6947_v27 = vld [vmem:[%s8998_s4 + $0x34] ss:$8 sps:$4 sm:$0xff]  }
 0x263   : > { %1981 = vmatpush1.bf16.msra.mxu0 %v6866_v39  ;;  %5716 = vmatprep.mubr.msk.bf16.mxu0 %vm917_vm2, %v1892_v37  ;;  %v6942_v39 = vld [vmem:[%s8998_s4 + $0x20] ss:$8 sps:$4 sm:$0xff]   ;;  %v6953_v34 = vld [vmem:[%s8998_s4 + $0x54] ss:$8 sps:$4 sm:$0xff]  }
 0x264   : > { %1982 = vmatprep.subr.bf16.mxu0 %v7182_v2  ;;  %v6907_v37 = vld [vmem:[%s8997_s3 + $0x228] sm:$0xff]  }
 0x265   : > { %2727 = vmatpush1.bf16.msra.mxu1 %v6942_v39  ;;  %v6956_v39 = vld [vmem:[%s8998_s4 + $0x64] ss:$8 sps:$4 sm:$0xff]  }
 0x266   : > { %2728 = vmatprep.subr.bf16.mxu1 %v6947_v27  ;;  %v6954_v27 = vld [vmem:[%s8998_s4 + $0x60] ss:$8 sps:$4 sm:$0xff]  }
 0x267   : > { %1983 = vmatpush1.bf16.msra.mxu0 %v6867_v29  ;;  %v1532_v29 = vmax.f32 %v7746_v4, 0.0  ;;  %v6909_v4 = vld [vmem:[%s8997_s3 + $0x238] sm:$0xff]  }
 0x268   : > { %1984 = vmatprep.subr.bf16.mxu0 %v7182_v2 }
 0x26b   : > { %1985 = vmatpush1.bf16.msra.mxu0 %v6868_v40  ;;  %v1535_v40 = vmax.f32 %v7759_v11, 0.0  ;;  %v6910_v11 = vld [vmem:[%s8997_s3 + $0x240] sm:$0xff]  }
 0x26c   : > { %1986 = vmatprep.subr.bf16.mxu0 %v7182_v2 }
 0x26f   : > { %1987 = vmatpush1.bf16.msra.mxu0 %v6869_v41  ;;  %v6945_v41 = vld [vmem:[%s8998_s4 + $0x30] ss:$8 sps:$4 sm:$0xff]  }
 0x270   : > { %1988 = vmatprep.subr.bf16.mxu0 %v7182_v2  ;;  %2729 = vmatpush1.bf16.msra.mxu1 %v6945_v41  ;;  %v6960_v41 = vld [vmem:[%s8998_s4 + $0x80] ss:$8 sps:$4 sm:$0xff]  }
 0x273   : > { %1989 = vmatpush1.bf16.msra.mxu0 %v6870_v42  ;;  %v6908_v42 = vld [vmem:[%s8997_s3 + $0x230] sm:$0xff]  }
 0x274   : > { %1990 = vmatprep.subr.bf16.mxu0 %v7182_v2 }
 0x277   : > { %1991 = vmatpush1.bf16.msra.mxu0 %v6871_v43  ;;  %v2209_v43 = vpack.c.bf16 %v1532_v29, %v1532_v29  ;;  %v6957_v29 = vld [vmem:[%s8998_s4 + $0x70] ss:$8 sps:$4 sm:$0xff]  }
 0x278   : > { %1992 = vmatprep.subr.bf16.mxu0 %v7182_v2 }
 0x27b   : > { %1993 = vmatpush1.bf16.msra.mxu0 %v6872_v44  ;;  %v2369_v44 = vpack.c.bf16 %v1535_v40, %v1535_v40  ;;  %v6962_v40 = vld [vmem:[%s8998_s4 + $0x84] ss:$8 sps:$4 sm:$0xff]  }
 0x27c   : > { %1994 = vmatprep.subr.bf16.mxu0 %v7182_v2 }
 0x27f   : > { %1995 = vmatpush1.bf16.msra.mxu0 %v6873_v45  ;;  %v6911_v45 = vld [vmem:[%s8997_s3 + $0x248] sm:$0xff]  }
 0x280   : > { %1996 = vmatprep.subr.bf16.mxu0 %v7182_v2 }
 0x283   : > { %1997 = vmatpush1.bf16.msra.mxu0 %v6874_v46  ;;  %v6912_v46 = vld [vmem:[%s8997_s3 + $0x250] sm:$0xff]  }
 0x284   : > { %1998 = vmatprep.subr.bf16.mxu0 %v7182_v2 }
 0x287   : > { %1999 = vmatpush1.bf16.msra.mxu0 %v6875_v47  ;;  %v6913_v47 = vld [vmem:[%s8997_s3 + $0x258] sm:$0xff]  }
 0x288   : > { %2000 = vmatprep.subr.bf16.mxu0 %v7182_v2 }
 0x28b   : > { %2001 = vmatpush1.bf16.msra.mxu0 %v6876_v48  ;;  %v6914_v48 = vld [vmem:[%s8997_s3 + $0x260] sm:$0xff]  }
 0x28c   : > { %2002 = vmatprep.subr.bf16.mxu0 %v7182_v2 }
 0x28f   : > { %2003 = vmatpush1.bf16.msra.mxu0 %v6877_v49  ;;  %v6915_v49 = vld [vmem:[%s8997_s3 + $0x268] sm:$0xff]  }
 0x290   : > { %2004 = vmatprep.subr.bf16.mxu0 %v7182_v2 }
 0x293   : > { %2005 = vmatpush1.bf16.msra.mxu0 %v6878_v51  ;;  %v6916_v51 = vld [vmem:[%s8997_s3 + $0x270] sm:$0xff]  }
 0x294   : > { %2006 = vmatprep.subr.bf16.mxu0 %v7182_v2 }
 0x297   : > { %2007 = vmatpush1.bf16.msra.mxu0 %v6879_v52  ;;  %v6917_v52 = vld [vmem:[%s8997_s3 + $0x278] sm:$0xff]  }
 0x298   : > { %2139 = vmatprep.subr.bf16.mxu0 %v7182_v2 }
 0x29a   : > { %2013 = vmatmul.mubr.bf16.vlgmr.msra.gmra.mrb[44].mxu0 %v1891_v56  ;;  %v6921_v56 = vld [vmem:[%s8997_s3 + $0x298] sm:$0xff]  }
 0x29b   : > { %2140 = vmatpush1.bf16.msra.mxu0 %v6880_v55  ;;  %5759 = vmatprep.mubr.msk.bf16.mxu0 %vm917_vm2, %v2051_v57  ;;  %v6920_v55 = vld [vmem:[%s8997_s3 + $0x290] sm:$0xff]   ;;  %v1534_v57 = vmax.f32 %v7755_v10, 0.0  ;;  %v6923_v10 = vld [vmem:[%s8997_s3 + $0x2a8] sm:$0xff]  }
 0x29c   : > { %2141 = vmatprep.subr.bf16.mxu0 %v7182_v2 }
 0x29f   : > { %2142 = vmatpush1.bf16.msra.mxu0 %v6881_v54  ;;  %v1537_v54 = vmax.f32 %v7771_v20, 0.0  ;;  %v6924_v20 = vld [vmem:[%s8997_s3 + $0x2b0] sm:$0xff]  }
 0x2a0   : > { %2143 = vmatprep.subr.bf16.mxu0 %v7182_v2 }
 0x2a3   : > { %2144 = vmatpush1.bf16.msra.mxu0 %v6882_v58  ;;  %v6922_v58 = vld [vmem:[%s8997_s3 + $0x2a0] sm:$0xff]  }
 0x2a4   : > { %2145 = vmatprep.subr.bf16.mxu0 %v7182_v2 }
 0x2a7   : > { %2146 = vmatpush1.bf16.msra.mxu0 %v6883_v60  ;;  %v2368_v60 = vpack.c.bf16 %v1534_v57, %v1534_v57  ;;  %v6989_v57 = vld [vmem:[%s8998_s4 + $0x114] ss:$8 sps:$4 sm:$0xff]  }
 0x2a8   : > { %2147 = vmatprep.subr.bf16.mxu0 %v7182_v2 }
 0x2ab   : > { %2148 = vmatpush1.bf16.msra.mxu0 %v6884_v61  ;;  %v2528_v61 = vpack.c.bf16 %v1537_v54, %v1537_v54  ;;  %v6987_v54 = vld [vmem:[%s8998_s4 + $0x110] ss:$8 sps:$4 sm:$0xff]  }
 0x2ac   : > { %2149 = vmatprep.subr.bf16.mxu0 %v7182_v2 }
 0x2af   : > { %2150 = vmatpush1.bf16.msra.mxu0 %v6885_v62  ;;  %v6925_v62 = vld [vmem:[%s8997_s3 + $0x2b8] sm:$0xff]  }
 0x2b0   : > { %2151 = vmatprep.subr.bf16.mxu0 %v7182_v2 }
 0x2b3   : > { %2152 = vmatpush1.bf16.msra.mxu0 %v6886_v63  ;;  %v6926_v63 = vld [vmem:[%s8997_s3 + $0x2c0] sm:$0xff]  }
 0x2b4   : > { %2153 = vmatprep.subr.bf16.mxu0 %v7182_v2 }
 0x2b7   : > { %2154 = vmatpush1.bf16.msra.mxu0 %v6887_v0  ;;  %v6927_v0 = vld [vmem:[%s8997_s3 + $0x2c8] sm:$0xff]  }
 0x2b8   : > { %2155 = vmatprep.subr.bf16.mxu0 %v7182_v2 }
 0x2bb   : > { %2156 = vmatpush1.bf16.msra.mxu0 %v6888_v1  ;;  %v6928_v1 = vld [vmem:[%s8997_s3 + $0x2d0] sm:$0xff]  }
 0x2bc   : > { %2157 = vmatprep.subr.bf16.mxu0 %v7182_v2 }
 0x2bf   : > { %2158 = vmatpush1.bf16.msra.mxu0 %v6889_v3  ;;  %v6929_v3 = vld [vmem:[%s8997_s3 + $0x2d8] sm:$0xff]  }
 0x2c0   : > { %2159 = vmatprep.subr.bf16.mxu0 %v7182_v2 }
 0x2c3   : > { %2160 = vmatpush1.bf16.msra.mxu0 %v6890_v5  ;;  %v6930_v5 = vld [vmem:[%s8997_s3 + $0x2e0] sm:$0xff]  }
 0x2c4   : > { %2161 = vmatprep.subr.bf16.mxu0 %v7182_v2 }
 0x2c7   : > { %2162 = vmatpush1.bf16.msra.mxu0 %v6891_v6  ;;  %v6931_v6 = vld [vmem:[%s8997_s3 + $0x2e8] sm:$0xff]  }
 0x2c8   : > { %2163 = vmatprep.subr.bf16.mxu0 %v7182_v2 }
 0x2cb   : > { %2164 = vmatpush1.bf16.msra.mxu0 %v6892_v8  ;;  %v6932_v8 = vld [vmem:[%s8997_s3 + $0x2f0] sm:$0xff]  }
 0x2cc   : > { %2165 = vmatprep.subr.bf16.mxu0 %v7182_v2 }
 0x2cf   : > { %2166 = vmatpush1.bf16.msra.mxu0 %v6893_v9  ;;  %v6933_v9 = vld [vmem:[%s8997_s3 + $0x2f8] sm:$0xff]  }
 0x2d0   : > { %2298 = vmatprep.subr.bf16.mxu0 %v7182_v2 }
 0x2d2   : > { %2172 = vmatmul.mubr.bf16.vlgmr.msra.gmra.mrb[44].mxu0 %v2050_v15 }
 0x2d3   : > { %2299 = vmatpush1.bf16.msra.mxu0 %v6894_v14  ;;  %5802 = vmatprep.mubr.msk.bf16.mxu0 %vm917_vm2, %v2210_v16  ;;  %v1536_v14 = vmax.f32 %v7768_v18, 0.0  ;;  %v6950_v16 = vld [vmem:[%s8998_s4 + $0x44] ss:$8 sps:$4 sm:$0xff]   ;;  %v7023_v18 = vld [vmem:[%s8999_s5 + $0x158] sm:$0xff]  }
 0x2d4   : > { %2300 = vmatprep.subr.bf16.mxu0 %v7182_v2  ;;  %2814 = vmatprep.subr.bf16.mxu1 %v6950_v16  ;;  %v7014_v16 = vld [vmem:[%s8998_s4 + $0x1a0] ss:$8 sps:$4 sm:$0xff]  }
 0x2d5   : > { %v2527_v15 = vpack.c.bf16 %v1536_v14, %v1536_v14  ;;  %v7016_v14 = vld [vmem:[%s8998_s4 + $0x1a4] ss:$8 sps:$4 sm:$0xff]  }
 0x2d7   : > { %2301 = vmatpush1.bf16.msra.mxu0 %v6895_v59  ;;  %v7021_v59 = vld [vmem:[%s8999_s5 + $0x150] sm:$0xff]  }
 0x2d8   : > { %2302 = vmatprep.subr.bf16.mxu0 %v7182_v2 }
 0x2db   : > { %2303 = vmatpush1.bf16.msra.mxu0 %v6896_v7  ;;  %v7025_v7 = vld [vmem:[%s8999_s5 + $0x160] sm:$0xff]  }
 0x2dc   : > { %2304 = vmatprep.subr.bf16.mxu0 %v7182_v2 }
 0x2df   : > { %2305 = vmatpush1.bf16.msra.mxu0 %v6897_v17  ;;  %v7027_v17 = vld [vmem:[%s8999_s5 + $0x168] sm:$0xff]  }
 0x2e0   : > { %2306 = vmatprep.subr.bf16.mxu0 %v7182_v2 }
 0x2e3   : > { %2307 = vmatpush1.bf16.msra.mxu0 %v6898_v19  ;;  %v7029_v19 = vld [vmem:[%s8999_s5 + $0x170] sm:$0xff]  }
 0x2e4   : > { %2308 = vmatprep.subr.bf16.mxu0 %v7182_v2 }
 0x2e7   : > { %2309 = vmatpush1.bf16.msra.mxu0 %v6899_v22  ;;  %v7031_v22 = vld [vmem:[%s8999_s5 + $0x178] sm:$0xff]  }
 0x2e8   : > { %2310 = vmatprep.subr.bf16.mxu0 %v7182_v2 }
 0x2eb   : > { %2311 = vmatpush1.bf16.msra.mxu0 %v6900_v21  ;;  %v5630_v21 = vld [vmem:[%s9003_s9] ss:$0 sm:$0xff] }
 0x2ec   : > { %2312 = vmatprep.subr.bf16.mxu0 %v7182_v2 }
 0x2ef   : > { %2313 = vmatpush1.bf16.msra.mxu0 %v6901_v23  ;;  %v7033_v23 = vld [vmem:[%s8999_s5 + $0x180] sm:$0xff]  }
 0x2f0   : > { %2314 = vmatprep.subr.bf16.mxu0 %v7182_v2 }
 0x2f3   : > { %2315 = vmatpush1.bf16.msra.mxu0 %v6902_v24 }
 0x2f4   : > { %2316 = vmatprep.subr.bf16.mxu0 %v7182_v2 }
 0x2f7   : > { %2317 = vmatpush1.bf16.msra.mxu0 %v6903_v25 }
 0x2f8   : > { %2318 = vmatprep.subr.bf16.mxu0 %v7182_v2 }
 0x2fb   : > { %2319 = vmatpush1.bf16.msra.mxu0 %v6904_v26 }
 0x2fc   : > { %2320 = vmatprep.subr.bf16.mxu0 %v7182_v2 }
 0x2ff   : > { %2321 = vmatpush1.bf16.msra.mxu0 %v6905_v31  ;;  %v7035_v31 = vld [vmem:[%s8999_s5 + $0x188] sm:$0xff]  }
 0x300   : > { %2322 = vmatprep.subr.bf16.mxu0 %v7182_v2 }
 0x303   : > { %2323 = vmatpush1.bf16.msra.mxu0 %v6906_v38  ;;  %v6951_v38 = vld [vmem:[%s8998_s4 + $0x50] ss:$8 sps:$4 sm:$0xff]  }
 0x304   : > { %2324 = vmatprep.subr.bf16.mxu0 %v7182_v2 }
 0x307   : > { %2325 = vmatpush1.bf16.msra.mxu0 %v6907_v37  ;;  %v6959_v37 = vld [vmem:[%s8998_s4 + $0x74] ss:$8 sps:$4 sm:$0xff]  }
 0x308   : > { %2457 = vmatprep.subr.bf16.mxu0 %v7182_v2 }
 0x30a   : > { %2331 = vmatmul.mubr.bf16.vlgmr.msra.gmra.mrb[44].mxu0 %v2209_v43  ;;  %v6963_v43 = vld [vmem:[%s8998_s4 + $0x90] ss:$8 sps:$4 sm:$0xff]  }
 0x30b   : > { %2458 = vmatpush1.bf16.msra.mxu0 %v6908_v42  ;;  %5845 = vmatprep.mubr.msk.bf16.mxu0 %vm917_vm2, %v2369_v44  ;;  %v6965_v42 = vld [vmem:[%s8998_s4 + $0x94] ss:$8 sps:$4 sm:$0xff]   ;;  %v6968_v44 = vld [vmem:[%s8998_s4 + $0xa4] ss:$8 sps:$4 sm:$0xff]  }
 0x30c   : > { %2459 = vmatprep.subr.bf16.mxu0 %v7182_v2 }
 0x30f   : > { %2460 = vmatpush1.bf16.msra.mxu0 %v6909_v4  ;;  %v6966_v4 = vld [vmem:[%s8998_s4 + $0xa0] ss:$8 sps:$4 sm:$0xff]  }
 0x310   : > { %2461 = vmatprep.subr.bf16.mxu0 %v7182_v2 }
 0x313   : > { %2462 = vmatpush1.bf16.msra.mxu0 %v6910_v11  ;;  %v6971_v11 = vld [vmem:[%s8998_s4 + $0xb4] ss:$8 sps:$4 sm:$0xff]  }
 0x314   : > { %2463 = vmatprep.subr.bf16.mxu0 %v7182_v2 }
 0x317   : > { %2464 = vmatpush1.bf16.msra.mxu0 %v6911_v45  ;;  %v6969_v45 = vld [vmem:[%s8998_s4 + $0xb0] ss:$8 sps:$4 sm:$0xff]  }
 0x318   : > { %2465 = vmatprep.subr.bf16.mxu0 %v7182_v2 }
 0x31b   : > { %2466 = vmatpush1.bf16.msra.mxu0 %v6912_v46  ;;  %v6974_v46 = vld [vmem:[%s8998_s4 + $0xc4] ss:$8 sps:$4 sm:$0xff]  }
 0x31c   : > { %2467 = vmatprep.subr.bf16.mxu0 %v7182_v2 }
 0x31f   : > { %2468 = vmatpush1.bf16.msra.mxu0 %v6913_v47  ;;  %v6972_v47 = vld [vmem:[%s8998_s4 + $0xc0] ss:$8 sps:$4 sm:$0xff]  }
 0x320   : > { %2469 = vmatprep.subr.bf16.mxu0 %v7182_v2 }
 0x323   : > { %2470 = vmatpush1.bf16.msra.mxu0 %v6914_v48  ;;  %v6977_v48 = vld [vmem:[%s8998_s4 + $0xd4] ss:$8 sps:$4 sm:$0xff]  }
 0x324   : > { %2471 = vmatprep.subr.bf16.mxu0 %v7182_v2 }
 0x327   : > { %2472 = vmatpush1.bf16.msra.mxu0 %v6915_v49  ;;  %v6975_v49 = vld [vmem:[%s8998_s4 + $0xd0] ss:$8 sps:$4 sm:$0xff]  }
 0x328   : > { %2473 = vmatprep.subr.bf16.mxu0 %v7182_v2 }
 0x32b   : > { %2474 = vmatpush1.bf16.msra.mxu0 %v6916_v51  ;;  %v6980_v51 = vld [vmem:[%s8998_s4 + $0xe4] ss:$8 sps:$4 sm:$0xff]  }
 0x32c   : > { %2475 = vmatprep.subr.bf16.mxu0 %v7182_v2 }
 0x32f   : > { %2476 = vmatpush1.bf16.msra.mxu0 %v6917_v52  ;;  %v6978_v52 = vld [vmem:[%s8998_s4 + $0xe0] ss:$8 sps:$4 sm:$0xff]  }
 0x330   : > { %2477 = vmatprep.subr.bf16.mxu0 %v7182_v2 }
 0x333   : > { %2478 = vmatpush1.bf16.msra.mxu0 %v6918_v53  ;;  %v6983_v53 = vld [vmem:[%s8998_s4 + $0xf4] ss:$8 sps:$4 sm:$0xff]  }
 0x334   : > { %2479 = vmatprep.subr.bf16.mxu0 %v7182_v2 }
 0x337   : > { %2480 = vmatpush1.bf16.msra.mxu0 %v6919_v50  ;;  %v6981_v50 = vld [vmem:[%s8998_s4 + $0xf0] ss:$8 sps:$4 sm:$0xff]  }
 0x338   : > { %2481 = vmatprep.subr.bf16.mxu0 %v7182_v2 }
 0x33b   : > { %2482 = vmatpush1.bf16.msra.mxu0 %v6920_v55  ;;  %v6986_v55 = vld [vmem:[%s8998_s4 + $0x104] ss:$8 sps:$4 sm:$0xff]  }
 0x33c   : > { %2483 = vmatprep.subr.bf16.mxu0 %v7182_v2 }
 0x33f   : > { %2484 = vmatpush1.bf16.msra.mxu0 %v6921_v56  ;;  %v6984_v56 = vld [vmem:[%s8998_s4 + $0x100] ss:$8 sps:$4 sm:$0xff]  }
 0x340   : > { %2616 = vmatprep.subr.bf16.mxu0 %v7182_v2 }
 0x342   : > { %2490 = vmatmul.mubr.bf16.vlgmr.msra.gmra.mrb[44].mxu0 %v2368_v60  ;;  %v6990_v60 = vld [vmem:[%s8998_s4 + $0x120] ss:$8 sps:$4 sm:$0xff]  }
 0x343   : > { %2617 = vmatpush1.bf16.msra.mxu0 %v6922_v58  ;;  %5888 = vmatprep.mubr.msk.bf16.mxu0 %vm917_vm2, %v2528_v61  ;;  %v6992_v58 = vld [vmem:[%s8998_s4 + $0x124] ss:$8 sps:$4 sm:$0xff]   ;;  %v6995_v61 = vld [vmem:[%s8998_s4 + $0x134] ss:$8 sps:$4 sm:$0xff]  }
 0x344   : > { %2618 = vmatprep.subr.bf16.mxu0 %v7182_v2 }
 0x347   : > { %2619 = vmatpush1.bf16.msra.mxu0 %v6923_v10  ;;  %v6993_v10 = vld [vmem:[%s8998_s4 + $0x130] ss:$8 sps:$4 sm:$0xff]  }
 0x348   : > { %2620 = vmatprep.subr.bf16.mxu0 %v7182_v2 }
 0x34b   : > { %2621 = vmatpush1.bf16.msra.mxu0 %v6924_v20  ;;  %v6998_v20 = vld [vmem:[%s8998_s4 + $0x144] ss:$8 sps:$4 sm:$0xff]  }
 0x34c   : > { %2622 = vmatprep.subr.bf16.mxu0 %v7182_v2 }
 0x34f   : > { %2623 = vmatpush1.bf16.msra.mxu0 %v6925_v62  ;;  %v6996_v62 = vld [vmem:[%s8998_s4 + $0x140] ss:$8 sps:$4 sm:$0xff]  }
 0x350   : > { %2624 = vmatprep.subr.bf16.mxu0 %v7182_v2 }
 0x353   : > { %2625 = vmatpush1.bf16.msra.mxu0 %v6926_v63  ;;  %v7001_v63 = vld [vmem:[%s8998_s4 + $0x154] ss:$8 sps:$4 sm:$0xff]  }
 0x354   : > { %2626 = vmatprep.subr.bf16.mxu0 %v7182_v2 }
 0x357   : > { %2627 = vmatpush1.bf16.msra.mxu0 %v6927_v0  ;;  %v6999_v0 = vld [vmem:[%s8998_s4 + $0x150] ss:$8 sps:$4 sm:$0xff]  }
 0x358   : > { %2628 = vmatprep.subr.bf16.mxu0 %v7182_v2 }
 0x35b   : > { %2629 = vmatpush1.bf16.msra.mxu0 %v6928_v1  ;;  %v7004_v1 = vld [vmem:[%s8998_s4 + $0x164] ss:$8 sps:$4 sm:$0xff]  }
 0x35c   : > { %2630 = vmatprep.subr.bf16.mxu0 %v7182_v2 }
 0x35f   : > { %2631 = vmatpush1.bf16.msra.mxu0 %v6929_v3  ;;  %v7002_v3 = vld [vmem:[%s8998_s4 + $0x160] ss:$8 sps:$4 sm:$0xff]  }
 0x360   : > { %2632 = vmatprep.subr.bf16.mxu0 %v7182_v2 }
 0x363   : > { %2633 = vmatpush1.bf16.msra.mxu0 %v6930_v5  ;;  %v7007_v5 = vld [vmem:[%s8998_s4 + $0x174] ss:$8 sps:$4 sm:$0xff]  }
 0x364   : > { %2634 = vmatprep.subr.bf16.mxu0 %v7182_v2 }
 0x367   : > { %2635 = vmatpush1.bf16.msra.mxu0 %v6931_v6  ;;  %v7005_v6 = vld [vmem:[%s8998_s4 + $0x170] ss:$8 sps:$4 sm:$0xff]  }
 0x368   : > { %2636 = vmatprep.subr.bf16.mxu0 %v7182_v2 }
 0x36b   : > { %2637 = vmatpush1.bf16.msra.mxu0 %v6932_v8  ;;  %v7010_v8 = vld [vmem:[%s8998_s4 + $0x184] ss:$8 sps:$4 sm:$0xff]  }
 0x36c   : > { %2638 = vmatprep.subr.bf16.mxu0 %v7182_v2 }
 0x36f   : > { %2639 = vmatpush1.bf16.msra.mxu0 %v6933_v9  ;;  %v7008_v9 = vld [vmem:[%s8998_s4 + $0x180] ss:$8 sps:$4 sm:$0xff]  }
 0x370   : > { %2640 = vmatprep.subr.bf16.mxu0 %v7182_v2 }
 0x373   : > { %2641 = vmatpush1.bf16.msra.mxu0 %v6934_v12  ;;  %v7013_v12 = vld [vmem:[%s8998_s4 + $0x194] ss:$8 sps:$4 sm:$0xff]  }
 0x374   : > { %2642 = vmatprep.subr.bf16.mxu0 %v7182_v2 }
 0x377   : > { %2643 = vmatpush1.bf16.msra.mxu0 %v6935_v13  ;;  %v7011_v13 = vld [vmem:[%s8998_s4 + $0x190] ss:$8 sps:$4 sm:$0xff]  }
 0x378   : > { %4027 = vmatprep.subr.bf16.mxu0 %v7182_v2 }
 0x37a   : > { %2649 = vmatmul.mubr.bf16.vlgmr.msra.gmra.mrb[44].mxu0 %v2527_v15  ;;  %v7037_v15 = vld [vmem:[%s8999_s5 + $0x190] sm:$0xff]  }
 0x37b   : > { %4028 = vmatpush1.bf16.msra.mxu0 %v7021_v59  ;;  %v7019_v59 = vld [vmem:[%s8998_s4 + $0x1b4] ss:$8 sps:$4 sm:$0xff]  }
 0x37c   : > { %4029 = vmatprep.subr.bf16.mxu0 %v7182_v2 }
 0x37f   : > { %4030 = vmatpush1.bf16.msra.mxu0 %v7023_v18  ;;  %v7039_v18 = vld [vmem:[%s8999_s5 + $0x198] sm:$0xff]  }
 0x380   : > { %4031 = vmatprep.subr.bf16.mxu0 %v7182_v2 }
 0x383   : > { %4032 = vmatpush1.bf16.msra.mxu0 %v7025_v7  ;;  %v7017_v7 = vld [vmem:[%s8998_s4 + $0x1b0] ss:$8 sps:$4 sm:$0xff]  }
 0x384   : > { %4033 = vmatprep.subr.bf16.mxu0 %v7182_v2 }
 0x387   : > { %4034 = vmatpush1.bf16.msra.mxu0 %v7027_v17  ;;  %v7041_v17 = vld [vmem:[%s8999_s5 + $0x1a0] sm:$0xff]  }
 0x388   : > { %4035 = vmatprep.subr.bf16.mxu0 %v7182_v2 }
 0x38b   : > { %4036 = vmatpush1.bf16.msra.mxu0 %v7029_v19  ;;  %v7020_v19 = vld [vmem:[%s8999_s5 + $0xe0] sm:$0xff]  }
 0x38c   : > { %4037 = vmatprep.subr.bf16.mxu0 %v7182_v2 }
 0x38f   : > { %4038 = vmatpush1.bf16.msra.mxu0 %v7031_v22  ;;  %v7043_v22 = vld [vmem:[%s8999_s5 + $0x1a8] sm:$0xff]  }
 0x390   : > { %4039 = vmatprep.subr.bf16.mxu0 %v7182_v2 }
 0x393   : > { %4040 = vmatpush1.bf16.msra.mxu0 %v7033_v23  ;;  %v7045_v23 = vld [vmem:[%s8999_s5 + $0x1b0] sm:$0xff]  }
 0x394   : > { %4041 = vmatprep.subr.bf16.mxu0 %v7182_v2 }
 0x397   : > { %4042 = vmatpush1.bf16.msra.mxu0 %v7035_v31  ;;  %v7032_v31 = vld [vmem:[%s8999_s5 + $0x110] sm:$0xff]  }
 0x398   : > { %4043 = vmatprep.subr.bf16.mxu0 %v7182_v2 }
 0x39b   : > { %4044 = vmatpush1.bf16.msra.mxu0 %v7037_v15  ;;  %v7057_v15 = vld [vmem:[%s8999_s5 + $0x90] sm:$0xff]  }
 0x39c   : > { %4045 = vmatprep.subr.bf16.mxu0 %v7182_v2 }
 0x39f   : > { %4046 = vmatpush1.bf16.msra.mxu0 %v7039_v18  ;;  %v7060_v18 = vld [vmem:[%s8999_s5 + $0x1f0] sm:$0xff]  }
 0x3a0   : > { %4047 = vmatprep.subr.bf16.mxu0 %v7182_v2 }
 0x3a3   : > { %4048 = vmatpush1.bf16.msra.mxu0 %v7041_v17 }
 0x3a4   : > { %4049 = vmatprep.subr.bf16.mxu0 %v7182_v2 }
 0x3a7   : > { %4050 = vmatpush1.bf16.msra.mxu0 %v7043_v22 }
 0x3a8   : > { %4051 = vmatprep.subr.bf16.mxu0 %v7182_v2 }
 0x3ab   : > { %4052 = vmatpush1.bf16.msra.mxu0 %v7045_v23 }
 0x3ac   : > { %4053 = vmatprep.subr.bf16.mxu0 %v7182_v2 }
 0x44d   : > { %v2650_v24 = vpop.f32.mrb[44].mxu0 }
 0x44e   : > { %v6601_v25 = vadd.f32 %v5630_v21, %v2650_v24  ;;  %v2652_v26 = vpop.f32.mrb[45].mxu0  ;;  %v7022_v21 = vld [vmem:[%s8999_s5 + $0xe8] sm:$0xff]   ;;  %v7024_v24 = vld [vmem:[%s8999_s5 + $0xf0] sm:$0xff]  }
 0x44f   : > { %v2653_v28 = vpop.f32.mrb[46].mxu0  ;;  %v7026_v26 = vld [vmem:[%s8999_s5 + $0xf8] sm:$0xff]  }
 0x450   : > { %v8172_v35 = vpack.c.bf16 %v6601_v25, %v6601_v25  ;;  %v2654_v36 = vpop.f32.mrb[47].mxu0  ;;  %v7047_v25 = vld [vmem:[%s8999_s5 + $0x1b8] sm:$0xff]   ;;  %v7028_v28 = vld [vmem:[%s8999_s5 + $0x100] sm:$0xff]  }
 0x451   : > { %4054 = vmatpush1.bf16.msra.mxu0 %v7047_v25  ;;  %v7036_v36 = vld [vmem:[%s8999_s5 + $0x120] sm:$0xff]   ;;  %v7063_v25 = vld [vmem:[%s8999_s5 + $0xa8] sm:$0xff]  }
 0x452   : > { %5897 = vmatmul.mubr.msk.bf16.vlgmr.msra.gmra.mrb[20].mxu1 %vm2718_vm3, %v8172_v35  ;;  %4388 = vmatprep.subr.bf16.mxu0 %v7182_v2 }
 0x453   : > { %2815 = vmatpush1.bf16.msra.mxu1 %v6948_v30  ;;  %2846 = vmatprep.mubr.bf16.mxu1 %v7182_v2  ;;  %v7030_v30 = vld [vmem:[%s8999_s5 + $0x108] sm:$0xff]  }
 0x454   : > { %2816 = vmatprep.subr.bf16.mxu1 %v6953_v34  ;;  %v7038_v34 = vld [vmem:[%s8999_s5 + $0x128] sm:$0xff]  }
 0x457   : > { %2817 = vmatpush1.bf16.msra.mxu1 %v6951_v38  ;;  %v7040_v38 = vld [vmem:[%s8999_s5 + $0x130] sm:$0xff]  }
 0x458   : > { %2818 = vmatprep.subr.bf16.mxu1 %v6956_v39  ;;  %v7042_v39 = vld [vmem:[%s8999_s5 + $0x138] sm:$0xff]  }
 0x45b   : > { %2819 = vmatpush1.bf16.msra.mxu1 %v6954_v27  ;;  %v7044_v27 = vld [vmem:[%s8999_s5 + $0x140] sm:$0xff]  }
 0x45c   : > { %2820 = vmatprep.subr.bf16.mxu1 %v6959_v37  ;;  %v7046_v37 = vld [vmem:[%s8999_s5 + $0x148] sm:$0xff]  }
 0x45f   : > { %2821 = vmatpush1.bf16.msra.mxu1 %v6957_v29 }
 0x460   : > { %2906 = vmatprep.subr.bf16.mxu1 %v6962_v40 }
 0x462   : > { %5914 = vmatmul.mubr.msk.bf16.vlgmr.msra.gmra.mrb[24].mxu1 %vm2718_vm3, %v8172_v35 }
 0x463   : > { %2907 = vmatpush1.bf16.msra.mxu1 %v6960_v41  ;;  %2938 = vmatprep.mubr.bf16.mxu1 %v7182_v2 }
 0x464   : > { %2908 = vmatprep.subr.bf16.mxu1 %v6965_v42 }
 0x467   : > { %2909 = vmatpush1.bf16.msra.mxu1 %v6963_v43  ;;  %v2666_v43 = vld [vmem:[%s9004_s10] sm:$0x3] }
 0x468   : > { %2910 = vmatprep.subr.bf16.mxu1 %v6968_v44  ;;  %v8418_v44 = vrot.slane %v2666_v43, %v7503_v32 }
 0x46b   : > { %2911 = vmatpush1.bf16.msra.mxu1 %v6966_v4  ;;  %v8421_v4 = vrot.slane %v2666_v43, %v7505_v33 }
 0x46c   : > { %2912 = vmatprep.subr.bf16.mxu1 %v6971_v11 }
 0x46f   : > { %2913 = vmatpush1.bf16.msra.mxu1 %v6969_v45 }
 0x470   : > { %2998 = vmatprep.subr.bf16.mxu1 %v6974_v46 }
 0x472   : > { %5931 = vmatmul.mubr.msk.bf16.vlgmr.msra.gmra.mrb[28].mxu1 %vm2718_vm3, %v8172_v35 }
 0x473   : > { %2999 = vmatpush1.bf16.msra.mxu1 %v6972_v47  ;;  %3030 = vmatprep.mubr.bf16.mxu1 %v7182_v2 }
 0x474   : > { %3000 = vmatprep.subr.bf16.mxu1 %v6977_v48 }
 0x477   : > { %3001 = vmatpush1.bf16.msra.mxu1 %v6975_v49 }
 0x478   : > { %3002 = vmatprep.subr.bf16.mxu1 %v6980_v51 }
 0x47b   : > { %3003 = vmatpush1.bf16.msra.mxu1 %v6978_v52 }
 0x47c   : > { %3004 = vmatprep.subr.bf16.mxu1 %v6983_v53 }
 0x47f   : > { %3005 = vmatpush1.bf16.msra.mxu1 %v6981_v50 }
 0x480   : > { %3090 = vmatprep.subr.bf16.mxu1 %v6986_v55 }
 0x482   : > { %5948 = vmatmul.mubr.msk.bf16.vlgmr.msra.gmra.mrb[32].mxu1 %vm2718_vm3, %v8172_v35 }
 0x483   : > { %3091 = vmatpush1.bf16.msra.mxu1 %v6984_v56  ;;  %3122 = vmatprep.mubr.bf16.mxu1 %v7182_v2 }
 0x484   : > { %3092 = vmatprep.subr.bf16.mxu1 %v6989_v57  ;;  %v7048_v57 = vld [vmem:[%s8999_s5 + $0x1c0] sm:$0xff]  }
 0x487   : > { %3093 = vmatpush1.bf16.msra.mxu1 %v6987_v54  ;;  %v7049_v54 = vld [vmem:[%s8999_s5 + $0x70] sm:$0xff]  }
 0x488   : > { %3094 = vmatprep.subr.bf16.mxu1 %v6992_v58  ;;  %v7050_v58 = vld [vmem:[%s8999_s5 + $0x1c8] sm:$0xff]  }
 0x48b   : > { %3095 = vmatpush1.bf16.msra.mxu1 %v6990_v60  ;;  %v7051_v60 = vld [vmem:[%s8999_s5 + $0x78] sm:$0xff]  }
 0x48c   : > { %3096 = vmatprep.subr.bf16.mxu1 %v6995_v61  ;;  %v7052_v61 = vld [vmem:[%s8999_s5 + $0x1d0] sm:$0xff]  }
 0x48f   : > { %3097 = vmatpush1.bf16.msra.mxu1 %v6993_v10  ;;  %v7053_v10 = vld [vmem:[%s8999_s5 + $0x80] sm:$0xff]  }
 0x490   : > { %3182 = vmatprep.subr.bf16.mxu1 %v6998_v20 }
 0x492   : > { %5965 = vmatmul.mubr.msk.bf16.vlgmr.msra.gmra.mrb[36].mxu1 %vm2718_vm3, %v8172_v35 }
 0x493   : > { %3183 = vmatpush1.bf16.msra.mxu1 %v6996_v62  ;;  %3214 = vmatprep.mubr.bf16.mxu1 %v7182_v2 }
 0x494   : > { %3184 = vmatprep.subr.bf16.mxu1 %v7001_v63 }
 0x497   : > { %3185 = vmatpush1.bf16.msra.mxu1 %v6999_v0 }
 0x498   : > { %3186 = vmatprep.subr.bf16.mxu1 %v7004_v1 }
 0x49b   : > { %3187 = vmatpush1.bf16.msra.mxu1 %v7002_v3  ;;  %v7054_v3 = vld [vmem:[%s8999_s5 + $0x1d8] sm:$0xff]  }
 0x49c   : > { %3188 = vmatprep.subr.bf16.mxu1 %v7007_v5  ;;  %v7055_v5 = vld [vmem:[%s8999_s5 + $0x88] sm:$0xff]  }
 0x49f   : > { %3189 = vmatpush1.bf16.msra.mxu1 %v7005_v6 }
 0x4a0   : > { %3274 = vmatprep.subr.bf16.mxu1 %v7010_v8 }
 0x4a2   : > { %5982 = vmatmul.mubr.msk.bf16.vlgmr.msra.gmra.mrb[40].mxu1 %vm2718_vm3, %v8172_v35 }
 0x4a3   : > { %3275 = vmatpush1.bf16.msra.mxu1 %v7008_v9  ;;  %3306 = vmatprep.mubr.bf16.mxu1 %v7182_v2 }
 0x4a4   : > { %3276 = vmatprep.subr.bf16.mxu1 %v7013_v12 }
 0x4a7   : > { %3277 = vmatpush1.bf16.msra.mxu1 %v7011_v13 }
 0x4a8   : > { %3278 = vmatprep.subr.bf16.mxu1 %v7016_v14  ;;  %v7056_v14 = vld [vmem:[%s8999_s5 + $0x1e0] sm:$0xff]  }
 0x4ab   : > { %3279 = vmatpush1.bf16.msra.mxu1 %v7014_v16  ;;  %v7058_v16 = vld [vmem:[%s8999_s5 + $0x1e8] sm:$0xff]  }
 0x4ac   : > { %3280 = vmatprep.subr.bf16.mxu1 %v7019_v59  ;;  %v7059_v59 = vld [vmem:[%s8999_s5 + $0x98] sm:$0xff]  }
 0x4af   : > { %3281 = vmatpush1.bf16.msra.mxu1 %v7017_v7  ;;  %v7061_v7 = vld [vmem:[%s8999_s5 + $0xa0] sm:$0xff]  }
 0x4b0   : > { %3457 = vmatprep.subr.bf16.mxu1 %v7182_v2 }
 0x4b2   : > { %5999 = vmatmul.mubr.msk.bf16.vlgmr.msra.gmra.mrb[44].mxu1 %vm2718_vm3, %v8172_v35  ;;  %v7034_v35 = vld [vmem:[%s8999_s5 + $0x118] sm:$0xff]  }
 0x4b3   : > { %3458 = vmatpush1.bf16.msra.mxu1 %v7020_v19 }
 0x4b4   : > { %3459 = vmatprep.subr.bf16.mxu1 %v7182_v2 }
 0x4b7   : > { %3460 = vmatpush1.bf16.msra.mxu1 %v7022_v21 }
 0x4b8   : > { %3461 = vmatprep.subr.bf16.mxu1 %v7182_v2 }
 0x4bb   : > { %3462 = vmatpush1.bf16.msra.mxu1 %v7024_v24  ;;  %v7062_v24 = vld [vmem:[%s8999_s5 + $0x1f8] sm:$0xff]  }
 0x4bc   : > { %3463 = vmatprep.subr.bf16.mxu1 %v7182_v2 }
 0x4bf   : > { %3464 = vmatpush1.bf16.msra.mxu1 %v7026_v26 }
 0x4c0   : > { %3465 = vmatprep.subr.bf16.mxu1 %v7182_v2 }
 0x4c3   : > { %3466 = vmatpush1.bf16.msra.mxu1 %v7028_v28 }
 0x4c4   : > { %3467 = vmatprep.subr.bf16.mxu1 %v7182_v2 }
 0x4c7   : > { %3468 = vmatpush1.bf16.msra.mxu1 %v7030_v30 }
 0x4c8   : > { %3469 = vmatprep.subr.bf16.mxu1 %v7182_v2 }
 0x4cb   : > { %3470 = vmatpush1.bf16.msra.mxu1 %v7032_v31 }
 0x4cc   : > { %3471 = vmatprep.subr.bf16.mxu1 %v7182_v2 }
 0x4cf   : > { %3472 = vmatpush1.bf16.msra.mxu1 %v7034_v35 }
 0x4d0   : > { %3473 = vmatprep.subr.bf16.mxu1 %v7182_v2 }
 0x4d3   : > { %3474 = vmatpush1.bf16.msra.mxu1 %v7036_v36  ;;  %v7064_v36 = vld [vmem:[%s8999_s5 + $0x200] sm:$0xff]  }
 0x4d4   : > { %3475 = vmatprep.subr.bf16.mxu1 %v7182_v2 }
 0x4d7   : > { %3476 = vmatpush1.bf16.msra.mxu1 %v7038_v34  ;;  %v7065_v34 = vld [vmem:[%s8999_s5 + $0xb0] sm:$0xff]  }
 0x4d8   : > { %3477 = vmatprep.subr.bf16.mxu1 %v7182_v2 }
 0x4db   : > { %3478 = vmatpush1.bf16.msra.mxu1 %v7040_v38  ;;  %v7066_v38 = vld [vmem:[%s8999_s5 + $0x208] sm:$0xff]  }
 0x4dc   : > { %3479 = vmatprep.subr.bf16.mxu1 %v7182_v2 }
 0x4df   : > { %3480 = vmatpush1.bf16.msra.mxu1 %v7042_v39  ;;  %v7067_v39 = vld [vmem:[%s8999_s5 + $0xb8] sm:$0xff]  }
 0x4e0   : > { %3481 = vmatprep.subr.bf16.mxu1 %v7182_v2 }
 0x4e3   : > { %3482 = vmatpush1.bf16.msra.mxu1 %v7044_v27  ;;  %v7068_v27 = vld [vmem:[%s8999_s5 + $0x210] sm:$0xff]  }
 0x4e4   : > { %3483 = vmatprep.subr.bf16.mxu1 %v7182_v2 }
 0x4e7   : > { %3484 = vmatpush1.bf16.msra.mxu1 %v7046_v37  ;;  %v7069_v37 = vld [vmem:[%s8999_s5 + $0xc0] sm:$0xff]  }
 0x4e8   : > { %3676 = vmatprep.subr.bf16.mxu1 %v7182_v2 }
 0x525   : > { %v2756_v29 = vpop.f32.mrb[20].mxu1 }
 0x526   : > { %v2758_v40 = vpop.f32.mrb[21].mxu1  ;;  %v2757_v11 = vadd.f32 %v2756_v29, %v8418_v44 }
 0x527   : > { %v2760_v41 = vpop.f32.mrb[22].mxu1  ;;  %v2759_v45 = vadd.f32 %v2758_v40, %v8421_v4 }
 0x528   : > { %v2761_v42 = vpop.f32.mrb[23].mxu1  ;;  %v2763_v52 = vmax.f32 %v2757_v11, 0.0  ;;  %v7070_v11 = vld [vmem:[%s8999_s5 + $0x218] sm:$0xff]  }
 0x529   : > { %v2764_v55 = vmax.f32 %v2759_v45, 0.0  ;;  %v7071_v45 = vld [vmem:[%s8999_s5 + $0xc8] sm:$0xff]  }
 0x535   : > { %v2848_v46 = vpop.f32.mrb[24].mxu1 }
 0x536   : > { %v2849_v47 = vadd.f32 %v2848_v46, %v8418_v44  ;;  %v2850_v48 = vpop.f32.mrb[25].mxu1 }
 0x537   : > { %v2851_v49 = vadd.f32 %v2850_v48, %v8421_v4  ;;  %v2852_v51 = vpop.f32.mrb[26].mxu1 }
 0x538   : > { %v2855_v53 = vmax.f32 %v2849_v47, 0.0  ;;  %v2853_v50 = vpop.f32.mrb[27].mxu1 }
 0x539   : > { %v2856_v32 = vmax.f32 %v2851_v49, 0.0  ;;  %v7074_v50 = vld [vmem:[%s8999_s5 + $0x228] sm:$0xff]  }
 0x53a   : > { %v8427_v56 = vpack.c.bf16 %v2855_v53, %v2763_v52  ;;  %v7072_v52 = vld [vmem:[%s8999_s5 + $0x220] sm:$0xff]  }
 0x53b   : > { %v8429_v33 = vpack.c.bf16 %v2856_v32, %v2764_v55  ;;  %v7075_v55 = vld [vmem:[%s8999_s5 + $0xd8] sm:$0xff]  }
 0x53d   : > { %6043 = vmatprep.mubr.msk.bf16.mxu1 %vm917_vm2, %v8429_v33  ;;  %6152 = vmatprep.mubr.msk.bf16.mxu0 %vm917_vm2, %v8429_v33 }
 0x53e   : > { %3490 = vmatmul.mubr.bf16.vlgmr.msra.gmra.mrb[48].mxu1 %v8427_v56  ;;  %4060 = vmatmul.mubr.bf16.vlgmr.msra.gmra.mrb[48].mxu0 %v8427_v56 }
 0x53f   : > { %3677 = vmatpush1.bf16.msra.mxu1 %v7048_v57  ;;  %4389 = vmatpush1.bf16.msra.mxu0 %v7049_v54 }
 0x540   : > { %3678 = vmatprep.subr.bf16.mxu1 %v7182_v2  ;;  %4390 = vmatprep.subr.bf16.mxu0 %v7182_v2 }
 0x543   : > { %3679 = vmatpush1.bf16.msra.mxu1 %v7050_v58  ;;  %4391 = vmatpush1.bf16.msra.mxu0 %v7051_v60 }
 0x544   : > { %3680 = vmatprep.subr.bf16.mxu1 %v7182_v2  ;;  %4392 = vmatprep.subr.bf16.mxu0 %v7182_v2 }
 0x545   : > { %v2940_v20 = vpop.f32.mrb[28].mxu1 }
 0x546   : > { %v2941_v62 = vadd.f32 %v2940_v20, %v8418_v44  ;;  %v2942_v63 = vpop.f32.mrb[29].mxu1 }
 0x547   : > { %v2943_v0 = vadd.f32 %v2942_v63, %v8421_v4  ;;  %v2944_v1 = vpop.f32.mrb[30].mxu1  ;;  %3681 = vmatpush1.bf16.msra.mxu1 %v7052_v61  ;;  %4393 = vmatpush1.bf16.msra.mxu0 %v7053_v10 }
 0x548   : > { %v2947_v6 = vmax.f32 %v2941_v62, 0.0  ;;  %v2945_v8 = vpop.f32.mrb[31].mxu1  ;;  %3682 = vmatprep.subr.bf16.mxu1 %v7182_v2  ;;  %4394 = vmatprep.subr.bf16.mxu0 %v7182_v2 }
 0x549   : > { %v2948_v9 = vmax.f32 %v2943_v0, 0.0 }
 0x54a   : > { %v8469_v12 = vpack.c.bf16 %v2947_v6, %v2855_v53  ;;  %v7073_v53 = vld [vmem:[%s8999_s5 + $0xd0] sm:$0xff]  }
 0x54b   : > { %v8471_v13 = vpack.c.bf16 %v2948_v9, %v2856_v32  ;;  %3683 = vmatpush1.bf16.msra.mxu1 %v7054_v3  ;;  %4395 = vmatpush1.bf16.msra.mxu0 %v7055_v5 }
 0x54c   : > { %3684 = vmatprep.subr.bf16.mxu1 %v7182_v2  ;;  %4396 = vmatprep.subr.bf16.mxu0 %v7182_v2 }
 0x54f   : > { %3685 = vmatpush1.bf16.msra.mxu1 %v7056_v14  ;;  %4397 = vmatpush1.bf16.msra.mxu0 %v7057_v15 }
 0x550   : > { %3686 = vmatprep.subr.bf16.mxu1 %v7182_v2  ;;  %4398 = vmatprep.subr.bf16.mxu0 %v7182_v2 }
 0x553   : > { %3687 = vmatpush1.bf16.msra.mxu1 %v7058_v16  ;;  %4399 = vmatpush1.bf16.msra.mxu0 %v7059_v59 }
 0x554   : > { %3688 = vmatprep.subr.bf16.mxu1 %v7182_v2  ;;  %4400 = vmatprep.subr.bf16.mxu0 %v7182_v2 }
 0x555   : > { %v3032_v17 = vpop.f32.mrb[32].mxu1 }
 0x556   : > { %v3033_v19 = vadd.f32 %v3032_v17, %v8418_v44  ;;  %v3034_v22 = vpop.f32.mrb[33].mxu1  ;;  %v7104_v17 = vld [vmem:[%s9000_s6] sm:$0xff]  }
 0x557   : > { %v3035_v21 = vadd.f32 %v3034_v22, %v8421_v4  ;;  %v3036_v23 = vpop.f32.mrb[34].mxu1  ;;  %3689 = vmatpush1.bf16.msra.mxu1 %v7060_v18  ;;  %4401 = vmatpush1.bf16.msra.mxu0 %v7061_v7  ;;  %v7078_v7 = vld [vmem:[%s8999_s5 + $0x10] sm:$0xff]   ;;  %v7106_v22 = vld [vmem:[%s9000_s6 + $0x8] sm:$0xff]  }
 0x558   : > { %v3039_v26 = vmax.f32 %v3033_v19, 0.0  ;;  %v3037_v28 = vpop.f32.mrb[35].mxu1  ;;  %3690 = vmatprep.subr.bf16.mxu1 %v7182_v2  ;;  %4402 = vmatprep.subr.bf16.mxu0 %v7182_v2  ;;  %v7079_v19 = vld [vmem:[%s8999_s5 + $0x18] sm:$0xff]   ;;  %v7108_v23 = vld [vmem:[%s9000_s6 + $0x10] sm:$0xff]  }
 0x559   : > { %v3040_v30 = vmax.f32 %v3035_v21, 0.0  ;;  %v7080_v21 = vld [vmem:[%s8999_s5 + $0x20] sm:$0xff]   ;;  %v7110_v28 = vld [vmem:[%s9000_s6 + $0x18] sm:$0xff]  }
 0x55a   : > { %v8507_v31 = vpack.c.bf16 %v3039_v26, %v2947_v6 }
 0x55b   : > { %v8509_v35 = vpack.c.bf16 %v3040_v30, %v2948_v9  ;;  %3691 = vmatpush1.bf16.msra.mxu1 %v7062_v24  ;;  %4403 = vmatpush1.bf16.msra.mxu0 %v7063_v25  ;;  %v7081_v24 = vld [vmem:[%s8999_s5 + $0x28] sm:$0xff]   ;;  %v7184_v25 = vmov 0.0|0.0  }
 0x55c   : > { %3692 = vmatprep.subr.bf16.mxu1 %v7182_v2  ;;  %4404 = vmatprep.subr.bf16.mxu0 %v7182_v2 }
 0x55d   : > { %6044 = vmatprep.mubr.msk.bf16.mxu1 %vm917_vm2, %v8509_v35  ;;  %6153 = vmatprep.mubr.msk.bf16.mxu0 %vm917_vm2, %v8509_v35 }
 0x55e   : > { %3498 = vmatmul.mubr.bf16.gmra.mrb[52].mxu1 %v8507_v31  ;;  %4068 = vmatmul.mubr.bf16.gmra.mrb[52].mxu0 %v8507_v31 }
 0x55f   : > { %3693 = vmatpush1.bf16.msra.mxu1 %v7064_v36  ;;  %4405 = vmatpush1.bf16.msra.mxu0 %v7065_v34  ;;  %v7083_v36 = vld [vmem:[%s8999_s5 + $0x38] sm:$0xff]   ;;  %v7114_v34 = vld [vmem:[%s9000_s6 + $0x28] sm:$0xff]  }
 0x560   : > { %3694 = vmatprep.subr.bf16.mxu1 %v7182_v2  ;;  %4406 = vmatprep.subr.bf16.mxu0 %v7182_v2 }
 0x563   : > { %3695 = vmatpush1.bf16.msra.mxu1 %v7066_v38  ;;  %4407 = vmatpush1.bf16.msra.mxu0 %v7067_v39  ;;  %v7084_v38 = vld [vmem:[%s8999_s5 + $0x40] sm:$0xff]   ;;  %v7085_v39 = vld [vmem:[%s8999_s5 + $0x48] sm:$0xff]  }
 0x564   : > { %3696 = vmatprep.subr.bf16.mxu1 %v7182_v2  ;;  %4408 = vmatprep.subr.bf16.mxu0 %v7182_v2 }
 0x565   : > { %v3124_v29 = vpop.f32.mrb[36].mxu1 }
 0x566   : > { %v3125_v40 = vadd.f32 %v3124_v29, %v8418_v44  ;;  %v3126_v41 = vpop.f32.mrb[37].mxu1  ;;  %v7088_v29 = vld [vmem:[%s8999_s5 + $0x60] sm:$0xff]  }
 0x567   : > { %v3127_v42 = vadd.f32 %v3126_v41, %v8421_v4  ;;  %v3128_v43 = vpop.f32.mrb[38].mxu1  ;;  %3697 = vmatpush1.bf16.msra.mxu1 %v7068_v27  ;;  %4409 = vmatpush1.bf16.msra.mxu0 %v7069_v37  ;;  %v7086_v27 = vld [vmem:[%s8999_s5 + $0x50] sm:$0xff]   ;;  %v7087_v37 = vld [vmem:[%s8999_s5 + $0x58] sm:$0xff]  }
 0x568   : > { %v3131_v46 = vmax.f32 %v3125_v40, 0.0  ;;  %v3129_v47 = vpop.f32.mrb[39].mxu1  ;;  %3698 = vmatprep.subr.bf16.mxu1 %v7182_v2  ;;  %4410 = vmatprep.subr.bf16.mxu0 %v7182_v2  ;;  %v7089_v40 = vld [vmem:[%s8999_s5 + $0x68] sm:$0xff]   ;;  %v7090_v41 = vld [vmem:[%s8999_s5 + $0x230] sm:$0xff]   ;;  %v7092_v43 = vld [vmem:[%s8999_s5 + $0x240] sm:$0xff]  }
 0x569   : > { %v3132_v48 = vmax.f32 %v3127_v42, 0.0  ;;  %v7091_v42 = vld [vmem:[%s8999_s5 + $0x238] sm:$0xff]   ;;  %v7097_v47 = vld [vmem:[%s8999_s5 + $0x268] sm:$0xff]  }
 0x56a   : > { %v8551_v49 = vpack.c.bf16 %v3131_v46, %v3039_v26  ;;  %v7082_v26 = vld [vmem:[%s8999_s5 + $0x30] sm:$0xff]  }
 0x56b   : > { %v8553_v51 = vpack.c.bf16 %v3132_v48, %v3040_v30  ;;  %3699 = vmatpush1.bf16.msra.mxu1 %v7070_v11  ;;  %4411 = vmatpush1.bf16.msra.mxu0 %v7071_v45  ;;  %v7112_v30 = vld [vmem:[%s9000_s6 + $0x20] sm:$0xff]   ;;  %v7094_v11 = vld [vmem:[%s8999_s5 + $0x250] sm:$0xff]   ;;  %v7095_v45 = vld [vmem:[%s8999_s5 + $0x258] sm:$0xff]  }
 0x56c   : > { %3700 = vmatprep.subr.bf16.mxu1 %v7182_v2  ;;  %4412 = vmatprep.subr.bf16.mxu0 %v7182_v2 }
 0x56f   : > { %3701 = vmatpush1.bf16.msra.mxu1 %v7072_v52  ;;  %4413 = vmatpush1.bf16.msra.mxu0 %v7073_v53  ;;  %v7102_v52 = vld [vmem:[%s8999_s5 + $0x290] sm:$0xff]   ;;  %v7103_v53 = vld [vmem:[%s8999_s5 + $0x298] sm:$0xff]  }
 0x570   : > { %3702 = vmatprep.subr.bf16.mxu1 %v7182_v2  ;;  %4414 = vmatprep.subr.bf16.mxu0 %v7182_v2 }
 0x573   : > { %3703 = vmatpush1.bf16.msra.mxu1 %v7074_v50  ;;  %4415 = vmatpush1.bf16.msra.mxu0 %v7075_v55  ;;  %v7105_v50 = vld [vmem:[%s9000_s6 + $0x38] sm:$0xff]   ;;  %v7107_v55 = vld [vmem:[%s9000_s6 + $0x40] sm:$0xff]  }
 0x574   : > { %3836 = vmatprep.subr.bf16.mxu1 %v7182_v2  ;;  %6457 = vmatprep.subr.bf16.mxu0 %v7104_v17 }
 0x575   : > { %v3216_v32 = vpop.f32.mrb[40].mxu1 }
 0x576   : > { %v3217_v57 = vadd.f32 %v3216_v32, %v8418_v44  ;;  %v3218_v54 = vpop.f32.mrb[41].mxu1  ;;  %v7111_v32 = vld [vmem:[%s9000_s6 + $0x50] sm:$0xff]  }
 0x577   : > { %v3219_v58 = vadd.f32 %v3218_v54, %v8421_v4  ;;  %v3220_v60 = vpop.f32.mrb[42].mxu1 }
 0x578   : > { %v3223_v61 = vmax.f32 %v3217_v57, 0.0  ;;  %v3221_v10 = vpop.f32.mrb[43].mxu1 }
 0x579   : > { %v3224_v20 = vmax.f32 %v3219_v58, 0.0 }
 0x57a   : > { %v8574_v62 = vpack.c.bf16 %v3223_v61, %v3131_v46  ;;  %v7096_v46 = vld [vmem:[%s8999_s5 + $0x260] sm:$0xff]  }
 0x57b   : > { %v8576_v63 = vpack.c.bf16 %v3224_v20, %v3132_v48  ;;  %v7098_v48 = vld [vmem:[%s8999_s5 + $0x270] sm:$0xff]  }
 0x57d   : > { %6045 = vmatprep.mubr.msk.bf16.mxu1 %vm917_vm2, %v8576_v63  ;;  %6154 = vmatprep.mubr.msk.bf16.mxu0 %vm917_vm2, %v8576_v63 }
 0x57e   : > { %3506 = vmatmul.mubr.bf16.gmra.mrb[56].mxu1 %v8574_v62  ;;  %4076 = vmatmul.mubr.bf16.gmra.mrb[56].mxu0 %v8574_v62 }
 0x585   : > { %v3308_v0 = vpop.f32.mrb[44].mxu1 }
 0x586   : > { %v3309_v1 = vadd.f32 %v3308_v0, %v8418_v44  ;;  %v3310_v3 = vpop.f32.mrb[45].mxu1  ;;  %v7076_v44 = vld [vmem:[%s8999_s5] sm:$0xff]  }
 0x587   : > { %v3311_v5 = vadd.f32 %v3310_v3, %v8421_v4  ;;  %v3312_v6 = vpop.f32.mrb[46].mxu1  ;;  %v7077_v4 = vld [vmem:[%s8999_s5 + $0x8] sm:$0xff]  }
 0x588   : > { %v3315_v8 = vmax.f32 %v3309_v1, 0.0  ;;  %v3313_v9 = vpop.f32.mrb[47].mxu1 }
 0x589   : > { %v3316_v14 = vmax.f32 %v3311_v5, 0.0  ;;  %v7115_v5 = vld [vmem:[%s9000_s6 + $0x60] sm:$0xff]  }
 0x58a   : > { %v8586_v15 = vpack.c.bf16 %v3315_v8, %v3223_v61  ;;  %v8592_v18 = vpack.c.bf16 %v3315_v8, %v3315_v8 }
 0x58b   : > { %v8588_v16 = vpack.c.bf16 %v3316_v14, %v3316_v14  ;;  %v8590_v59 = vpack.c.bf16 %v3316_v14, %v3224_v20 }
 0x58d   : > { %6046 = vmatprep.mubr.msk.bf16.mxu1 %vm917_vm2, %v8588_v16  ;;  %6155 = vmatprep.mubr.msk.bf16.mxu0 %vm917_vm2, %v8588_v16 }
 0x58e   : > { %3514 = vmatmul.mubr.bf16.gmra.mrb[60].mxu1 %v8592_v18  ;;  %4084 = vmatmul.mubr.bf16.gmra.mrb[60].mxu0 %v8592_v18 }
 0x58f   : > { %6089 = vmatprep.mubr.msk.bf16.mxu1 %vm917_vm2, %v8429_v33  ;;  %6244 = vmatprep.mubr.msk.bf16.mxu0 %vm917_vm2, %v8471_v13 }
 0x596   : > { %3709 = vmatmul.mubr.bf16.vlgmr.msra.gmra.mrb[64].mxu1 %v8427_v56  ;;  %4421 = vmatmul.mubr.bf16.vlgmr.msra.gmra.mrb[64].mxu0 %v8469_v12 }
 0x597   : > { %3837 = vmatpush1.bf16.msra.mxu1 %v7076_v44  ;;  %6090 = vmatprep.mubr.msk.bf16.mxu1 %vm917_vm2, %v8509_v35  ;;  %v7117_v44 = vld [vmem:[%s9000_s6 + $0x68] sm:$0xff]  }
 0x598   : > { %6245 = vmatprep.mubr.msk.bf16.mxu0 %vm917_vm2, %v8553_v51  ;;  %3838 = vmatprep.subr.bf16.mxu1 %v7182_v2 }
 0x599   : > { %6458 = vmatpush3.bf16.msra.mxu0 %v7104_v17 }
 0x59a   : > { %6459 = vmatprep.subr.bf16.mxu0 %v7106_v22 }
 0x59b   : > { %3839 = vmatpush1.bf16.msra.mxu1 %v7077_v4 }
 0x59c   : > { %3840 = vmatprep.subr.bf16.mxu1 %v7182_v2 }
 0x59d   : > { %6460 = vmatpush3.bf16.msra.mxu0 %v7106_v22 }
 0x59e   : > { %3717 = vmatmul.mubr.bf16.gmra.mrb[68].mxu1 %v8507_v31  ;;  %4429 = vmatmul.mubr.bf16.gmra.mrb[68].mxu0 %v8551_v49 }
 0x59f   : > { %3841 = vmatpush1.bf16.msra.mxu1 %v7078_v7  ;;  %6091 = vmatprep.mubr.msk.bf16.mxu1 %vm917_vm2, %v8576_v63 }
 0x5a0   : > { %6246 = vmatprep.mubr.msk.bf16.mxu0 %vm917_vm2, %v8590_v59  ;;  %3842 = vmatprep.subr.bf16.mxu1 %v7182_v2 }
 0x5a1   : > { %6461 = vmatprep.subr.bf16.mxu0 %v7108_v23 }
 0x5a2   : > { %6462 = vmatpush3.bf16.msra.mxu0 %v7108_v23 }
 0x5a3   : > { %3843 = vmatpush1.bf16.msra.mxu1 %v7079_v19  ;;  %6463 = vmatprep.subr.bf16.mxu0 %v7110_v28 }
 0x5a4   : > { %3844 = vmatprep.subr.bf16.mxu1 %v7182_v2 }
 0x5a6   : > { %3725 = vmatmul.mubr.bf16.gmra.mrb[72].mxu1 %v8574_v62  ;;  %4437 = vmatmul.mubr.bf16.gmra.mrb[72].mxu0 %v8586_v15 }
 0x5a7   : > { %3845 = vmatpush1.bf16.msra.mxu1 %v7080_v21  ;;  %6092 = vmatprep.mubr.msk.bf16.mxu1 %vm917_vm2, %v8588_v16 }
 0x5a8   : > { %3846 = vmatprep.subr.bf16.mxu1 %v7182_v2  ;;  %4444 = vmatprep.mubr.bf16.mxu0 %v7184_v25 }
 0x5a9   : > { %6464 = vmatpush3.bf16.msra.mxu0 %v7110_v28 }
 0x5aa   : > { %6465 = vmatprep.subr.bf16.mxu0 %v7112_v30 }
 0x5ab   : > { %3847 = vmatpush1.bf16.msra.mxu1 %v7081_v24 }
 0x5ac   : > { %3848 = vmatprep.subr.bf16.mxu1 %v7182_v2 }
 0x5ad   : > { %6466 = vmatpush3.bf16.msra.mxu0 %v7112_v30 }
 0x5ae   : > { %3733 = vmatmul.mubr.bf16.gmra.mrb[76].mxu1 %v8592_v18  ;;  %4445 = vmatmul.mubr.bf16.gmra.mrb[76].mxu0 %v7184_v25 }
 0x5af   : > { %3849 = vmatpush1.bf16.msra.mxu1 %v7082_v26  ;;  %6107 = vmatprep.mubr.msk.bf16.mxu1 %vm917_vm2, %v8471_v13  ;;  %v7116_v13 = vld [vmem:[%s9000_s6 + $0x30] sm:$0xff]  }
 0x5b0   : > { %3850 = vmatprep.subr.bf16.mxu1 %v7182_v2  ;;  %6467 = vmatprep.subr.bf16.mxu0 %v7114_v34 }
 0x5b1   : > { %6468 = vmatpush3.bf16.msra.mxu0 %v7114_v34 }
 0x5b2   : > { %6469 = vmatprep.subr.bf16.mxu0 %v7116_v13 }
 0x5b3   : > { %3851 = vmatpush1.bf16.msra.mxu1 %v7083_v36 }
 0x5b4   : > { %3852 = vmatprep.subr.bf16.mxu1 %v7182_v2 }
 0x5b5   : > { %6470 = vmatpush3.bf16.msra.mxu0 %v7116_v13 }
 0x5b7   : > { %3853 = vmatpush1.bf16.msra.mxu1 %v7084_v38 }
 0x5b8   : > { %3854 = vmatprep.subr.bf16.mxu1 %v7182_v2 }
 0x5bb   : > { %3855 = vmatpush1.bf16.msra.mxu1 %v7085_v39 }
 0x5bc   : > { %3856 = vmatprep.subr.bf16.mxu1 %v7182_v2 }
 0x5bf   : > { %3857 = vmatpush1.bf16.msra.mxu1 %v7086_v27 }
 0x5c0   : > { %3858 = vmatprep.subr.bf16.mxu1 %v7182_v2 }
 0x5c3   : > { %3859 = vmatpush1.bf16.msra.mxu1 %v7087_v37 }
 0x5c4   : > { %3860 = vmatprep.subr.bf16.mxu1 %v7182_v2 }
 0x5c7   : > { %3861 = vmatpush1.bf16.msra.mxu1 %v7088_v29  ;;  %v7119_v29 = vld [vmem:[%s9000_s6 + $0x78] sm:$0xff]  }
 0x5c8   : > { %3862 = vmatprep.subr.bf16.mxu1 %v7182_v2 }
 0x5cb   : > { %3863 = vmatpush1.bf16.msra.mxu1 %v7089_v40  ;;  %v7120_v40 = vld [vmem:[%s9000_s6 + $0x80] sm:$0xff]  }
 0x5cc   : > { %4240 = vmatprep.subr.bf16.mxu1 %v7182_v2 }
 0x5ce   : > { %3869 = vmatmul.mubr.bf16.vlgmr.msra.gmra.mrb[80].mxu1 %v8469_v12  ;;  %v7093_v12 = vld [vmem:[%s8999_s5 + $0x248] sm:$0xff]  }
 0x5cf   : > { %6108 = vmatprep.mubr.msk.bf16.mxu1 %vm917_vm2, %v8553_v51  ;;  %4241 = vmatpush1.bf16.msra.mxu1 %v7090_v41  ;;  %v7101_v51 = vld [vmem:[%s8999_s5 + $0x288] sm:$0xff]  }
 0x5d0   : > { %4242 = vmatprep.subr.bf16.mxu1 %v7182_v2  ;;  %v7121_v41 = vld [vmem:[%s9000_s6 + $0x88] sm:$0xff]  }
 0x5d3   : > { %4243 = vmatpush1.bf16.msra.mxu1 %v7091_v42  ;;  %v7122_v42 = vld [vmem:[%s9000_s6 + $0x90] sm:$0xff]  }
 0x5d4   : > { %4244 = vmatprep.subr.bf16.mxu1 %v7182_v2 }
 0x5d6   : > { %3877 = vmatmul.mubr.bf16.gmra.mrb[84].mxu1 %v8551_v49  ;;  %v7099_v49 = vld [vmem:[%s8999_s5 + $0x278] sm:$0xff]  }
 0x5d7   : > { %6109 = vmatprep.mubr.msk.bf16.mxu1 %vm917_vm2, %v8590_v59  ;;  %4245 = vmatpush1.bf16.msra.mxu1 %v7092_v43  ;;  %v7123_v43 = vld [vmem:[%s9000_s6 + $0x98] sm:$0xff]  }
 0x5d8   : > { %4246 = vmatprep.subr.bf16.mxu1 %v7182_v2 }
 0x5db   : > { %4247 = vmatpush1.bf16.msra.mxu1 %v7093_v12  ;;  %v7124_v12 = vld [vmem:[%s9000_s6 + $0xa0] sm:$0xff]  }
 0x5dc   : > { %4248 = vmatprep.subr.bf16.mxu1 %v7182_v2 }
 0x5de   : > { %3885 = vmatmul.mubr.bf16.gmra.mrb[88].mxu1 %v8586_v15 }
 0x5df   : > { %4249 = vmatpush1.bf16.msra.mxu1 %v7094_v11  ;;  %3892 = vmatprep.mubr.bf16.mxu1 %v7184_v25  ;;  %v8844_v11 = vld [vmem:[%s9000_s6 + $0xa8] sm:$0xff]  }
 0x5e0   : > { %4250 = vmatprep.subr.bf16.mxu1 %v7182_v2 }
 0x5e3   : > { %4251 = vmatpush1.bf16.msra.mxu1 %v7095_v45 }
 0x5e4   : > { %4252 = vmatprep.subr.bf16.mxu1 %v7182_v2 }
 0x5e6   : > { %3893 = vmatmul.mubr.bf16.gmra.mrb[92].mxu1 %v7184_v25 }
 0x5e7   : > { %4253 = vmatpush1.bf16.msra.mxu1 %v7096_v46  ;;  %6226 = vmatprep.mubr.msk.bf16.mxu1 %vm917_vm2, %v8429_v33  ;;  %v7100_v33 = vld [vmem:[%s8999_s5 + $0x280] sm:$0xff]  }
 0x5e8   : > { %4254 = vmatprep.subr.bf16.mxu1 %v7182_v2 }
 0x5eb   : > { %4255 = vmatpush1.bf16.msra.mxu1 %v7097_v47 }
 0x5ec   : > { %4256 = vmatprep.subr.bf16.mxu1 %v7182_v2 }
 0x5ef   : > { %4257 = vmatpush1.bf16.msra.mxu1 %v7098_v48 }
 0x5f0   : > { %4258 = vmatprep.subr.bf16.mxu1 %v7182_v2 }
 0x5f3   : > { %4259 = vmatpush1.bf16.msra.mxu1 %v7099_v49 }
 0x5f4   : > { %4260 = vmatprep.subr.bf16.mxu1 %v7182_v2 }
 0x5f7   : > { %4261 = vmatpush1.bf16.msra.mxu1 %v7100_v33 }
 0x5f8   : > { %4262 = vmatprep.subr.bf16.mxu1 %v7182_v2 }
 0x5fb   : > { %4263 = vmatpush1.bf16.msra.mxu1 %v7101_v51 }
 0x5fc   : > { %4264 = vmatprep.subr.bf16.mxu1 %v7182_v2 }
 0x5ff   : > { %4265 = vmatpush1.bf16.msra.mxu1 %v7102_v52 }
 0x600   : > { %4266 = vmatprep.subr.bf16.mxu1 %v7182_v2  ;;  %v7109_v2 = vld [vmem:[%s9000_s6 + $0x48] sm:$0xff]  }
 0x603   : > { %4267 = vmatpush1.bf16.msra.mxu1 %v7103_v53 }
 0x604   : > { %6479 = vmatprep.subr.bf16.mxu1 %v7105_v50 }
 0x606   : > { %4273 = vmatmul.mubr.bf16.vlgmr.msra.gmra.mrb[96].mxu1 %v8427_v56  ;;  %v8789_v56 = vld [vmem:[%s9005_s11] ss:$0 sm:$0xff] }
 0x607   : > { %6227 = vmatprep.mubr.msk.bf16.mxu1 %vm917_vm2, %v8509_v35  ;;  %6480 = vmatpush3.bf16.msra.mxu1 %v7105_v50  ;;  %v7113_v35 = vld [vmem:[%s9000_s6 + $0x58] sm:$0xff]  }
 0x608   : > { %6481 = vmatprep.subr.bf16.mxu1 %v7107_v55 }
 0x60b   : > { %6482 = vmatpush3.bf16.msra.mxu1 %v7107_v55 }
 0x60c   : > { %6483 = vmatprep.subr.bf16.mxu1 %v7109_v2 }
 0x60e   : > { %4281 = vmatmul.mubr.bf16.gmra.mrb[100].mxu1 %v8507_v31 }
 0x60f   : > { %6228 = vmatprep.mubr.msk.bf16.mxu1 %vm917_vm2, %v8576_v63  ;;  %6484 = vmatpush3.bf16.msra.mxu1 %v7109_v2 }
 0x610   : > { %6485 = vmatprep.subr.bf16.mxu1 %v7111_v32 }
 0x611   : > { %v3491_v57 = vpop.f32.mrb[48].mxu1  ;;  %v4061_v54 = vpop.f32.mrb[48].mxu0 }
 0x612   : > { %v3492_v58 = vadd.f32 %v8789_v56, %v3491_v57  ;;  %v4062_v31 = vadd.f32 %v8789_v56, %v4061_v54  ;;  %v3493_v60 = vpop.f32.mrb[49].mxu1  ;;  %v4063_v61 = vpop.f32.mrb[49].mxu0 }
 0x613   : > { %v3494_v10 = vpop.f32.mrb[50].mxu1  ;;  %v4064_v20 = vpop.f32.mrb[50].mxu0  ;;  %6486 = vmatpush3.bf16.msra.mxu1 %v7111_v32 }
 0x614   : > { %v3495_v63 = vadd.f32 %v8789_v56, %v3494_v10  ;;  %v4065_v0 = vadd.f32 %v8789_v56, %v4064_v20  ;;  %v3496_v1 = vpop.f32.mrb[51].mxu1  ;;  %v4066_v3 = vpop.f32.mrb[51].mxu0  ;;  %6487 = vmatprep.subr.bf16.mxu1 %v7113_v35  ;;  %v3521_v6 = vmax.f32 %v3492_v58, 0.0  ;;  %v4091_v8 = vmax.f32 %v4062_v31, 0.0 }
 0x616   : > { %v3522_v9 = vmax.f32 %v3495_v63, 0.0  ;;  %v4092_v14 = vmax.f32 %v4065_v0, 0.0  ;;  %4289 = vmatmul.mubr.bf16.gmra.mrb[104].mxu1 %v8574_v62  ;;  %v7118_v62 = vld [vmem:[%s9000_s6 + $0x70] sm:$0xff]  }
 0x617   : > { %6229 = vmatprep.mubr.msk.bf16.mxu1 %vm917_vm2, %v8588_v16  ;;  %6488 = vmatpush3.bf16.msra.mxu1 %v7113_v35 }
 0x618   : > { %v4481_v15 = vpack.c.bf16 %v3522_v9, %v3521_v6  ;;  %v4632_v59 = vpack.c.bf16 %v4092_v14, %v4091_v8  ;;  %6489 = vmatprep.subr.bf16.mxu1 %v7115_v5 }
 0x61a   : > { %6471 = vmatprep.mubr.msk.bf16.mxu0 %vm4527_vm4, %v4481_v15 }
 0x61b   : > { %6490 = vmatpush3.bf16.msra.mxu1 %v7115_v5 }
 0x61c   : > { %6491 = vmatprep.subr.bf16.mxu1 %v7117_v44 }
 0x61e   : > { %4297 = vmatmul.mubr.bf16.gmra.mrb[108].mxu1 %v8592_v18 }
 0x61f   : > { %6493 = vmatprep.mubr.msk.bf16.mxu1 %vm4527_vm4, %v4632_v59  ;;  %6492 = vmatpush3.bf16.msra.mxu1 %v7117_v44 }
 0x620   : > { %6501 = vmatprep.subr.bf16.mxu1 %v7118_v62 }
 0x631   : > { %v3499_v16 = vpop.f32.mrb[52].mxu1  ;;  %v4069_v4 = vpop.f32.mrb[52].mxu0 }
 0x632   : > { %v3500_v7 = vadd.f32 %v8789_v56, %v3499_v16  ;;  %v4070_v17 = vadd.f32 %v8789_v56, %v4069_v4  ;;  %v3501_v19 = vpop.f32.mrb[53].mxu1  ;;  %v4071_v22 = vpop.f32.mrb[53].mxu0 }
 0x633   : > { %v3502_v21 = vpop.f32.mrb[54].mxu1  ;;  %v4072_v23 = vpop.f32.mrb[54].mxu0 }
 0x634   : > { %v3523_v24 = vmax.f32 %v3500_v7, 0.0  ;;  %v4093_v26 = vmax.f32 %v4070_v17, 0.0  ;;  %v3503_v28 = vadd.f32 %v8789_v56, %v3502_v21  ;;  %v4073_v18 = vadd.f32 %v8789_v56, %v4072_v23  ;;  %v3504_v30 = vpop.f32.mrb[55].mxu1  ;;  %v4074_v36 = vpop.f32.mrb[55].mxu0 }
 0x636   : > { %v8817_v34 = vpack.c.bf16 %v3523_v24, %v3522_v9  ;;  %v8819_v38 = vpack.c.bf16 %v4093_v26, %v4092_v14  ;;  %v3524_v13 = vmax.f32 %v3503_v28, 0.0  ;;  %v4094_v39 = vmax.f32 %v4073_v18, 0.0 }
 0x638   : > { %v4482_v27 = vpack.c.bf16 %v3524_v13, %v3523_v24  ;;  %v4633_v37 = vpack.c.bf16 %v4094_v39, %v4093_v26 }
 0x63a   : > { %6472 = vmatmul.mubr.msk.bf16.vlgmr.msra.gmra.mrb[80].mxu0 %vm4527_vm4, %v4482_v27  ;;  %6494 = vmatmul.mubr.msk.bf16.vlgmr.msra.gmra.mrb[112].mxu1 %vm4527_vm4, %v4633_v37 }
 0x63b   : > { %6502 = vmatpush3.bf16.msra.mxu1 %v7118_v62 }
 0x63c   : > { %6503 = vmatprep.subr.bf16.mxu1 %v7119_v29 }
 0x63f   : > { %6504 = vmatpush3.bf16.msra.mxu1 %v7119_v29 }
 0x640   : > { %6505 = vmatprep.subr.bf16.mxu1 %v7120_v40 }
 0x643   : > { %6506 = vmatpush3.bf16.msra.mxu1 %v7120_v40 }
 0x644   : > { %6507 = vmatprep.subr.bf16.mxu1 %v7121_v41 }
 0x647   : > { %6508 = vmatpush3.bf16.msra.mxu1 %v7121_v41 }
 0x648   : > { %6509 = vmatprep.subr.bf16.mxu1 %v7122_v42 }
 0x64b   : > { %6510 = vmatpush3.bf16.msra.mxu1 %v7122_v42 }
 0x64c   : > { %6511 = vmatprep.subr.bf16.mxu1 %v7123_v43 }
 0x64f   : > { %6512 = vmatpush3.bf16.msra.mxu1 %v7123_v43 }
 0x650   : > { %6513 = vmatprep.subr.bf16.mxu1 %v7124_v12 }
 0x651   : > { %v3507_v45 = vpop.f32.mrb[56].mxu1  ;;  %v4077_v46 = vpop.f32.mrb[56].mxu0 }
 0x652   : > { %v3508_v47 = vadd.f32 %v8789_v56, %v3507_v45  ;;  %v4078_v48 = vadd.f32 %v8789_v56, %v4077_v46  ;;  %v3509_v49 = vpop.f32.mrb[57].mxu1  ;;  %v4079_v33 = vpop.f32.mrb[57].mxu0 }
 0x653   : > { %v3510_v51 = vpop.f32.mrb[58].mxu1  ;;  %v4080_v52 = vpop.f32.mrb[58].mxu0  ;;  %6514 = vmatpush3.bf16.msra.mxu1 %v7124_v12 }
 0x654   : > { %v3525_v53 = vmax.f32 %v3508_v47, 0.0  ;;  %v4095_v50 = vmax.f32 %v4078_v48, 0.0  ;;  %v3511_v55 = vadd.f32 %v8789_v56, %v3510_v51  ;;  %v4081_v2 = vadd.f32 %v8789_v56, %v4080_v52  ;;  %v3512_v32 = vpop.f32.mrb[59].mxu1  ;;  %v4082_v35 = vpop.f32.mrb[59].mxu0  ;;  %6523 = vmatprep.subr.bf16.mxu1 %v8844_v11 }
 0x656   : > { %v8851_v57 = vpack.c.bf16 %v3525_v53, %v3524_v13  ;;  %v8853_v54 = vpack.c.bf16 %v4095_v50, %v4094_v39  ;;  %v3526_v58 = vmax.f32 %v3511_v55, 0.0  ;;  %v4096_v31 = vmax.f32 %v4081_v2, 0.0 }
 0x658   : > { %v4483_v60 = vpack.c.bf16 %v3526_v58, %v3525_v53  ;;  %v4634_v61 = vpack.c.bf16 %v4096_v31, %v4095_v50 }
 0x65a   : > { %6475 = vmatprep.mubr.msk.bf16.mxu0 %vm4527_vm4, %v4483_v60  ;;  %6497 = vmatprep.mubr.msk.bf16.mxu1 %vm4527_vm4, %v4634_v61 }
 0x661   : > { %v3515_v10 = vpop.f32.mrb[60].mxu1  ;;  %v4085_v20 = vpop.f32.mrb[60].mxu0 }
 0x662   : > { %v3516_v63 = vadd.f32 %v8789_v56, %v3515_v10  ;;  %v4086_v0 = vadd.f32 %v8789_v56, %v4085_v20  ;;  %v3517_v1 = vpop.f32.mrb[61].mxu1  ;;  %v4087_v3 = vpop.f32.mrb[61].mxu0 }
 0x663   : > { %v3518_v5 = vpop.f32.mrb[62].mxu1  ;;  %v4088_v6 = vpop.f32.mrb[62].mxu0 }
 0x664   : > { %v3527_v8 = vmax.f32 %v3516_v63, 0.0  ;;  %v4097_v9 = vmax.f32 %v4086_v0, 0.0  ;;  %v3519_v14 = vpop.f32.mrb[63].mxu1  ;;  %v4089_v15 = vpop.f32.mrb[63].mxu0 }
 0x666   : > { %v4484_v59 = vpack.c.bf16 %v3527_v8, %v3527_v8  ;;  %v8859_v44 = vpack.c.bf16 %v3527_v8, %v3526_v58  ;;  %v4635_v62 = vpack.c.bf16 %v4097_v9, %v4097_v9  ;;  %v8861_v16 = vpack.c.bf16 %v4097_v9, %v4096_v31 }
 0x668   : > { %6476 = vmatmul.mubr.msk.bf16.gmra.mrb[84].mxu0 %vm4527_vm4, %v4484_v59  ;;  %6498 = vmatmul.mubr.msk.bf16.gmra.mrb[116].mxu1 %vm4527_vm4, %v4635_v62 }
 0x669   : > { %v3710_v4 = vpop.f32.mrb[64].mxu1  ;;  %v8865_v7 = vpop.f32.mrb[64].mxu0 }
 0x66a   : > { %v3712_v17 = vpop.f32.mrb[65].mxu1  ;;  %v4424_v19 = vpop.f32.mrb[65].mxu0 }
 0x66b   : > { %v3713_v22 = vpop.f32.mrb[66].mxu1  ;;  %v8867_v21 = vpop.f32.mrb[66].mxu0  ;;  %v7126_v19 = vld [vmem:[%s9000_s6 + $0xb0] sm:$0xff]  }
 0x66c   : > { %v3715_v23 = vpop.f32.mrb[67].mxu1  ;;  %v4427_v24 = vpop.f32.mrb[67].mxu0 }
 0x671   : > { %v3718_v26 = vpop.f32.mrb[68].mxu1  ;;  %v8869_v28 = vpop.f32.mrb[68].mxu0 }
 0x672   : > { %v3720_v18 = vpop.f32.mrb[69].mxu1  ;;  %v4432_v30 = vpop.f32.mrb[69].mxu0 }
 0x673   : > { %v3721_v36 = vpop.f32.mrb[70].mxu1  ;;  %v8871_v13 = vpop.f32.mrb[70].mxu0  ;;  %v7127_v30 = vld [vmem:[%s9000_s6 + $0xb8] sm:$0xff]  }
 0x674   : > { %v3723_v39 = vpop.f32.mrb[71].mxu1  ;;  %v4435_v27 = vpop.f32.mrb[71].mxu0 }
 0x679   : > { %v3726_v37 = vpop.f32.mrb[72].mxu1  ;;  %v8873_v29 = vpop.f32.mrb[72].mxu0 }
 0x67a   : > { %v3728_v40 = vpop.f32.mrb[73].mxu1  ;;  %v4440_v41 = vpop.f32.mrb[73].mxu0 }
 0x67b   : > { %v3729_v42 = vpop.f32.mrb[74].mxu1  ;;  %v8875_v43 = vpop.f32.mrb[74].mxu0 }
 0x67c   : > { %v3731_v12 = vpop.f32.mrb[75].mxu1  ;;  %v4443_v45 = vpop.f32.mrb[75].mxu0 }
 0x681   : > { %v3734_v46 = vpop.f32.mrb[76].mxu1  ;;  %v8877_v47 = vpop.f32.mrb[76].mxu0 }
 0x682   : > { %v3736_v48 = vpop.f32.mrb[77].mxu1  ;;  %v4448_v49 = vpop.f32.mrb[77].mxu0 }
 0x683   : > { %v3737_v33 = vpop.f32.mrb[78].mxu1  ;;  %v4449_v51 = vpop.f32.mrb[78].mxu0  ;;  %v7129_v49 = vld [vmem:[%s9000_s6 + $0xc8] sm:$0xff]  }
 0x684   : > { %v3738_v52 = vpop.f32.mrb[79].mxu1  ;;  %v4450_v53 = vpop.f32.mrb[79].mxu0  ;;  %v7130_v33 = vld [vmem:[%s9000_s6 + $0xd0] sm:$0xff]   ;;  %v7131_v51 = vld [vmem:[%s9000_s6 + $0xd8] sm:$0xff]  }
 0x685   : > { %v7132_v52 = vld [vmem:[%s9000_s6 + $0xe0] sm:$0xff]  }
 0x6a1   : > { %v3870_v50 = vpop.f32.mrb[80].mxu1 }
 0x6a2   : > { %v3871_v55 = vadd.f32 %v3870_v50, %v3710_v4  ;;  %v3872_v2 = vpop.f32.mrb[81].mxu1 }
 0x6a3   : > { %v3873_v32 = vpop.f32.mrb[82].mxu1 }
 0x6a4   : > { %v3900_v35 = vadd.f32 %v8789_v56, %v3871_v55  ;;  %v3874_v58 = vadd.f32 %v3873_v32, %v3713_v22  ;;  %v3875_v31 = vpop.f32.mrb[83].mxu1 }
 0x6a6   : > { %v3901_v60 = vadd.f32 %v8789_v56, %v3874_v58  ;;  %v3907_v61 = vmax.f32 %v3900_v35, 0.0 }
 0x6a8   : > { %v3908_v10 = vmax.f32 %v3901_v60, 0.0 }
 0x6a9   : > { %v3878_v20 = vpop.f32.mrb[84].mxu1 }
 0x6aa   : > { %v4776_v63 = vpack.c.bf16 %v3908_v10, %v3907_v61  ;;  %v3879_v0 = vadd.f32 %v3878_v20, %v3718_v26  ;;  %v3880_v1 = vpop.f32.mrb[85].mxu1 }
 0x6ab   : > { %v3881_v3 = vpop.f32.mrb[86].mxu1 }
 0x6ac   : > { %v3902_v5 = vadd.f32 %v8789_v56, %v3879_v0  ;;  %v3882_v6 = vadd.f32 %v3881_v3, %v3721_v36  ;;  %v3883_v8 = vpop.f32.mrb[87].mxu1  ;;  %6515 = vmatprep.mubr.msk.bf16.mxu1 %vm4527_vm4, %v4776_v63 }
 0x6ae   : > { %v3903_v9 = vadd.f32 %v8789_v56, %v3882_v6  ;;  %v3909_v14 = vmax.f32 %v3902_v5, 0.0 }
 0x6b0   : > { %v3910_v15 = vmax.f32 %v3903_v9, 0.0 }
 0x6b1   : > { %v3886_v59 = vpop.f32.mrb[88].mxu1 }
 0x6b2   : > { %v4777_v62 = vpack.c.bf16 %v3910_v15, %v3909_v14  ;;  %v3887_v4 = vadd.f32 %v3886_v59, %v3726_v37  ;;  %v3888_v17 = vpop.f32.mrb[89].mxu1 }
 0x6b3   : > { %v3889_v22 = vpop.f32.mrb[90].mxu1 }
 0x6b4   : > { %v3904_v23 = vadd.f32 %v8789_v56, %v3887_v4  ;;  %v3890_v24 = vadd.f32 %v3889_v22, %v3729_v42  ;;  %v3891_v26 = vpop.f32.mrb[91].mxu1  ;;  %6516 = vmatmul.mubr.msk.bf16.vlgmr.msra.gmra.mrb[112].mxu1 %vm4527_vm4, %v4777_v62  ;;  %v7128_v42 = vld [vmem:[%s9000_s6 + $0xc0] sm:$0xff]  }
 0x6b5   : > { %6524 = vmatpush3.bf16.msra.mxu1 %v8844_v11 }
 0x6b6   : > { %v3905_v18 = vadd.f32 %v8789_v56, %v3890_v24  ;;  %6525 = vmatprep.subr.bf16.mxu1 %v7126_v19  ;;  %v3911_v36 = vmax.f32 %v3904_v23, 0.0 }
 0x6b8   : > { %v3912_v39 = vmax.f32 %v3905_v18, 0.0 }
 0x6b9   : > { %v3894_v27 = vpop.f32.mrb[92].mxu1  ;;  %6526 = vmatpush3.bf16.msra.mxu1 %v7126_v19 }
 0x6ba   : > { %v4778_v37 = vpack.c.bf16 %v3912_v39, %v3911_v36  ;;  %v3895_v40 = vadd.f32 %v3894_v27, %v3734_v46  ;;  %v3896_v41 = vpop.f32.mrb[93].mxu1  ;;  %6527 = vmatprep.subr.bf16.mxu1 %v7127_v30 }
 0x6bb   : > { %v3897_v11 = vpop.f32.mrb[94].mxu1  ;;  %v7137_v41 = vld [vmem:[%s9000_s6 + $0x108] sm:$0xff]  }
 0x6bc   : > { %v3906_v12 = vadd.f32 %v8789_v56, %v3895_v40  ;;  %6519 = vmatprep.mubr.msk.bf16.mxu1 %vm4527_vm4, %v4778_v37  ;;  %v3898_v45 = vpop.f32.mrb[95].mxu1  ;;  %v7136_v40 = vld [vmem:[%s9000_s6 + $0x100] sm:$0xff]  }
 0x6bd   : > { %6528 = vmatpush3.bf16.msra.mxu1 %v7127_v30  ;;  %v7140_v11 = vld [vmem:[%s9000_s6 + $0x120] sm:$0xff]  }
 0x6be   : > { %v3913_v48 = vmax.f32 %v3906_v12, 0.0  ;;  %6529 = vmatprep.subr.bf16.mxu1 %v7128_v42 }
 0x6c0   : > { %v4779_v46 = vpack.c.bf16 %v3913_v48, %v3913_v48  ;;  %v7142_v48 = vld [vmem:[%s9000_s6 + $0x130] sm:$0xff]  }
 0x6c1   : > { %6530 = vmatpush3.bf16.msra.mxu1 %v7128_v42  ;;  %v7139_v42 = vld [vmem:[%s9000_s6 + $0x118] sm:$0xff]  }
 0x6c2   : > { %6520 = vmatmul.mubr.msk.bf16.gmra.mrb[116].mxu1 %vm4527_vm4, %v4779_v46  ;;  %6531 = vmatprep.subr.bf16.mxu1 %v7129_v49  ;;  %v7144_v46 = vld [vmem:[%s9000_s6 + $0x140] sm:$0xff]  }
 0x6c5   : > { %6532 = vmatpush3.bf16.msra.mxu1 %v7129_v49 }
 0x6c6   : > { %6533 = vmatprep.subr.bf16.mxu1 %v7130_v33 }
 0x6c9   : > { %6534 = vmatpush3.bf16.msra.mxu1 %v7130_v33  ;;  %v7145_v33 = vld [vmem:[%s9000_s6 + $0x148] sm:$0xff]  }
 0x6ca   : > { %6535 = vmatprep.subr.bf16.mxu1 %v7131_v51 }
 0x6cd   : > { %6536 = vmatpush3.bf16.msra.mxu1 %v7131_v51 }
 0x6ce   : > { %6545 = vmatprep.subr.bf16.mxu1 %v7132_v52 }
 0x6d9   : > { %v4274_v53 = vpop.f32.mrb[96].mxu1 }
 0x6da   : > { %v4423_v50 = vadd.f32 %v8865_v7, %v4274_v53  ;;  %v4276_v55 = vpop.f32.mrb[97].mxu1 }
 0x6db   : > { %v4277_v2 = vpop.f32.mrb[98].mxu1 }
 0x6dc   : > { %v4452_v32 = vadd.f32 %v8789_v56, %v4423_v50  ;;  %v4426_v35 = vadd.f32 %v8867_v21, %v4277_v2  ;;  %v4279_v58 = vpop.f32.mrb[99].mxu1  ;;  %v6258_v50 = vld [vmem:[%s9006_s12] ss:$0 sm:$0xff] }
 0x6de   : > { %v4453_v31 = vadd.f32 %v8789_v56, %v4426_v35  ;;  %v4459_v60 = vmax.f32 %v4452_v32, 0.0 }
 0x6e0   : > { %v4460_v61 = vmax.f32 %v4453_v31, 0.0 }
 0x6e1   : > { %v4282_v10 = vpop.f32.mrb[100].mxu1 }
 0x6e2   : > { %v4920_v20 = vpack.c.bf16 %v4460_v61, %v4459_v60  ;;  %v4431_v63 = vadd.f32 %v8869_v28, %v4282_v10  ;;  %v4284_v0 = vpop.f32.mrb[101].mxu1  ;;  %v7133_v28 = vld [vmem:[%s9000_s6 + $0xe8] sm:$0xff]  }
 0x6e3   : > { %v4285_v1 = vpop.f32.mrb[102].mxu1 }
 0x6e4   : > { %v4454_v3 = vadd.f32 %v8789_v56, %v4431_v63  ;;  %v4434_v7 = vadd.f32 %v8871_v13, %v4285_v1  ;;  %v4287_v5 = vpop.f32.mrb[103].mxu1  ;;  %6537 = vmatprep.mubr.msk.bf16.mxu1 %vm4527_vm4, %v4920_v20 }
 0x6e6   : > { %v4455_v21 = vadd.f32 %v8789_v56, %v4434_v7  ;;  %v4461_v6 = vmax.f32 %v4454_v3, 0.0 }
 0x6e8   : > { %v4462_v8 = vmax.f32 %v4455_v21, 0.0 }
 0x6e9   : > { %v4290_v9 = vpop.f32.mrb[104].mxu1 }
 0x6ea   : > { %v4921_v14 = vpack.c.bf16 %v4462_v8, %v4461_v6  ;;  %v4439_v15 = vadd.f32 %v8873_v29, %v4290_v9  ;;  %v4292_v59 = vpop.f32.mrb[105].mxu1  ;;  %v7134_v29 = vld [vmem:[%s9000_s6 + $0xf0] sm:$0xff]  }
 0x6eb   : > { %v4293_v62 = vpop.f32.mrb[106].mxu1 }
 0x6ec   : > { %v4456_v4 = vadd.f32 %v8789_v56, %v4439_v15  ;;  %v4442_v13 = vadd.f32 %v8875_v43, %v4293_v62  ;;  %v4295_v17 = vpop.f32.mrb[107].mxu1  ;;  %6538 = vmatmul.mubr.msk.bf16.vlgmr.msra.gmra.mrb[112].mxu1 %vm4527_vm4, %v4921_v14  ;;  %v7135_v43 = vld [vmem:[%s9000_s6 + $0xf8] sm:$0xff]  }
 0x6ed   : > { %6546 = vmatpush3.bf16.msra.mxu1 %v7132_v52 }
 0x6ee   : > { %v4457_v19 = vadd.f32 %v8789_v56, %v4442_v13  ;;  %6547 = vmatprep.subr.bf16.mxu1 %v7133_v28  ;;  %v4463_v22 = vmax.f32 %v4456_v4, 0.0 }
 0x6f0   : > { %v4464_v23 = vmax.f32 %v4457_v19, 0.0 }
 0x6f1   : > { %6548 = vmatpush3.bf16.msra.mxu1 %v7133_v28  ;;  %v4298_v24 = vpop.f32.mrb[108].mxu1 }
 0x6f2   : > { %v4922_v26 = vpack.c.bf16 %v4464_v23, %v4463_v22  ;;  %v4447_v18 = vadd.f32 %v8877_v47, %v4298_v24  ;;  %v4300_v30 = vpop.f32.mrb[109].mxu1  ;;  %6549 = vmatprep.subr.bf16.mxu1 %v7134_v29 }
 0x6f3   : > { %v4301_v36 = vpop.f32.mrb[110].mxu1 }
 0x6f4   : > { %v4458_v39 = vadd.f32 %v8789_v56, %v4447_v18  ;;  %v4302_v27 = vpop.f32.mrb[111].mxu1  ;;  %6541 = vmatprep.mubr.msk.bf16.mxu1 %vm4527_vm4, %v4922_v26  ;;  %v7138_v56 = vld [vmem:[%s9000_s6 + $0x110] sm:$0xff]  }
 0x6f5   : > { %6550 = vmatpush3.bf16.msra.mxu1 %v7134_v29 }
 0x6f6   : > { %v4465_v37 = vmax.f32 %v4458_v39, 0.0  ;;  %6551 = vmatprep.subr.bf16.mxu1 %v7135_v43 }
 0x6f8   : > { %v4923_v47 = vpack.c.bf16 %v4465_v37, %v4465_v37 }
 0x6f9   : > { %6552 = vmatpush3.bf16.msra.mxu1 %v7135_v43 }
 0x6fa   : > { %6542 = vmatmul.mubr.msk.bf16.gmra.mrb[116].mxu1 %vm4527_vm4, %v4923_v47  ;;  %6553 = vmatprep.subr.bf16.mxu1 %v7136_v40 }
 0x6fb   : > { %6559 = vmatprep.mubr.msk.bf16.mxu1 %vm4527_vm4, %v8817_v34  ;;  %v7141_v34 = vld [vmem:[%s9000_s6 + $0x128] sm:$0xff]  }
 0x6fd   : > { %6554 = vmatpush3.bf16.msra.mxu1 %v7136_v40 }
 0x6fe   : > { %6555 = vmatprep.subr.bf16.mxu1 %v7137_v41 }
 0x701   : > { %6556 = vmatpush3.bf16.msra.mxu1 %v7137_v41 }
 0x702   : > { %6557 = vmatprep.subr.bf16.mxu1 %v7138_v56 }
 0x705   : > { %6558 = vmatpush3.bf16.msra.mxu1 %v7138_v56 }
 0x706   : > { %6567 = vmatprep.subr.bf16.mxu1 %v7139_v42 }
 0x708   : > { %6560 = vmatmul.mubr.msk.bf16.vlgmr.msra.gmra.mrb[112].mxu1 %vm4527_vm4, %v8851_v57 }
 0x709   : > { %6563 = vmatprep.mubr.msk.bf16.mxu1 %vm4527_vm4, %v8859_v44  ;;  %6568 = vmatpush3.bf16.msra.mxu1 %v7139_v42  ;;  %v7143_v44 = vld [vmem:[%s9000_s6 + $0x138] sm:$0xff]  }
 0x70a   : > { %6569 = vmatprep.subr.bf16.mxu1 %v7140_v11 }
 0x70d   : > { %6570 = vmatpush3.bf16.msra.mxu1 %v7140_v11  ;;  %v6473_v12 = vpop.f32.mrb[80].mxu0 }
 0x70e   : > { %v4574_v45 = vpop.f32.mrb[81].mxu0  ;;  %6571 = vmatprep.subr.bf16.mxu1 %v7141_v34  ;;  %v4612_v55 = vadd.f32 %v6473_v12, %v6258_v50 }
 0x70f   : > { %v6474_v49 = vpop.f32.mrb[82].mxu0  ;;  %v4610_v2 = vadd.f32 %v6258_v50, %v4574_v45 }
 0x710   : > { %6564 = vmatmul.mubr.bf16.gmra.mrb[116].mxu1 %v7184_v25  ;;  %v4577_v57 = vpop.f32.mrb[83].mxu0  ;;  %v4613_v35 = vadd.f32 %v6474_v49, %v6258_v50 }
 0x711   : > { %6572 = vmatpush3.bf16.msra.mxu1 %v7141_v34  ;;  %6581 = vmatprep.mubr.msk.bf16.mxu1 %vm4527_vm4, %v8819_v38 }
 0x712   : > { %6573 = vmatprep.subr.bf16.mxu1 %v7142_v48 }
 0x715   : > { %6574 = vmatpush3.bf16.msra.mxu1 %v7142_v48 }
 0x716   : > { %6575 = vmatprep.subr.bf16.mxu1 %v7143_v44 }
 0x719   : > { %6576 = vmatpush3.bf16.msra.mxu1 %v7143_v44 }
 0x71a   : > { %6577 = vmatprep.subr.bf16.mxu1 %v7144_v46 }
 0x71d   : > { %6578 = vmatpush3.bf16.msra.mxu1 %v7144_v46 }
 0x71e   : > { %6579 = vmatprep.subr.bf16.mxu1 %v7145_v33 }
 0x721   : > { %6580 = vmatpush3.bf16.msra.mxu1 %v7145_v33 }
 0x724   : > { %6582 = vmatmul.mubr.msk.bf16.vlgmr.msra.gmra.mrb[112].mxu1 %vm4527_vm4, %v8853_v54  ;;  %v4611_v54 = vadd.f32 %v6258_v50, %v4577_v57 }
 0x725   : > { %6585 = vmatprep.mubr.msk.bf16.mxu1 %vm4527_vm4, %v8861_v16 }
 0x72c   : > { %6586 = vmatmul.mubr.bf16.gmra.mrb[116].mxu1 %v7184_v25 }
 0x73b   : > { %v6477_v38 = vpop.f32.mrb[84].mxu0 }
 0x73c   : > { %v4590_v51 = vpop.f32.mrb[85].mxu0  ;;  %v4616_v3 = vadd.f32 %v6477_v38, %v6258_v50 }
 0x73d   : > { %v6478_v52 = vpop.f32.mrb[86].mxu0  ;;  %v4614_v7 = vadd.f32 %v6258_v50, %v4590_v51 }
 0x73e   : > { %v4593_v53 = vpop.f32.mrb[87].mxu0 }
 0x73f   : > { %v4615_v8 = vadd.f32 %v6258_v50, %v4593_v53 }
 0x7f7   : > { %v6583_v32 = vpop.f32.mrb[112].mxu1 }
 0x7f8   : > { %v6603_v58 = vadd.f32 %v6583_v32, %v4612_v55  ;;  %v5294_v31 = vpop.f32.mrb[113].mxu1 }
 0x7f9   : > { %v6605_v60 = vadd.f32 %v5294_v31, %v4610_v2  ;;  %v6584_v61 = vpop.f32.mrb[114].mxu1 }
 0x7fa   : > { %v6384_v16 = vmul.f32 -1.442695, %v6603_v58  ;;  %v6607_v10 = vadd.f32 %v6584_v61, %v4613_v35  ;;  %v5297_v25 = vpop.f32.mrb[115].mxu1 }
 0x7fb   : > { %v6382_v20 = vmul.f32 -1.442695, %v6605_v60  ;;  %v6609_v63 = vadd.f32 %v5297_v25, %v4611_v54 }
 0x7fc   : > { %7146 = vpow2.f32 %v6384_v16  ;;  %v6385_v0 = vmul.f32 -1.442695, %v6607_v10 }
 0x7fd   : > { %7148 = vpow2.f32 %v6382_v20  ;;  %v6383_v1 = vmul.f32 -1.442695, %v6609_v63 }
 0x7fe   : > { %7150 = vpow2.f32 %v6385_v0 }
 0x7ff   : > { %7152 = vpow2.f32 %v6383_v1  ;;  %v6587_v5 = vpop.f32.mrb[116].mxu1 }
 0x800   : > { %v6611_v21 = vadd.f32 %v6587_v5, %v4616_v3  ;;  %v5310_v6 = vpop.f32.mrb[117].mxu1 }
 0x801   : > { %v6613_v9 = vadd.f32 %v5310_v6, %v4614_v7  ;;  %v6588_v14 = vpop.f32.mrb[118].mxu1 }
 0x802   : > { %v6388_v15 = vmul.f32 -1.442695, %v6611_v21  ;;  %v5313_v59 = vpop.f32.mrb[119].mxu1 }
 0x803   : > { %v6386_v28 = vmul.f32 -1.442695, %v6613_v9  ;;  %v6615_v62 = vadd.f32 %v5313_v59, %v4615_v8 }
 0x804   : > { %7154 = vpow2.f32 %v6388_v15 }
 0x805   : > { %7156 = vpow2.f32 %v6386_v28  ;;  %v6387_v4 = vmul.f32 -1.442695, %v6615_v62 }
 0x806   : > { %v7147_v13 = vpop.eup %7146 }
 0x807   : > { %v7149_v17 = vpop.eup %7148  ;;  %v5354_v19 = vadd.f32 1.0, %v7147_v13  ;;  %7158 = vpow2.f32 %v6387_v4 }
 0x808   : > { %v7151_v29 = vpop.eup %7150  ;;  %v5352_v22 = vadd.f32 1.0, %v7149_v17 }
 0x809   : > { %v7153_v23 = vpop.eup %7152  ;;  %7160 = vrcp.f32 %v5354_v19  ;;  %v5355_v24 = vadd.f32 1.0, %v7151_v29 }
 0x80a   : > { %7162 = vrcp.f32 %v5352_v22  ;;  %v5353_v26 = vadd.f32 1.0, %v7153_v23 }
 0x80b   : > { %7164 = vrcp.f32 %v5355_v24 }
 0x80c   : > { %7166 = vrcp.f32 %v5353_v26 }
 0x80e   : > { %v7155_v18 = vpop.eup %7154 }
 0x80f   : > { %v7157_v30 = vpop.eup %7156  ;;  %v5358_v43 = vadd.f32 1.0, %v7155_v18 }
 0x810   : > { %v5356_v36 = vadd.f32 1.0, %v7157_v30 }
 0x811   : > { %v7159_v39 = vpop.eup %7158  ;;  %7168 = vrcp.f32 %v5358_v43 }
 0x812   : > { %7170 = vrcp.f32 %v5356_v36  ;;  %v5357_v27 = vadd.f32 1.0, %v7159_v39 }
 0x813   : > { %v7161_v37 = vpop.eup %7160 }
 0x814   : > { %v7163_v40 = vpop.eup %7162  ;;  %5375 = vst [vmem:[%s442_s20 + $0x10] sm:$0xff] %v7161_v37  ;;  %7172 = vrcp.f32 %v5357_v27 }
 0x815   : > { %v7165_v47 = vpop.eup %7164  ;;  %5373 = vst [vmem:[%s442_s20] sm:$0xff] %v7163_v40 }
 0x816   : > { %v7167_v41 = vpop.eup %7166  ;;  %5376 = vst [vmem:[%s442_s20 + $0x18] sm:$0xff] %v7165_v47 }
 0x817   : > { %5374 = vst [vmem:[%s442_s20 + $0x8] sm:$0xff] %v7167_v41 }
 0x81b   : > { %v7169_v56 = vpop.eup %7168 }
 0x81c   : > { %v7171_v42 = vpop.eup %7170  ;;  %5379 = vst [vmem:[%s442_s20 + $0x30] sm:$0xff] %v7169_v56 }
 0x81d   : > { %5377 = vst [vmem:[%s442_s20 + $0x20] sm:$0xff] %v7171_v42 }
 0x81e   : > { %v7173_v11 = vpop.eup %7172 }
 0x81f   : > { %5378 = vst [vmem:[%s442_s20 + $0x28] sm:$0xff] %v7173_v11 }
 0x820 PF: > { %s23_s25 = sadd.s32 1, %s7180_s25  }
 0x821   : > { %p20_p5 = scmp.ge.s32.totalorder %s23_s25, 4  }
 0x823   :  { %22 = sbr.rel (!%p20_p5) target bundleno = 1 (0x1), region = 126 }

</bundles_post_ra>
